<compile_context>
chip_gen: v6e
topology: v6e:2x2x1
jax: 0.10.0
libtpu: 0.0.40
codegen_flags: <defaults>
</compile_context>

<pallas_src>
import functools
import math

import numpy as np

import jax
import jax.numpy as jnp
from jax.experimental import pallas as pl
from jax.experimental.pallas import tpu as pltpu


# ---------------------------------------------------------------------------
# Tiling / VMEM budgets
# ---------------------------------------------------------------------------

_TILE_P = 1024                         # pixel tile (lane axis) for the 1x1-conv GEMM
_CONV3_STEP_BYTES = 24 * 1024 * 1024   # per-grid-step VMEM budget for the 3x3 conv
_UP_BLOCK_BYTES = 2 * 1024 * 1024      # per-grid-step budget for the upsample


def _derive_vmem_limit():
    """Per-generation scoped-VMEM limit: leave >=24 MiB headroom under physical."""
    try:
        cap = int(pltpu.get_tpu_info().vmem_capacity_bytes)
    except Exception:
        cap = 64 * 1024 * 1024         # conservative fallback (v7x physical VMEM)
    return max(32 * 1024 * 1024, min(cap - 24 * 1024 * 1024, 96 * 1024 * 1024))


_VMEM_LIMIT = _derive_vmem_limit()


def _cp(semantics):
    return pltpu.CompilerParams(dimension_semantics=semantics,
                                vmem_limit_bytes=_VMEM_LIMIT)


def _largest_divisor(n, cap):
    d = max(1, min(n, cap))
    while n % d:
        d -= 1
    return d


# ---------------------------------------------------------------------------
# Folded BatchNorm (train-mode statistics) + shared element-wise apply kernel
# ---------------------------------------------------------------------------

def _bn_fold(s, ss, count, gamma, beta):
    """Fold train-mode BN (biased var, eps=1e-5) into per-channel scale/shift.

    TODO(synk): E[z^2]-E[z]^2 in f32 can cancel at very large pixel counts;
    a chunked mean-shifted combine would be more robust at real resolutions.
    """
    mean = s / count
    var = jnp.maximum(ss / count - mean * mean, 0.0)
    rstd = jax.lax.rsqrt(var + 1e-5)
    scale = gamma * rstd
    shift = beta - mean * scale
    return scale, shift


def _bn_relu_kernel(z_ref, sc_ref, sh_ref, o_ref):
    z = z_ref[...].astype(jnp.float32)                       # (1, C, tile)
    o_ref[...] = jnp.maximum(z * sc_ref[...] + sh_ref[...], 0.0).astype(o_ref.dtype)


def _bn_relu_apply(z, scale, shift, tile, out_dtype=jnp.bfloat16):
    """Element-wise y = relu(z*scale + shift); z is (M, C, P) with P % tile == 0."""
    M, C, P = z.shape
    grid = (M, P // tile)
    return pl.pallas_call(
        _bn_relu_kernel,
        out_shape=jax.ShapeDtypeStruct((M, C, P), out_dtype),
        grid=grid,
        in_specs=[pl.BlockSpec((1, C, tile), lambda m, t: (m, 0, t)),
                  pl.BlockSpec((C, 1), lambda m, t: (0, 0)),
                  pl.BlockSpec((C, 1), lambda m, t: (0, 0))],
        out_specs=pl.BlockSpec((1, C, tile), lambda m, t: (m, 0, t)),
        compiler_params=_cp(("parallel", "parallel")),
    )(z, scale, shift)


# ---------------------------------------------------------------------------
# 1x1 conv + BN + ReLU  (single tiled GEMM + resident stats accumulators)
# ---------------------------------------------------------------------------

def _mm_stats_kernel(x_ref, w_ref, z_ref, s_ref, ss_ref):
    """z = W @ x_tile; stream z out and accumulate per-channel sum / sumsq."""
    @pl.when((pl.program_id(0) == 0) & (pl.program_id(1) == 0))
    def _():
        s_ref[...] = jnp.zeros_like(s_ref)
        ss_ref[...] = jnp.zeros_like(ss_ref)

    z = jnp.dot(w_ref[...], x_ref[0], preferred_element_type=jnp.float32)
    s_ref[...] += jnp.sum(z, axis=1, keepdims=True)
    ss_ref[...] += jnp.sum(z * z, axis=1, keepdims=True)
    z_ref[0] = z.astype(z_ref.dtype)


def _pick_pixel_tile(P, cap):
    """Pick (tile, padded_P).  Prefer a divisor of P (no crop); pad only if needed."""
    cap = max(128, (cap // 128) * 128)
    if P <= cap:
        return P, P
    if P % 128 == 0:
        t = cap
        while t >= 128:
            if P % t == 0:
                return t, P
            t -= 128
    padded = -(-P // cap) * cap
    return cap, padded


def conv1x1_bn_relu(x, p, *, tile_cap=_TILE_P):
    N, Cin, H, W = x.shape
    Cout = p["w"].shape[0]
    HW = H * W
    x2 = x.astype(jnp.bfloat16).reshape(N, Cin, HW)

    tile, hw_pad = _pick_pixel_tile(HW, tile_cap)
    if hw_pad != HW:
        # zero columns contribute 0 to sum/sumsq; divide by the true pixel count.
        x2 = jnp.pad(x2, ((0, 0), (0, 0), (0, hw_pad - HW)))
    nt = hw_pad // tile

    w_bf = p["w"].astype(jnp.bfloat16)
    grid = (N, nt)

    # Pass 1: GEMM + stats + z (grid sequential -> resident accumulators are safe).
    z, s, ss = pl.pallas_call(
        _mm_stats_kernel,
        out_shape=(jax.ShapeDtypeStruct((N, Cout, hw_pad), jnp.bfloat16),
                   jax.ShapeDtypeStruct((Cout, 1), jnp.float32),
                   jax.ShapeDtypeStruct((Cout, 1), jnp.float32)),
        grid=grid,
        in_specs=[pl.BlockSpec((1, Cin, tile), lambda n, t: (n, 0, t)),
                  pl.BlockSpec((Cout, Cin), lambda n, t: (0, 0))],
        out_specs=(pl.BlockSpec((1, Cout, tile), lambda n, t: (n, 0, t)),
                   pl.BlockSpec((Cout, 1), lambda n, t: (0, 0)),
                   pl.BlockSpec((Cout, 1), lambda n, t: (0, 0))),
        compiler_params=_cp(("arbitrary", "arbitrary")),
    )(x2, w_bf)

    scale, shift = _bn_fold(s, ss, N * HW, p["gamma"], p["beta"])

    # Pass 2: pure element-wise normalize + ReLU (megacore-shardable).
    y = _bn_relu_apply(z, scale, shift, tile)
    if hw_pad != HW:
        y = y[:, :, :HW]
    return y.reshape(N, Cout, H, W)


# ---------------------------------------------------------------------------
# 3x3 node conv + BN + ReLU
#   * two separate inputs (no HBM concat), weights split into two tap groups
#   * pixel (row-band) tiling with a 1-row halo
#   * single GEMM pass (z streamed out) + shared element-wise normalize pass
# ---------------------------------------------------------------------------

def _conv3_pass1_kernel(xa_ref, xb_ref, w_ref, z_ref, s_ref, ss_ref,
                        *, width, band, fused):
    @pl.when((pl.program_id(0) == 0) & (pl.program_id(1) == 0))
    def _():
        s_ref[...] = jnp.zeros_like(s_ref)
        ss_ref[...] = jnp.zeros_like(ss_ref)

    P = band * width

    def taps(ref):
        # tap (kh, kw): W-shifted copy kw, rows [kh, kh+band) of the halo'd band
        # -> a contiguous lane slice of the flattened (C, (band+2)*W) block.
        # NOTE: when width % 128 != 0 the kh=1,2 starts are unaligned and Mosaic
        # inserts a lane relayout; padding the row stride to 128 would remove it
        # but bloats memory at small widths, so it is not done here.
        return [ref[kw, 0, 0, :, kh * width: kh * width + P]
                for kh in range(3) for kw in range(3)]

    ts = taps(xa_ref) + taps(xb_ref)
    if fused:
        # Small-Cin path: build the im2col tile in VMEM and issue ONE dot with
        # K = 18*C to fill the 256-deep v6e/v7x MXU.
        k_mat = jnp.concatenate(ts, axis=0)                  # (18*C, P)
        z = jnp.dot(w_ref[...], k_mat, preferred_element_type=jnp.float32)
    else:
        # Wide-Cin path: 18 accumulated K=C dots (no large VMEM im2col copy).
        z = None
        for i, t in enumerate(ts):
            part = jnp.dot(w_ref[i], t, preferred_element_type=jnp.float32)
            z = part if z is None else z + part

    s_ref[...] += jnp.sum(z, axis=1, keepdims=True)
    ss_ref[...] += jnp.sum(z * z, axis=1, keepdims=True)
    z_ref[0] = z.astype(z_ref.dtype)


def _conv3_step_bytes(C, Cout, TH, W, fused):
    in_blk = 4 * 3 * C * (TH + 2) * W * 2            # 2 sides x double-buffered, bf16
    z_blk = 2 * Cout * TH * W * 2                    # double-buffered bf16 z block
    work = Cout * TH * W * 4 + (18 * C * TH * W * 2 if fused else 0)
    return in_blk + z_blk + work


def _pick_band(H, W, C, Cout, fused):
    """Largest row band (divisor of H) meeting the per-step VMEM budget.
    Bands other than the whole image require (band*W) % 128 == 0 so the streamed
    z block stays lane-dense and legal under the (8,128) rule."""
    if _conv3_step_bytes(C, Cout, H, W, fused) <= _CONV3_STEP_BYTES:
        return H
    best = H
    for th in range(H - 1, 0, -1):
        if H % th or (th * W) % 128:
            continue
        best = th
        if _conv3_step_bytes(C, Cout, th, W, fused) <= _CONV3_STEP_BYTES:
            return th
    return best


def _stage_conv3(x, TH):
    """Build the (3, N, nb, C, (TH+2)*W) staged tensor: 3 W-shifted, H-padded
    copies, split into row bands with a 1-row halo.  bf16 in HBM."""
    N, C, H, W = x.shape
    nb = H // TH
    xh = jnp.pad(x, ((0, 0), (0, 0), (1, 1), (0, 0)))                    # (N,C,H+2,W)
    left = jnp.pad(xh, ((0, 0), (0, 0), (0, 0), (1, 0)))[..., :W]        # kw=0: x[.., w-1]
    right = jnp.pad(xh, ((0, 0), (0, 0), (0, 0), (0, 1)))[..., 1:]       # kw=2: x[.., w+1]
    xs = jnp.stack([left, xh, right], axis=0)                            # (3,N,C,H+2,W)
    if nb == 1:
        return xs.reshape(3, N, 1, C, (H + 2) * W)
    rows = (jnp.arange(nb) * TH)[:, None] + jnp.arange(TH + 2)[None, :]  # (nb, TH+2)
    xs = xs[:, :, :, rows, :]                                            # (3,N,C,nb,TH+2,W)
    xs = jnp.transpose(xs, (0, 1, 3, 2, 4, 5))                           # (3,N,nb,C,TH+2,W)
    return xs.reshape(3, N, nb, C, (TH + 2) * W)


def conv3x3_bn_relu(xa, xb, p, *, band_rows=None, fuse_taps=None):
    """node conv: Conv2d(2C -> Cout, 3x3, pad=1) + BN + ReLU on concat([xa, xb], 1),
    without ever materializing the concatenation."""
    N, C, H, W = xa.shape
    assert xb.shape == xa.shape
    Cout = p["w"].shape[0]

    xa = xa.astype(jnp.bfloat16)
    xb = xb.astype(jnp.bfloat16)

    fused = (C <= 64) if fuse_taps is None else bool(fuse_taps)
    TH = band_rows if band_rows is not None else _pick_band(H, W, C, Cout, fused)
    assert H % TH == 0 and (TH == H or (TH * W) % 128 == 0)
    nb = H // TH

    xsa = _stage_conv3(xa, TH)
    xsb = _stage_conv3(xb, TH)

    w = p["w"].astype(jnp.bfloat16)                                      # (Cout, 2C, 3, 3)
    wa = jnp.transpose(w[:, :C], (2, 3, 0, 1)).reshape(9, Cout, C)
    wb = jnp.transpose(w[:, C:], (2, 3, 0, 1)).reshape(9, Cout, C)
    if fused:
        wk = jnp.concatenate(
            [jnp.transpose(wa, (1, 0, 2)).reshape(Cout, 9 * C),
             jnp.transpose(wb, (1, 0, 2)).reshape(Cout, 9 * C)], axis=1)  # (Cout, 18C)
    else:
        wk = jnp.concatenate([wa, wb], axis=0)                            # (18, Cout, C)

    kern = functools.partial(_conv3_pass1_kernel, width=W, band=TH, fused=fused)
    grid = (N, nb)
    blk_in = (3, 1, 1, C, (TH + 2) * W)
    w_idx = lambda n, b: (0,) * wk.ndim

    z, s, ss = pl.pallas_call(
        kern,
        out_shape=(jax.ShapeDtypeStruct((N, Cout, H * W), jnp.bfloat16),
                   jax.ShapeDtypeStruct((Cout, 1), jnp.float32),
                   jax.ShapeDtypeStruct((Cout, 1), jnp.float32)),
        grid=grid,
        in_specs=[pl.BlockSpec(blk_in, lambda n, b: (0, n, b, 0, 0)),
                  pl.BlockSpec(blk_in, lambda n, b: (0, n, b, 0, 0)),
                  pl.BlockSpec(wk.shape, w_idx)],
        out_specs=(pl.BlockSpec((1, Cout, TH * W), lambda n, b: (n, 0, b)),
                   pl.BlockSpec((Cout, 1), lambda n, b: (0, 0)),
                   pl.BlockSpec((Cout, 1), lambda n, b: (0, 0))),
        compiler_params=_cp(("arbitrary", "arbitrary")),
    )(xsa, xsb, wk)

    scale, shift = _bn_fold(s, ss, N * H * W, p["gamma"], p["beta"])
    y = _bn_relu_apply(z, scale, shift, TH * W)
    return y.reshape(N, Cout, H, W)


# ---------------------------------------------------------------------------
# Depthwise bilinear ConvTranspose2d upsampling
# ---------------------------------------------------------------------------

def _up_kernel(x_ref, uwt_ref, uh_ref, o_ref):
    bp, H, W = x_ref.shape
    Wo = uwt_ref.shape[1]
    dt = x_ref.dtype
    # (1) column upsample: one flattened (bp*H, W) @ (W, Wo) GEMM.
    t = jnp.dot(x_ref[...].reshape(bp * H, W), uwt_ref[...].astype(dt),
                preferred_element_type=jnp.float32)
    t = t.reshape(bp, H, Wo).astype(dt)
    # (2) row upsample batched over the plane axis.
    # TODO(synk): could be flattened to a single (Ho,H)@(H,bp*Wo) GEMM with two
    # minor transposes; kept batched for lowering robustness (small absolute cost).
    uh = jnp.broadcast_to(uh_ref[...].astype(dt)[None], (bp,) + uh_ref.shape)
    o_ref[...] = jnp.einsum('boh,bhw->bow', uh, t,
                            preferred_element_type=jnp.float32).astype(o_ref.dtype)


def _make_up_matrix(n, f):
    """Exact 1-D operator of ConvTranspose2d(k=2f, stride=f, pad=f//2) with
    fill_up_weights bilinear weights.  Returns (n*f, n)."""
    K = 2 * f
    fh = math.ceil(K / 2)                       # == f
    c = (2 * fh - 1 - fh % 2) / (2.0 * fh)
    w1d = np.array([1 - abs(i / fh - c) for i in range(K)], dtype=np.float32)
    p = f // 2
    no = (n - 1) * f - 2 * p + K
    U = np.zeros((no, n), dtype=np.float32)
    for o in range(no):
        for i in range(n):
            k = o + p - i * f
            if 0 <= k < K:
                U[o, i] += w1d[k]
    return jnp.asarray(U)


def bilinear_upsample(x, f):
    N, C, H, W = x.shape
    UH = _make_up_matrix(H, f)                       # (Ho, H)
    UWt = _make_up_matrix(W, f).T                    # (W, Wo), pre-transposed on host
    Ho, Wo = UH.shape[0], UWt.shape[1]
    NC = N * C
    cap = max(1, _UP_BLOCK_BYTES // ((H * W + Ho * Wo) * 4))
    bp = _largest_divisor(NC, cap)
    xp = x.reshape(NC, H, W)

    out = pl.pallas_call(
        _up_kernel,
        out_shape=jax.ShapeDtypeStruct((NC, Ho, Wo), x.dtype),
        grid=(NC // bp,),
        in_specs=[pl.BlockSpec((bp, H, W), lambda b: (b, 0, 0)),
                  pl.BlockSpec((W, Wo), lambda b: (0, 0)),
                  pl.BlockSpec((Ho, H), lambda b: (0, 0))],
        out_specs=pl.BlockSpec((bp, Ho, Wo), lambda b: (b, 0, 0)),
        compiler_params=_cp(("parallel",)),
    )(xp, UWt, UH)
    return out.reshape(N, C, Ho, Wo)


# ---------------------------------------------------------------------------
# IDAUp / DLAUp (parameter init + forward, mirroring the PyTorch code)
# ---------------------------------------------------------------------------

def init_ida(key, node_kernel, out_dim, channels, up_factors):
    assert node_kernel == 3
    params = {"out_dim": out_dim, "channels": list(channels),
              "up_factors": [int(f) for f in up_factors], "proj": [], "node": []}
    for c in channels:
        if c == out_dim:
            params["proj"].append(None)
        else:
            key, k1 = jax.random.split(key)
            params["proj"].append({
                "w": 0.02 * jax.random.normal(k1, (out_dim, c), jnp.float32),
                "gamma": jnp.ones((out_dim, 1), jnp.float32),
                "beta": jnp.zeros((out_dim, 1), jnp.float32),
            })
    for _ in range(1, len(channels)):
        key, k1 = jax.random.split(key)
        params["node"].append({
            "w": 0.02 * jax.random.normal(k1, (out_dim, out_dim * 2, 3, 3), jnp.float32),
            "gamma": jnp.ones((out_dim, 1), jnp.float32),
            "beta": jnp.zeros((out_dim, 1), jnp.float32),
        })
    return params, key


def ida_forward(params, layers):
    assert len(params["channels"]) == len(layers)
    layers = [l.astype(jnp.bfloat16) for l in layers]       # bf16 staging end-to-end
    for i, l in enumerate(layers):
        pj = params["proj"][i]
        if pj is not None:
            l = conv1x1_bn_relu(l, pj)
        f = params["up_factors"][i]
        if f != 1:
            l = bilinear_upsample(l, f)
        layers[i] = l
    x = layers[0]
    y = []
    for i in range(1, len(layers)):
        x = conv3x3_bn_relu(x, layers[i], params["node"][i - 1])
        y.append(x)
    return x, y


def init_dla_up(key, channels, scales):
    ch = list(channels)
    in_channels = list(channels)      # mirrors the aliasing semantics of the torch code
    scales = np.array(scales, dtype=int)
    idas = []
    for i in range(len(ch) - 1):
        j = -i - 2
        p, key = init_ida(key, 3, ch[j], in_channels[j:], list(scales[j:] // scales[j]))
        idas.append(p)
        scales[j + 1:] = scales[j]
        in_channels[j + 1:] = [ch[j] for _ in ch[j + 1:]]
    return idas, key


def dla_up_forward(idas, layers):
    layers = list(layers)
    assert len(layers) > 1
    ms_feat = [layers[-1]]
    for i in range(len(layers) - 1):
        x, y = ida_forward(idas[i], layers[-i - 2:])
        layers[-i - 1:] = y
        ms_feat.append(x)
    return ms_feat


# ---------------------------------------------------------------------------
# DLAUpEncoder
# ---------------------------------------------------------------------------

# TODO(synk): dla.dla34 backbone source is not provided in the module; replaced
# with a deterministic average-pool + channel-tile pyramid producing feature
# maps of the shapes dla34 would emit (channels=planes[i], stride=2**i).
def base_standin(x, planes):
    N, C, H, W = x.shape
    feats = []
    for lvl, p in enumerate(planes):
        s = 2 ** lvl
        pooled = jax.lax.reduce_window(
            x, 0.0, jax.lax.add, (1, 1, s, s), (1, 1, s, s), "VALID") / float(s * s)
        reps = -(-p // C)
        feat = jnp.tile(pooled, (1, reps, 1, 1))[:, :p]
        shift = jnp.arange(p, dtype=jnp.float32).reshape(1, p, 1, 1) * 0.01
        feats.append(feat + shift)
    return feats


class DLAUpEncoderPallas:
    def __init__(self, planes, key):
        self.planes = list(planes)
        self.first_level = 1
        up_channels = self.planes[self.first_level:]
        scales = [2 ** i for i in range(len(up_channels))]
        self.idas, _ = init_dla_up(key, up_channels, scales)
        self._fwd = jax.jit(self._forward)

    def _forward(self, x):
        feats = base_standin(x, self.planes)
        y = dla_up_forward(self.idas, feats[self.first_level:])
        return [o.astype(jnp.float32) for o in y[::-1]]

    def __call__(self, x):
        return self._fwd(x)


# ---------------------------------------------------------------------------
# Self-checks against pure-JAX references (bf16-input GEMM semantics), covering
# global BN stats, the padded / exact-divisor pixel-tile paths, both MXU tap
# forms, the row-band (halo) path and the upsample operator.
# ---------------------------------------------------------------------------

def _ref_bn_relu(z, gamma, beta, axes):
    mean = jnp.mean(z, axis=axes, keepdims=True)
    var = jnp.mean(jnp.square(z - mean), axis=axes, keepdims=True)
    zn = (z - mean) * jax.lax.rsqrt(var + 1e-5)
    g = gamma.reshape((1, -1) + (1,) * (z.ndim - 2))
    b = beta.reshape((1, -1) + (1,) * (z.ndim - 2))
    return jnp.maximum(zn * g + b, 0.0)


def _selftest(key):
    ks = jax.random.split(key, 8)

    def ref_1x1(x, p):
        z = jnp.einsum('oc,nchw->nohw', p["w"].astype(jnp.bfloat16),
                       x.astype(jnp.bfloat16), preferred_element_type=jnp.float32)
        return _ref_bn_relu(z, p["gamma"], p["beta"], (0, 2, 3))

    # 1x1: padded multi-tile path (HW=576 > cap=256 -> pad to 768, 3 tiles).
    x = jax.random.normal(ks[0], (2, 16, 24, 24), jnp.float32)
    p = {"w": 0.02 * jax.random.normal(ks[1], (8, 16), jnp.float32),
         "gamma": jnp.ones((8, 1), jnp.float32), "beta": jnp.zeros((8, 1), jnp.float32)}
    got = conv1x1_bn_relu(x, p, tile_cap=256)
    assert float(jnp.max(jnp.abs(got - ref_1x1(x, p)))) < 5e-2

    # 1x1: exact-divisor multi-tile path (HW=1024, tile=256, no pad/crop).
    x = jax.random.normal(ks[2], (1, 8, 32, 32), jnp.float32)
    p = {"w": 0.02 * jax.random.normal(ks[3], (16, 8), jnp.float32),
         "gamma": jnp.ones((16, 1), jnp.float32), "beta": jnp.zeros((16, 1), jnp.float32)}
    got = conv1x1_bn_relu(x, p, tile_cap=256)
    assert float(jnp.max(jnp.abs(got - ref_1x1(x, p)))) < 5e-2

    def ref_3x3(xa, xb, p):
        z = jax.lax.conv_general_dilated(
            jnp.concatenate([xa, xb], 1).astype(jnp.bfloat16),
            p["w"].astype(jnp.bfloat16), (1, 1), ((1, 1), (1, 1)),
            dimension_numbers=('NCHW', 'OIHW', 'NCHW'),
            preferred_element_type=jnp.float32)
        return _ref_bn_relu(z, p["gamma"], p["beta"], (0, 2, 3))

    # 3x3 node conv: fused-K and 18-tap MXU paths, two separate operands.
    xa = jax.random.normal(ks[4], (2, 16, 12, 12), jnp.float32)
    xb = jax.random.normal(ks[5], (2, 16, 12, 12), jnp.float32)
    p = {"w": 0.02 * jax.random.normal(ks[6], (8, 32, 3, 3), jnp.float32),
         "gamma": jnp.ones((8, 1), jnp.float32), "beta": jnp.zeros((8, 1), jnp.float32)}
    want = ref_3x3(xa, xb, p)
    for fuse in (True, False):
        got = conv3x3_bn_relu(xa, xb, p, fuse_taps=fuse)
        assert float(jnp.max(jnp.abs(got - want))) < 5e-2

    # 3x3 node conv: row-band (halo) path, 2 bands of 8 rows, TH*W = 128.
    xa2 = jax.random.normal(ks[7], (1, 8, 16, 16), jnp.float32)
    xb2 = xa2[:, ::-1] * 0.5
    p2 = {"w": 0.02 * jax.random.normal(ks[6], (8, 16, 3, 3), jnp.float32),
          "gamma": jnp.ones((8, 1), jnp.float32), "beta": jnp.zeros((8, 1), jnp.float32)}
    got = conv3x3_bn_relu(xa2, xb2, p2, band_rows=8)
    assert float(jnp.max(jnp.abs(got - ref_3x3(xa2, xb2, p2)))) < 5e-2

    # Depthwise bilinear ConvTranspose2d upsampling (f=2), f32 path.
    x = jax.random.normal(ks[0], (2, 8, 6, 6), jnp.float32)
    got = bilinear_upsample(x, 2)
    UH = _make_up_matrix(6, 2)
    UW = _make_up_matrix(6, 2)
    want = jnp.einsum('oh,nchw,pw->ncop', UH, x, UW)
    assert float(jnp.max(jnp.abs(got - want))) < 1e-4


# ---------------------------------------------------------------------------
if __name__ == "__main__":
    key = jax.random.PRNGKey(0)
    key, kx, kp, kt = jax.random.split(key, 4)

    planes = [4, 8, 16, 32]                 # small dla34-like channel plan
    x = jax.random.normal(kx, (2, 3, 32, 32), jnp.float32)

    encoder = DLAUpEncoderPallas(planes, kp)
    outs = encoder(x)
    for o in outs:
        jax.block_until_ready(o)

    # expected shapes: [(2,8,16,16), (2,16,8,8), (2,32,4,4)]
    assert outs[0].shape == (2, 8, 16, 16)
    assert outs[1].shape == (2, 16, 8, 8)
    assert outs[2].shape == (2, 32, 4, 4)
    assert all(bool(jnp.all(jnp.isfinite(o))) for o in outs)

    _selftest(kt)

    print("KERNEL_OK")
</pallas_src>

<mosaic_0001>
module attributes {stable_mosaic.version = 11 : i64} {
  func.func @_mm_stats_kernel(%arg0: i32, %arg1: i32, %arg2: memref<1x16x64xbf16, #tpu.memory_space<vmem>>, %arg3: memref<8x16xbf16, #tpu.memory_space<vmem>>, %arg4: memref<1x8x64xbf16, #tpu.memory_space<vmem>>, %arg5: memref<8x1xf32, #tpu.memory_space<vmem>>, %arg6: memref<8x1xf32, #tpu.memory_space<vmem>>) attributes {dimension_semantics = [#tpu.dimension_semantics<arbitrary>, #tpu.dimension_semantics<arbitrary>], iteration_bounds = array<i64: 2, 1>, scalar_prefetch = 0 : i64, scratch_operands = 0 : i64, tpu.core_type = #tpu.core_type<tc>, window_params = [{transform_indices = @transform_0, window_bounds = array<i64: 1, 16, 64>}, {pipeline_mode = #tpu.pipeline_mode<synchronous>, transform_indices = @transform_1, window_bounds = array<i64: 8, 16>}, {transform_indices = @transform_2, window_bounds = array<i64: 1, 8, 64>}, {pipeline_mode = #tpu.pipeline_mode<synchronous>, transform_indices = @transform_3, window_bounds = array<i64: 8, 1>}, {pipeline_mode = #tpu.pipeline_mode<synchronous>, transform_indices = @transform_4, window_bounds = array<i64: 8, 1>}]} {
    %c0_i32 = arith.constant 0 : i32
    %0 = arith.cmpi eq, %arg0, %c0_i32 : i32
    %c0_i32_0 = arith.constant 0 : i32
    %1 = arith.cmpi eq, %arg1, %c0_i32_0 : i32
    %2 = arith.andi %0, %1 : i1
    %3 = arith.extui %2 : i1 to i32
    %c0_i32_1 = arith.constant 0 : i32
    %4 = arith.cmpi ne, %3, %c0_i32_1 : i32
    scf.if %4 {
      %cst_19 = arith.constant 0.000000e+00 : f32
      %24 = vector.broadcast %cst_19 : f32 to vector<8x1xf32>
      %c0_20 = arith.constant 0 : index
      %c0_21 = arith.constant 0 : index
      %25 = vector.load %arg5[%c0_20, %c0_21] : memref<8x1xf32, #tpu.memory_space<vmem>>, vector<8x1xf32>
      tpu.vector_store %arg5[%c0_20, %c0_21], %24 {strides = array<i32>} : memref<8x1xf32, #tpu.memory_space<vmem>>, vector<8x1xf32>,
      %cst_22 = arith.constant 0.000000e+00 : f32
      %26 = vector.broadcast %cst_22 : f32 to vector<8x1xf32>
      %c0_23 = arith.constant 0 : index
      %c0_24 = arith.constant 0 : index
      %27 = vector.load %arg6[%c0_23, %c0_24] : memref<8x1xf32, #tpu.memory_space<vmem>>, vector<8x1xf32>
      tpu.vector_store %arg6[%c0_23, %c0_24], %26 {strides = array<i32>} : memref<8x1xf32, #tpu.memory_space<vmem>>, vector<8x1xf32>,
    } else {
    }
    %c0 = arith.constant 0 : index
    %c0_2 = arith.constant 0 : index
    %5 = vector.load %arg3[%c0, %c0_2] : memref<8x16xbf16, #tpu.memory_space<vmem>>, vector<8x16xbf16>
    %c0_3 = arith.constant 0 : index
    %c0_4 = arith.constant 0 : index
    %c0_5 = arith.constant 0 : index
    %6 = vector.load %arg2[%c0_3, %c0_4, %c0_5] : memref<1x16x64xbf16, #tpu.memory_space<vmem>>, vector<1x16x64xbf16>
    %7 = vector.shape_cast %6 : vector<1x16x64xbf16> to vector<16x64xbf16>
    %cst = arith.constant dense<0.000000e+00> : vector<8x64xf32>
    %8 = tpu.matmul %5, %7, %cst {dimension_numbers = #tpu.dot_dimension_numbers<[1], [0], [0], [1], [0, 0, 1, 1], [], []>} : vector<8x16xbf16>, vector<16x64xbf16>, vector<8x64xf32> -> vector<8x64xf32>
    %c0_6 = arith.constant 0 : index
    %c0_7 = arith.constant 0 : index
    %9 = vector.load %arg5[%c0_6, %c0_7] : memref<8x1xf32, #tpu.memory_space<vmem>>, vector<8x1xf32>
    %cst_8 = arith.constant dense<0.000000e+00> : vector<8xf32>
    %10 = vector.multi_reduction <add>, %8, %cst_8 [1] : vector<8x64xf32> to vector<8xf32>
    %11 = vector.shape_cast %10 : vector<8xf32> to vector<8x1xf32>
    %12 = arith.addf %9, %11 : vector<8x1xf32>
    %c0_9 = arith.constant 0 : index
    %c0_10 = arith.constant 0 : index
    %13 = vector.load %arg5[%c0_9, %c0_10] : memref<8x1xf32, #tpu.memory_space<vmem>>, vector<8x1xf32>
    tpu.vector_store %arg5[%c0_9, %c0_10], %12 {strides = array<i32>} : memref<8x1xf32, #tpu.memory_space<vmem>>, vector<8x1xf32>,
    %c0_11 = arith.constant 0 : index
    %c0_12 = arith.constant 0 : index
    %14 = vector.load %arg6[%c0_11, %c0_12] : memref<8x1xf32, #tpu.memory_space<vmem>>, vector<8x1xf32>
    %15 = arith.mulf %8, %8 : vector<8x64xf32>
    %cst_13 = arith.constant dense<0.000000e+00> : vector<8xf32>
    %16 = vector.multi_reduction <add>, %15, %cst_13 [1] : vector<8x64xf32> to vector<8xf32>
    %17 = vector.shape_cast %16 : vector<8xf32> to vector<8x1xf32>
    %18 = arith.addf %14, %17 : vector<8x1xf32>
    %c0_14 = arith.constant 0 : index
    %c0_15 = arith.constant 0 : index
    %19 = vector.load %arg6[%c0_14, %c0_15] : memref<8x1xf32, #tpu.memory_space<vmem>>, vector<8x1xf32>
    tpu.vector_store %arg6[%c0_14, %c0_15], %18 {strides = array<i32>} : memref<8x1xf32, #tpu.memory_space<vmem>>, vector<8x1xf32>,
    %20 = arith.truncf %8 : vector<8x64xf32> to vector<8x64xbf16>
    %c0_16 = arith.constant 0 : index
    %c0_17 = arith.constant 0 : index
    %c0_18 = arith.constant 0 : index
    %21 = vector.load %arg4[%c0_16, %c0_17, %c0_18] : memref<1x8x64xbf16, #tpu.memory_space<vmem>>, vector<1x8x64xbf16>
    %22 = vector.shape_cast %21 : vector<1x8x64xbf16> to vector<8x64xbf16>
    %23 = vector.shape_cast %20 : vector<8x64xbf16> to vector<1x8x64xbf16>
    tpu.vector_store %arg4[%c0_16, %c0_17, %c0_18], %23 {strides = array<i32>} : memref<1x8x64xbf16, #tpu.memory_space<vmem>>, vector<1x8x64xbf16>,
    return
  }
  func.func @transform_0(%arg0: i32, %arg1: i32) -> (i32, i32, i32) {
    %c0_i32 = arith.constant 0 : i32
    %c0_i32_0 = arith.constant 0 : i32
    return %arg0, %c0_i32, %arg1 : i32, i32, i32
  }
  func.func @transform_1(%arg0: i32, %arg1: i32) -> (i32, i32) {
    %c0_i32 = arith.constant 0 : i32
    %c0_i32_0 = arith.constant 0 : i32
    %c0_i32_1 = arith.constant 0 : i32
    return %c0_i32, %c0_i32_0 : i32, i32
  }
  func.func @transform_2(%arg0: i32, %arg1: i32) -> (i32, i32, i32) {
    %c0_i32 = arith.constant 0 : i32
    %c0_i32_0 = arith.constant 0 : i32
    return %arg0, %c0_i32, %arg1 : i32, i32, i32
  }
  func.func @transform_3(%arg0: i32, %arg1: i32) -> (i32, i32) {
    %c0_i32 = arith.constant 0 : i32
    %c0_i32_0 = arith.constant 0 : i32
    %c0_i32_1 = arith.constant 0 : i32
    return %c0_i32, %c0_i32_0 : i32, i32
  }
  func.func @transform_4(%arg0: i32, %arg1: i32) -> (i32, i32) {
    %c0_i32 = arith.constant 0 : i32
    %c0_i32_0 = arith.constant 0 : i32
    %c0_i32_1 = arith.constant 0 : i32
    return %c0_i32, %c0_i32_0 : i32, i32
  }
}

module attributes {stable_mosaic.version = 11 : i64} {
  func.func @_bn_relu_kernel(%arg0: i32, %arg1: i32, %arg2: memref<1x8x64xbf16, #tpu.memory_space<vmem>>, %arg3: memref<8x1xf32, #tpu.memory_space<vmem>>, %arg4: memref<8x1xf32, #tpu.memory_space<vmem>>, %arg5: memref<1x8x64xbf16, #tpu.memory_space<vmem>>) attributes {dimension_semantics = [#tpu.dimension_semantics<parallel>, #tpu.dimension_semantics<parallel>], iteration_bounds = array<i64: 2, 1>, scalar_prefetch = 0 : i64, scratch_operands = 0 : i64, tpu.core_type = #tpu.core_type<tc>, window_params = [{transform_indices = @transform_0, window_bounds = array<i64: 1, 8, 64>}, {pipeline_mode = #tpu.pipeline_mode<synchronous>, transform_indices = @transform_1, window_bounds = array<i64: 8, 1>}, {pipeline_mode = #tpu.pipeline_mode<synchronous>, transform_indices = @transform_2, window_bounds = array<i64: 8, 1>}, {transform_indices = @transform_3, window_bounds = array<i64: 1, 8, 64>}]} {
    %c0 = arith.constant 0 : index
    %c0_0 = arith.constant 0 : index
    %c0_1 = arith.constant 0 : index
    %0 = vector.load %arg2[%c0, %c0_0, %c0_1] : memref<1x8x64xbf16, #tpu.memory_space<vmem>>, vector<1x8x64xbf16>
    %1 = arith.extf %0 : vector<1x8x64xbf16> to vector<1x8x64xf32>
    %c0_2 = arith.constant 0 : index
    %c0_3 = arith.constant 0 : index
    %2 = vector.load %arg3[%c0_2, %c0_3] : memref<8x1xf32, #tpu.memory_space<vmem>>, vector<8x1xf32>
    %3 = vector.shape_cast %2 : vector<8x1xf32> to vector<1x8x1xf32>
    %4 = vector.broadcast %3 : vector<1x8x1xf32> to vector<1x8x64xf32>
    %5 = arith.mulf %1, %4 : vector<1x8x64xf32>
    %c0_4 = arith.constant 0 : index
    %c0_5 = arith.constant 0 : index
    %6 = vector.load %arg4[%c0_4, %c0_5] : memref<8x1xf32, #tpu.memory_space<vmem>>, vector<8x1xf32>
    %7 = vector.shape_cast %6 : vector<8x1xf32> to vector<1x8x1xf32>
    %8 = vector.broadcast %7 : vector<1x8x1xf32> to vector<1x8x64xf32>
    %9 = arith.addf %5, %8 : vector<1x8x64xf32>
    %cst = arith.constant 0.000000e+00 : f32
    %10 = vector.broadcast %cst : f32 to vector<1x8x64xf32>
    %11 = arith.maximumf %9, %10 : vector<1x8x64xf32>
    %12 = arith.truncf %11 : vector<1x8x64xf32> to vector<1x8x64xbf16>
    %c0_6 = arith.constant 0 : index
    %c0_7 = arith.constant 0 : index
    %c0_8 = arith.constant 0 : index
    %13 = vector.load %arg5[%c0_6, %c0_7, %c0_8] : memref<1x8x64xbf16, #tpu.memory_space<vmem>>, vector<1x8x64xbf16>
    tpu.vector_store %arg5[%c0_6, %c0_7, %c0_8], %12 {strides = array<i32>} : memref<1x8x64xbf16, #tpu.memory_space<vmem>>, vector<1x8x64xbf16>,
    return
  }
  func.func @transform_0(%arg0: i32, %arg1: i32) -> (i32, i32, i32) {
    %c0_i32 = arith.constant 0 : i32
    %c0_i32_0 = arith.constant 0 : i32
    return %arg0, %c0_i32, %arg1 : i32, i32, i32
  }
  func.func @transform_1(%arg0: i32, %arg1: i32) -> (i32, i32) {
    %c0_i32 = arith.constant 0 : i32
    %c0_i32_0 = arith.constant 0 : i32
    %c0_i32_1 = arith.constant 0 : i32
    return %c0_i32, %c0_i32_0 : i32, i32
  }
  func.func @transform_2(%arg0: i32, %arg1: i32) -> (i32, i32) {
    %c0_i32 = arith.constant 0 : i32
    %c0_i32_0 = arith.constant 0 : i32
    %c0_i32_1 = arith.constant 0 : i32
    return %c0_i32, %c0_i32_0 : i32, i32
  }
  func.func @transform_3(%arg0: i32, %arg1: i32) -> (i32, i32, i32) {
    %c0_i32 = arith.constant 0 : i32
    %c0_i32_0 = arith.constant 0 : i32
    return %arg0, %c0_i32, %arg1 : i32, i32, i32
  }
}

module attributes {stable_mosaic.version = 11 : i64} {
  func.func @_up_kernel(%arg0: i32, %arg1: memref<16x8x8xbf16, #tpu.memory_space<vmem>>, %arg2: memref<8x16xf32, #tpu.memory_space<vmem>>, %arg3: memref<16x8xf32, #tpu.memory_space<vmem>>, %arg4: memref<16x16x16xbf16, #tpu.memory_space<vmem>>) attributes {dimension_semantics = [#tpu.dimension_semantics<parallel>], iteration_bounds = array<i64: 1>, scalar_prefetch = 0 : i64, scratch_operands = 0 : i64, tpu.core_type = #tpu.core_type<tc>, window_params = [{transform_indices = @transform_0, window_bounds = array<i64: 16, 8, 8>}, {pipeline_mode = #tpu.pipeline_mode<synchronous>, transform_indices = @transform_1, window_bounds = array<i64: 8, 16>}, {pipeline_mode = #tpu.pipeline_mode<synchronous>, transform_indices = @transform_2, window_bounds = array<i64: 16, 8>}, {transform_indices = @transform_3, window_bounds = array<i64: 16, 16, 16>}]} {
    %c0 = arith.constant 0 : index
    %c0_0 = arith.constant 0 : index
    %c0_1 = arith.constant 0 : index
    %0 = vector.load %arg1[%c0, %c0_0, %c0_1] : memref<16x8x8xbf16, #tpu.memory_space<vmem>>, vector<16x8x8xbf16>
    %1 = vector.shape_cast %0 : vector<16x8x8xbf16> to vector<128x8xbf16>
    %c0_2 = arith.constant 0 : index
    %c0_3 = arith.constant 0 : index
    %2 = vector.load %arg2[%c0_2, %c0_3] : memref<8x16xf32, #tpu.memory_space<vmem>>, vector<8x16xf32>
    %3 = arith.truncf %2 : vector<8x16xf32> to vector<8x16xbf16>
    %cst = arith.constant dense<0.000000e+00> : vector<128x16xf32>
    %4 = tpu.matmul %1, %3, %cst {dimension_numbers = #tpu.dot_dimension_numbers<[1], [0], [0], [1], [0, 0, 1, 1], [], []>} : vector<128x8xbf16>, vector<8x16xbf16>, vector<128x16xf32> -> vector<128x16xf32>
    %5 = vector.shape_cast %4 : vector<128x16xf32> to vector<16x8x16xf32>
    %6 = arith.truncf %5 : vector<16x8x16xf32> to vector<16x8x16xbf16>
    %c0_4 = arith.constant 0 : index
    %c0_5 = arith.constant 0 : index
    %7 = vector.load %arg3[%c0_4, %c0_5] : memref<16x8xf32, #tpu.memory_space<vmem>>, vector<16x8xf32>
    %8 = arith.truncf %7 : vector<16x8xf32> to vector<16x8xbf16>
    %9 = vector.shape_cast %8 : vector<16x8xbf16> to vector<1x16x8xbf16>
    %10 = vector.shape_cast %9 : vector<1x16x8xbf16> to vector<1x16x8xbf16>
    %11 = vector.broadcast %10 : vector<1x16x8xbf16> to vector<16x16x8xbf16>
    "tpu.trace_start"() <{level = 10 : i32, message = "boh,bhw->bow"}> : () -> ()
    %cst_6 = arith.constant dense<0.000000e+00> : vector<16x16x16xf32>
    %12 = tpu.matmul %11, %6, %cst_6 {dimension_numbers = #tpu.dot_dimension_numbers<[2], [1], [1], [2], [0, 0, 0, 1, 1, 2], [0], [0]>} : vector<16x16x8xbf16>, vector<16x8x16xbf16>, vector<16x16x16xf32> -> vector<16x16x16xf32>
    "tpu.trace_stop"() : () -> ()
    %13 = arith.truncf %12 : vector<16x16x16xf32> to vector<16x16x16xbf16>
    %c0_7 = arith.constant 0 : index
    %c0_8 = arith.constant 0 : index
    %c0_9 = arith.constant 0 : index
    %14 = vector.load %arg4[%c0_7, %c0_8, %c0_9] : memref<16x16x16xbf16, #tpu.memory_space<vmem>>, vector<16x16x16xbf16>
    tpu.vector_store %arg4[%c0_7, %c0_8, %c0_9], %13 {strides = array<i32>} : memref<16x16x16xbf16, #tpu.memory_space<vmem>>, vector<16x16x16xbf16>,
    return
  }
  func.func @transform_0(%arg0: i32) -> (i32, i32, i32) {
    %c0_i32 = arith.constant 0 : i32
    %c0_i32_0 = arith.constant 0 : i32
    %c0_i32_1 = arith.constant 0 : i32
    return %arg0, %c0_i32, %c0_i32_0 : i32, i32, i32
  }
  func.func @transform_1(%arg0: i32) -> (i32, i32) {
    %c0_i32 = arith.constant 0 : i32
    %c0_i32_0 = arith.constant 0 : i32
    %c0_i32_1 = arith.constant 0 : i32
    return %c0_i32, %c0_i32_0 : i32, i32
  }
  func.func @transform_2(%arg0: i32) -> (i32, i32) {
    %c0_i32 = arith.constant 0 : i32
    %c0_i32_0 = arith.constant 0 : i32
    %c0_i32_1 = arith.constant 0 : i32
    return %c0_i32, %c0_i32_0 : i32, i32
  }
  func.func @transform_3(%arg0: i32) -> (i32, i32, i32) {
    %c0_i32 = arith.constant 0 : i32
    %c0_i32_0 = arith.constant 0 : i32
    %c0_i32_1 = arith.constant 0 : i32
    return %arg0, %c0_i32, %c0_i32_0 : i32, i32, i32
  }
}

module attributes {stable_mosaic.version = 11 : i64} {
  func.func @_conv3_pass1_kernel(%arg0: i32, %arg1: i32, %arg2: memref<3x1x1x8x288xbf16, #tpu.memory_space<vmem>>, %arg3: memref<3x1x1x8x288xbf16, #tpu.memory_space<vmem>>, %arg4: memref<8x144xbf16, #tpu.memory_space<vmem>>, %arg5: memref<1x8x256xbf16, #tpu.memory_space<vmem>>, %arg6: memref<8x1xf32, #tpu.memory_space<vmem>>, %arg7: memref<8x1xf32, #tpu.memory_space<vmem>>) attributes {dimension_semantics = [#tpu.dimension_semantics<arbitrary>, #tpu.dimension_semantics<arbitrary>], iteration_bounds = array<i64: 2, 1>, scalar_prefetch = 0 : i64, scratch_operands = 0 : i64, tpu.core_type = #tpu.core_type<tc>, window_params = [{transform_indices = @transform_0, window_bounds = array<i64: 3, 1, 1, 8, 288>}, {transform_indices = @transform_1, window_bounds = array<i64: 3, 1, 1, 8, 288>}, {pipeline_mode = #tpu.pipeline_mode<synchronous>, transform_indices = @transform_2, window_bounds = array<i64: 8, 144>}, {transform_indices = @transform_3, window_bounds = array<i64: 1, 8, 256>}, {pipeline_mode = #tpu.pipeline_mode<synchronous>, transform_indices = @transform_4, window_bounds = array<i64: 8, 1>}, {pipeline_mode = #tpu.pipeline_mode<synchronous>, transform_indices = @transform_5, window_bounds = array<i64: 8, 1>}]} {
    %c0_i32 = arith.constant 0 : i32
    %0 = arith.cmpi eq, %arg0, %c0_i32 : i32
    %c0_i32_0 = arith.constant 0 : i32
    %1 = arith.cmpi eq, %arg1, %c0_i32_0 : i32
    %2 = arith.andi %0, %1 : i1
    %3 = arith.extui %2 : i1 to i32
    %c0_i32_1 = arith.constant 0 : i32
    %4 = arith.cmpi ne, %3, %c0_i32_1 : i32
    scf.if %4 {
      %cst_102 = arith.constant 0.000000e+00 : f32
      %61 = vector.broadcast %cst_102 : f32 to vector<8x1xf32>
      %c0_103 = arith.constant 0 : index
      %c0_104 = arith.constant 0 : index
      %62 = vector.load %arg6[%c0_103, %c0_104] : memref<8x1xf32, #tpu.memory_space<vmem>>, vector<8x1xf32>
      tpu.vector_store %arg6[%c0_103, %c0_104], %61 {strides = array<i32>} : memref<8x1xf32, #tpu.memory_space<vmem>>, vector<8x1xf32>,
      %cst_105 = arith.constant 0.000000e+00 : f32
      %63 = vector.broadcast %cst_105 : f32 to vector<8x1xf32>
      %c0_106 = arith.constant 0 : index
      %c0_107 = arith.constant 0 : index
      %64 = vector.load %arg7[%c0_106, %c0_107] : memref<8x1xf32, #tpu.memory_space<vmem>>, vector<8x1xf32>
      tpu.vector_store %arg7[%c0_106, %c0_107], %63 {strides = array<i32>} : memref<8x1xf32, #tpu.memory_space<vmem>>, vector<8x1xf32>,
    } else {
    }
    %c0 = arith.constant 0 : index
    %c0_2 = arith.constant 0 : index
    %c0_3 = arith.constant 0 : index
    %c0_4 = arith.constant 0 : index
    %c0_5 = arith.constant 0 : index
    %5 = vector.load %arg2[%c0, %c0_2, %c0_3, %c0_4, %c0_5] : memref<3x1x1x8x288xbf16, #tpu.memory_space<vmem>>, vector<1x1x1x8x256xbf16>
    %6 = vector.shape_cast %5 : vector<1x1x1x8x256xbf16> to vector<8x256xbf16>
    %c1 = arith.constant 1 : index
    %c0_6 = arith.constant 0 : index
    %c0_7 = arith.constant 0 : index
    %c0_8 = arith.constant 0 : index
    %c0_9 = arith.constant 0 : index
    %7 = vector.load %arg2[%c1, %c0_6, %c0_7, %c0_8, %c0_9] : memref<3x1x1x8x288xbf16, #tpu.memory_space<vmem>>, vector<1x1x1x8x256xbf16>
    %8 = vector.shape_cast %7 : vector<1x1x1x8x256xbf16> to vector<8x256xbf16>
    %c2 = arith.constant 2 : index
    %c0_10 = arith.constant 0 : index
    %c0_11 = arith.constant 0 : index
    %c0_12 = arith.constant 0 : index
    %c0_13 = arith.constant 0 : index
    %9 = vector.load %arg2[%c2, %c0_10, %c0_11, %c0_12, %c0_13] : memref<3x1x1x8x288xbf16, #tpu.memory_space<vmem>>, vector<1x1x1x8x256xbf16>
    %10 = vector.shape_cast %9 : vector<1x1x1x8x256xbf16> to vector<8x256xbf16>
    %c0_14 = arith.constant 0 : index
    %c0_15 = arith.constant 0 : index
    %c0_16 = arith.constant 0 : index
    %c0_17 = arith.constant 0 : index
    %c16 = arith.constant 16 : index
    %11 = vector.load %arg2[%c0_14, %c0_15, %c0_16, %c0_17, %c16] : memref<3x1x1x8x288xbf16, #tpu.memory_space<vmem>>, vector<1x1x1x8x256xbf16>
    %12 = vector.shape_cast %11 : vector<1x1x1x8x256xbf16> to vector<8x256xbf16>
    %c1_18 = arith.constant 1 : index
    %c0_19 = arith.constant 0 : index
    %c0_20 = arith.constant 0 : index
    %c0_21 = arith.constant 0 : index
    %c16_22 = arith.constant 16 : index
    %13 = vector.load %arg2[%c1_18, %c0_19, %c0_20, %c0_21, %c16_22] : memref<3x1x1x8x288xbf16, #tpu.memory_space<vmem>>, vector<1x1x1x8x256xbf16>
    %14 = vector.shape_cast %13 : vector<1x1x1x8x256xbf16> to vector<8x256xbf16>
    %c2_23 = arith.constant 2 : index
    %c0_24 = arith.constant 0 : index
    %c0_25 = arith.constant 0 : index
    %c0_26 = arith.constant 0 : index
    %c16_27 = arith.constant 16 : index
    %15 = vector.load %arg2[%c2_23, %c0_24, %c0_25, %c0_26, %c16_27] : memref<3x1x1x8x288xbf16, #tpu.memory_space<vmem>>, vector<1x1x1x8x256xbf16>
    %16 = vector.shape_cast %15 : vector<1x1x1x8x256xbf16> to vector<8x256xbf16>
    %c0_28 = arith.constant 0 : index
    %c0_29 = arith.constant 0 : index
    %c0_30 = arith.constant 0 : index
    %c0_31 = arith.constant 0 : index
    %c32 = arith.constant 32 : index
    %17 = vector.load %arg2[%c0_28, %c0_29, %c0_30, %c0_31, %c32] : memref<3x1x1x8x288xbf16, #tpu.memory_space<vmem>>, vector<1x1x1x8x256xbf16>
    %18 = vector.shape_cast %17 : vector<1x1x1x8x256xbf16> to vector<8x256xbf16>
    %c1_32 = arith.constant 1 : index
    %c0_33 = arith.constant 0 : index
    %c0_34 = arith.constant 0 : index
    %c0_35 = arith.constant 0 : index
    %c32_36 = arith.constant 32 : index
    %19 = vector.load %arg2[%c1_32, %c0_33, %c0_34, %c0_35, %c32_36] : memref<3x1x1x8x288xbf16, #tpu.memory_space<vmem>>, vector<1x1x1x8x256xbf16>
    %20 = vector.shape_cast %19 : vector<1x1x1x8x256xbf16> to vector<8x256xbf16>
    %c2_37 = arith.constant 2 : index
    %c0_38 = arith.constant 0 : index
    %c0_39 = arith.constant 0 : index
    %c0_40 = arith.constant 0 : index
    %c32_41 = arith.constant 32 : index
    %21 = vector.load %arg2[%c2_37, %c0_38, %c0_39, %c0_40, %c32_41] : memref<3x1x1x8x288xbf16, #tpu.memory_space<vmem>>, vector<1x1x1x8x256xbf16>
    %22 = vector.shape_cast %21 : vector<1x1x1x8x256xbf16> to vector<8x256xbf16>
    %c0_42 = arith.constant 0 : index
    %c0_43 = arith.constant 0 : index
    %c0_44 = arith.constant 0 : index
    %c0_45 = arith.constant 0 : index
    %c0_46 = arith.constant 0 : index
    %23 = vector.load %arg3[%c0_42, %c0_43, %c0_44, %c0_45, %c0_46] : memref<3x1x1x8x288xbf16, #tpu.memory_space<vmem>>, vector<1x1x1x8x256xbf16>
    %24 = vector.shape_cast %23 : vector<1x1x1x8x256xbf16> to vector<8x256xbf16>
    %c1_47 = arith.constant 1 : index
    %c0_48 = arith.constant 0 : index
    %c0_49 = arith.constant 0 : index
    %c0_50 = arith.constant 0 : index
    %c0_51 = arith.constant 0 : index
    %25 = vector.load %arg3[%c1_47, %c0_48, %c0_49, %c0_50, %c0_51] : memref<3x1x1x8x288xbf16, #tpu.memory_space<vmem>>, vector<1x1x1x8x256xbf16>
    %26 = vector.shape_cast %25 : vector<1x1x1x8x256xbf16> to vector<8x256xbf16>
    %c2_52 = arith.constant 2 : index
    %c0_53 = arith.constant 0 : index
    %c0_54 = arith.constant 0 : index
    %c0_55 = arith.constant 0 : index
    %c0_56 = arith.constant 0 : index
    %27 = vector.load %arg3[%c2_52, %c0_53, %c0_54, %c0_55, %c0_56] : memref<3x1x1x8x288xbf16, #tpu.memory_space<vmem>>, vector<1x1x1x8x256xbf16>
    %28 = vector.shape_cast %27 : vector<1x1x1x8x256xbf16> to vector<8x256xbf16>
    %c0_57 = arith.constant 0 : index
    %c0_58 = arith.constant 0 : index
    %c0_59 = arith.constant 0 : index
    %c0_60 = arith.constant 0 : index
    %c16_61 = arith.constant 16 : index
    %29 = vector.load %arg3[%c0_57, %c0_58, %c0_59, %c0_60, %c16_61] : memref<3x1x1x8x288xbf16, #tpu.memory_space<vmem>>, vector<1x1x1x8x256xbf16>
    %30 = vector.shape_cast %29 : vector<1x1x1x8x256xbf16> to vector<8x256xbf16>
    %c1_62 = arith.constant 1 : index
    %c0_63 = arith.constant 0 : index
    %c0_64 = arith.constant 0 : index
    %c0_65 = arith.constant 0 : index
    %c16_66 = arith.constant 16 : index
    %31 = vector.load %arg3[%c1_62, %c0_63, %c0_64, %c0_65, %c16_66] : memref<3x1x1x8x288xbf16, #tpu.memory_space<vmem>>, vector<1x1x1x8x256xbf16>
    %32 = vector.shape_cast %31 : vector<1x1x1x8x256xbf16> to vector<8x256xbf16>
    %c2_67 = arith.constant 2 : index
    %c0_68 = arith.constant 0 : index
    %c0_69 = arith.constant 0 : index
    %c0_70 = arith.constant 0 : index
    %c16_71 = arith.constant 16 : index
    %33 = vector.load %arg3[%c2_67, %c0_68, %c0_69, %c0_70, %c16_71] : memref<3x1x1x8x288xbf16, #tpu.memory_space<vmem>>, vector<1x1x1x8x256xbf16>
    %34 = vector.shape_cast %33 : vector<1x1x1x8x256xbf16> to vector<8x256xbf16>
    %c0_72 = arith.constant 0 : index
    %c0_73 = arith.constant 0 : index
    %c0_74 = arith.constant 0 : index
    %c0_75 = arith.constant 0 : index
    %c32_76 = arith.constant 32 : index
    %35 = vector.load %arg3[%c0_72, %c0_73, %c0_74, %c0_75, %c32_76] : memref<3x1x1x8x288xbf16, #tpu.memory_space<vmem>>, vector<1x1x1x8x256xbf16>
    %36 = vector.shape_cast %35 : vector<1x1x1x8x256xbf16> to vector<8x256xbf16>
    %c1_77 = arith.constant 1 : index
    %c0_78 = arith.constant 0 : index
    %c0_79 = arith.constant 0 : index
    %c0_80 = arith.constant 0 : index
    %c32_81 = arith.constant 32 : index
    %37 = vector.load %arg3[%c1_77, %c0_78, %c0_79, %c0_80, %c32_81] : memref<3x1x1x8x288xbf16, #tpu.memory_space<vmem>>, vector<1x1x1x8x256xbf16>
    %38 = vector.shape_cast %37 : vector<1x1x1x8x256xbf16> to vector<8x256xbf16>
    %c2_82 = arith.constant 2 : index
    %c0_83 = arith.constant 0 : index
    %c0_84 = arith.constant 0 : index
    %c0_85 = arith.constant 0 : index
    %c32_86 = arith.constant 32 : index
    %39 = vector.load %arg3[%c2_82, %c0_83, %c0_84, %c0_85, %c32_86] : memref<3x1x1x8x288xbf16, #tpu.memory_space<vmem>>, vector<1x1x1x8x256xbf16>
    %40 = vector.shape_cast %39 : vector<1x1x1x8x256xbf16> to vector<8x256xbf16>
    %41 = tpu.concatenate %6, %8, %10, %12, %14, %16, %18, %20, %22, %24, %26, %28, %30, %32, %34, %36 in 0 : vector<8x256xbf16>, vector<8x256xbf16>, vector<8x256xbf16>, vector<8x256xbf16>, vector<8x256xbf16>, vector<8x256xbf16>, vector<8x256xbf16>, vector<8x256xbf16>, vector<8x256xbf16>, vector<8x256xbf16>, vector<8x256xbf16>, vector<8x256xbf16>, vector<8x256xbf16>, vector<8x256xbf16>, vector<8x256xbf16>, vector<8x256xbf16> -> vector<128x256xbf16>
    %42 = tpu.concatenate %38, %40 in 0 : vector<8x256xbf16>, vector<8x256xbf16> -> vector<16x256xbf16>
    %43 = tpu.concatenate %41, %42 in 0 : vector<128x256xbf16>, vector<16x256xbf16> -> vector<144x256xbf16>
    %c0_87 = arith.constant 0 : index
    %c0_88 = arith.constant 0 : index
    %44 = vector.load %arg4[%c0_87, %c0_88] : memref<8x144xbf16, #tpu.memory_space<vmem>>, vector<8x144xbf16>
    %cst = arith.constant dense<0.000000e+00> : vector<8x256xf32>
    %45 = tpu.matmul %44, %43, %cst {dimension_numbers = #tpu.dot_dimension_numbers<[1], [0], [0], [1], [0, 0, 1, 1], [], []>} : vector<8x144xbf16>, vector<144x256xbf16>, vector<8x256xf32> -> vector<8x256xf32>
    %c0_89 = arith.constant 0 : index
    %c0_90 = arith.constant 0 : index
    %46 = vector.load %arg6[%c0_89, %c0_90] : memref<8x1xf32, #tpu.memory_space<vmem>>, vector<8x1xf32>
    %cst_91 = arith.constant dense<0.000000e+00> : vector<8xf32>
    %47 = vector.multi_reduction <add>, %45, %cst_91 [1] : vector<8x256xf32> to vector<8xf32>
    %48 = vector.shape_cast %47 : vector<8xf32> to vector<8x1xf32>
    %49 = arith.addf %46, %48 : vector<8x1xf32>
    %c0_92 = arith.constant 0 : index
    %c0_93 = arith.constant 0 : index
    %50 = vector.load %arg6[%c0_92, %c0_93] : memref<8x1xf32, #tpu.memory_space<vmem>>, vector<8x1xf32>
    tpu.vector_store %arg6[%c0_92, %c0_93], %49 {strides = array<i32>} : memref<8x1xf32, #tpu.memory_space<vmem>>, vector<8x1xf32>,
    %c0_94 = arith.constant 0 : index
    %c0_95 = arith.constant 0 : index
    %51 = vector.load %arg7[%c0_94, %c0_95] : memref<8x1xf32, #tpu.memory_space<vmem>>, vector<8x1xf32>
    %52 = arith.mulf %45, %45 : vector<8x256xf32>
    %cst_96 = arith.constant dense<0.000000e+00> : vector<8xf32>
    %53 = vector.multi_reduction <add>, %52, %cst_96 [1] : vector<8x256xf32> to vector<8xf32>
    %54 = vector.shape_cast %53 : vector<8xf32> to vector<8x1xf32>
    %55 = arith.addf %51, %54 : vector<8x1xf32>
    %c0_97 = arith.constant 0 : index
    %c0_98 = arith.constant 0 : index
    %56 = vector.load %arg7[%c0_97, %c0_98] : memref<8x1xf32, #tpu.memory_space<vmem>>, vector<8x1xf32>
    tpu.vector_store %arg7[%c0_97, %c0_98], %55 {strides = array<i32>} : memref<8x1xf32, #tpu.memory_space<vmem>>, vector<8x1xf32>,
    %57 = arith.truncf %45 : vector<8x256xf32> to vector<8x256xbf16>
    %c0_99 = arith.constant 0 : index
    %c0_100 = arith.constant 0 : index
    %c0_101 = arith.constant 0 : index
    %58 = vector.load %arg5[%c0_99, %c0_100, %c0_101] : memref<1x8x256xbf16, #tpu.memory_space<vmem>>, vector<1x8x256xbf16>
    %59 = vector.shape_cast %58 : vector<1x8x256xbf16> to vector<8x256xbf16>
    %60 = vector.shape_cast %57 : vector<8x256xbf16> to vector<1x8x256xbf16>
    tpu.vector_store %arg5[%c0_99, %c0_100, %c0_101], %60 {strides = array<i32>} : memref<1x8x256xbf16, #tpu.memory_space<vmem>>, vector<1x8x256xbf16>,
    return
  }
  func.func @transform_0(%arg0: i32, %arg1: i32) -> (i32, i32, i32, i32, i32) {
    %c0_i32 = arith.constant 0 : i32
    %c0_i32_0 = arith.constant 0 : i32
    %c0_i32_1 = arith.constant 0 : i32
    %c0_i32_2 = arith.constant 0 : i32
    return %c0_i32, %arg0, %arg1, %c0_i32_0, %c0_i32_1 : i32, i32, i32, i32, i32
  }
  func.func @transform_1(%arg0: i32, %arg1: i32) -> (i32, i32, i32, i32, i32) {
    %c0_i32 = arith.constant 0 : i32
    %c0_i32_0 = arith.constant 0 : i32
    %c0_i32_1 = arith.constant 0 : i32
    %c0_i32_2 = arith.constant 0 : i32
    return %c0_i32, %arg0, %arg1, %c0_i32_0, %c0_i32_1 : i32, i32, i32, i32, i32
  }
  func.func @transform_2(%arg0: i32, %arg1: i32) -> (i32, i32) {
    %c0_i32 = arith.constant 0 : i32
    %c0_i32_0 = arith.constant 0 : i32
    %c0_i32_1 = arith.constant 0 : i32
    return %c0_i32, %c0_i32_0 : i32, i32
  }
  func.func @transform_3(%arg0: i32, %arg1: i32) -> (i32, i32, i32) {
    %c0_i32 = arith.constant 0 : i32
    %c0_i32_0 = arith.constant 0 : i32
    return %arg0, %c0_i32, %arg1 : i32, i32, i32
  }
  func.func @transform_4(%arg0: i32, %arg1: i32) -> (i32, i32) {
    %c0_i32 = arith.constant 0 : i32
    %c0_i32_0 = arith.constant 0 : i32
    %c0_i32_1 = arith.constant 0 : i32
    return %c0_i32, %c0_i32_0 : i32, i32
  }
  func.func @transform_5(%arg0: i32, %arg1: i32) -> (i32, i32) {
    %c0_i32 = arith.constant 0 : i32
    %c0_i32_0 = arith.constant 0 : i32
    %c0_i32_1 = arith.constant 0 : i32
    return %c0_i32, %c0_i32_0 : i32, i32
  }
}

module attributes {stable_mosaic.version = 11 : i64} {
  func.func @_bn_relu_kernel(%arg0: i32, %arg1: i32, %arg2: memref<1x8x256xbf16, #tpu.memory_space<vmem>>, %arg3: memref<8x1xf32, #tpu.memory_space<vmem>>, %arg4: memref<8x1xf32, #tpu.memory_space<vmem>>, %arg5: memref<1x8x256xbf16, #tpu.memory_space<vmem>>) attributes {dimension_semantics = [#tpu.dimension_semantics<parallel>, #tpu.dimension_semantics<parallel>], iteration_bounds = array<i64: 2, 1>, scalar_prefetch = 0 : i64, scratch_operands = 0 : i64, tpu.core_type = #tpu.core_type<tc>, window_params = [{transform_indices = @transform_0, window_bounds = array<i64: 1, 8, 256>}, {pipeline_mode = #tpu.pipeline_mode<synchronous>, transform_indices = @transform_1, window_bounds = array<i64: 8, 1>}, {pipeline_mode = #tpu.pipeline_mode<synchronous>, transform_indices = @transform_2, window_bounds = array<i64: 8, 1>}, {transform_indices = @transform_3, window_bounds = array<i64: 1, 8, 256>}]} {
    %c0 = arith.constant 0 : index
    %c0_0 = arith.constant 0 : index
    %c0_1 = arith.constant 0 : index
    %0 = vector.load %arg2[%c0, %c0_0, %c0_1] : memref<1x8x256xbf16, #tpu.memory_space<vmem>>, vector<1x8x256xbf16>
    %1 = arith.extf %0 : vector<1x8x256xbf16> to vector<1x8x256xf32>
    %c0_2 = arith.constant 0 : index
    %c0_3 = arith.constant 0 : index
    %2 = vector.load %arg3[%c0_2, %c0_3] : memref<8x1xf32, #tpu.memory_space<vmem>>, vector<8x1xf32>
    %3 = vector.shape_cast %2 : vector<8x1xf32> to vector<1x8x1xf32>
    %4 = vector.broadcast %3 : vector<1x8x1xf32> to vector<1x8x256xf32>
    %5 = arith.mulf %1, %4 : vector<1x8x256xf32>
    %c0_4 = arith.constant 0 : index
    %c0_5 = arith.constant 0 : index
    %6 = vector.load %arg4[%c0_4, %c0_5] : memref<8x1xf32, #tpu.memory_space<vmem>>, vector<8x1xf32>
    %7 = vector.shape_cast %6 : vector<8x1xf32> to vector<1x8x1xf32>
    %8 = vector.broadcast %7 : vector<1x8x1xf32> to vector<1x8x256xf32>
    %9 = arith.addf %5, %8 : vector<1x8x256xf32>
    %cst = arith.constant 0.000000e+00 : f32
    %10 = vector.broadcast %cst : f32 to vector<1x8x256xf32>
    %11 = arith.maximumf %9, %10 : vector<1x8x256xf32>
    %12 = arith.truncf %11 : vector<1x8x256xf32> to vector<1x8x256xbf16>
    %c0_6 = arith.constant 0 : index
    %c0_7 = arith.constant 0 : index
    %c0_8 = arith.constant 0 : index
    %13 = vector.load %arg5[%c0_6, %c0_7, %c0_8] : memref<1x8x256xbf16, #tpu.memory_space<vmem>>, vector<1x8x256xbf16>
    tpu.vector_store %arg5[%c0_6, %c0_7, %c0_8], %12 {strides = array<i32>} : memref<1x8x256xbf16, #tpu.memory_space<vmem>>, vector<1x8x256xbf16>,
    return
  }
  func.func @transform_0(%arg0: i32, %arg1: i32) -> (i32, i32, i32) {
    %c0_i32 = arith.constant 0 : i32
    %c0_i32_0 = arith.constant 0 : i32
    return %arg0, %c0_i32, %arg1 : i32, i32, i32
  }
  func.func @transform_1(%arg0: i32, %arg1: i32) -> (i32, i32) {
    %c0_i32 = arith.constant 0 : i32
    %c0_i32_0 = arith.constant 0 : i32
    %c0_i32_1 = arith.constant 0 : i32
    return %c0_i32, %c0_i32_0 : i32, i32
  }
  func.func @transform_2(%arg0: i32, %arg1: i32) -> (i32, i32) {
    %c0_i32 = arith.constant 0 : i32
    %c0_i32_0 = arith.constant 0 : i32
    %c0_i32_1 = arith.constant 0 : i32
    return %c0_i32, %c0_i32_0 : i32, i32
  }
  func.func @transform_3(%arg0: i32, %arg1: i32) -> (i32, i32, i32) {
    %c0_i32 = arith.constant 0 : i32
    %c0_i32_0 = arith.constant 0 : i32
    return %arg0, %c0_i32, %arg1 : i32, i32, i32
  }
}

module attributes {stable_mosaic.version = 11 : i64} {
  func.func @_mm_stats_kernel(%arg0: i32, %arg1: i32, %arg2: memref<1x32x16xbf16, #tpu.memory_space<vmem>>, %arg3: memref<16x32xbf16, #tpu.memory_space<vmem>>, %arg4: memref<1x16x16xbf16, #tpu.memory_space<vmem>>, %arg5: memref<16x1xf32, #tpu.memory_space<vmem>>, %arg6: memref<16x1xf32, #tpu.memory_space<vmem>>) attributes {dimension_semantics = [#tpu.dimension_semantics<arbitrary>, #tpu.dimension_semantics<arbitrary>], iteration_bounds = array<i64: 2, 1>, scalar_prefetch = 0 : i64, scratch_operands = 0 : i64, tpu.core_type = #tpu.core_type<tc>, window_params = [{transform_indices = @transform_0, window_bounds = array<i64: 1, 32, 16>}, {pipeline_mode = #tpu.pipeline_mode<synchronous>, transform_indices = @transform_1, window_bounds = array<i64: 16, 32>}, {transform_indices = @transform_2, window_bounds = array<i64: 1, 16, 16>}, {pipeline_mode = #tpu.pipeline_mode<synchronous>, transform_indices = @transform_3, window_bounds = array<i64: 16, 1>}, {pipeline_mode = #tpu.pipeline_mode<synchronous>, transform_indices = @transform_4, window_bounds = array<i64: 16, 1>}]} {
    %c0_i32 = arith.constant 0 : i32
    %0 = arith.cmpi eq, %arg0, %c0_i32 : i32
    %c0_i32_0 = arith.constant 0 : i32
    %1 = arith.cmpi eq, %arg1, %c0_i32_0 : i32
    %2 = arith.andi %0, %1 : i1
    %3 = arith.extui %2 : i1 to i32
    %c0_i32_1 = arith.constant 0 : i32
    %4 = arith.cmpi ne, %3, %c0_i32_1 : i32
    scf.if %4 {
      %cst_19 = arith.constant 0.000000e+00 : f32
      %24 = vector.broadcast %cst_19 : f32 to vector<16x1xf32>
      %c0_20 = arith.constant 0 : index
      %c0_21 = arith.constant 0 : index
      %25 = vector.load %arg5[%c0_20, %c0_21] : memref<16x1xf32, #tpu.memory_space<vmem>>, vector<16x1xf32>
      tpu.vector_store %arg5[%c0_20, %c0_21], %24 {strides = array<i32>} : memref<16x1xf32, #tpu.memory_space<vmem>>, vector<16x1xf32>,
      %cst_22 = arith.constant 0.000000e+00 : f32
      %26 = vector.broadcast %cst_22 : f32 to vector<16x1xf32>
      %c0_23 = arith.constant 0 : index
      %c0_24 = arith.constant 0 : index
      %27 = vector.load %arg6[%c0_23, %c0_24] : memref<16x1xf32, #tpu.memory_space<vmem>>, vector<16x1xf32>
      tpu.vector_store %arg6[%c0_23, %c0_24], %26 {strides = array<i32>} : memref<16x1xf32, #tpu.memory_space<vmem>>, vector<16x1xf32>,
    } else {
    }
    %c0 = arith.constant 0 : index
    %c0_2 = arith.constant 0 : index
    %5 = vector.load %arg3[%c0, %c0_2] : memref<16x32xbf16, #tpu.memory_space<vmem>>, vector<16x32xbf16>
    %c0_3 = arith.constant 0 : index
    %c0_4 = arith.constant 0 : index
    %c0_5 = arith.constant 0 : index
    %6 = vector.load %arg2[%c0_3, %c0_4, %c0_5] : memref<1x32x16xbf16, #tpu.memory_space<vmem>>, vector<1x32x16xbf16>
    %7 = vector.shape_cast %6 : vector<1x32x16xbf16> to vector<32x16xbf16>
    %cst = arith.constant dense<0.000000e+00> : vector<16x16xf32>
    %8 = tpu.matmul %5, %7, %cst {dimension_numbers = #tpu.dot_dimension_numbers<[1], [0], [0], [1], [0, 0, 1, 1], [], []>} : vector<16x32xbf16>, vector<32x16xbf16>, vector<16x16xf32> -> vector<16x16xf32>
    %c0_6 = arith.constant 0 : index
    %c0_7 = arith.constant 0 : index
    %9 = vector.load %arg5[%c0_6, %c0_7] : memref<16x1xf32, #tpu.memory_space<vmem>>, vector<16x1xf32>
    %cst_8 = arith.constant dense<0.000000e+00> : vector<16xf32>
    %10 = vector.multi_reduction <add>, %8, %cst_8 [1] : vector<16x16xf32> to vector<16xf32>
    %11 = vector.shape_cast %10 : vector<16xf32> to vector<16x1xf32>
    %12 = arith.addf %9, %11 : vector<16x1xf32>
    %c0_9 = arith.constant 0 : index
    %c0_10 = arith.constant 0 : index
    %13 = vector.load %arg5[%c0_9, %c0_10] : memref<16x1xf32, #tpu.memory_space<vmem>>, vector<16x1xf32>
    tpu.vector_store %arg5[%c0_9, %c0_10], %12 {strides = array<i32>} : memref<16x1xf32, #tpu.memory_space<vmem>>, vector<16x1xf32>,
    %c0_11 = arith.constant 0 : index
    %c0_12 = arith.constant 0 : index
    %14 = vector.load %arg6[%c0_11, %c0_12] : memref<16x1xf32, #tpu.memory_space<vmem>>, vector<16x1xf32>
    %15 = arith.mulf %8, %8 : vector<16x16xf32>
    %cst_13 = arith.constant dense<0.000000e+00> : vector<16xf32>
    %16 = vector.multi_reduction <add>, %15, %cst_13 [1] : vector<16x16xf32> to vector<16xf32>
    %17 = vector.shape_cast %16 : vector<16xf32> to vector<16x1xf32>
    %18 = arith.addf %14, %17 : vector<16x1xf32>
    %c0_14 = arith.constant 0 : index
    %c0_15 = arith.constant 0 : index
    %19 = vector.load %arg6[%c0_14, %c0_15] : memref<16x1xf32, #tpu.memory_space<vmem>>, vector<16x1xf32>
    tpu.vector_store %arg6[%c0_14, %c0_15], %18 {strides = array<i32>} : memref<16x1xf32, #tpu.memory_space<vmem>>, vector<16x1xf32>,
    %20 = arith.truncf %8 : vector<16x16xf32> to vector<16x16xbf16>
    %c0_16 = arith.constant 0 : index
    %c0_17 = arith.constant 0 : index
    %c0_18 = arith.constant 0 : index
    %21 = vector.load %arg4[%c0_16, %c0_17, %c0_18] : memref<1x16x16xbf16, #tpu.memory_space<vmem>>, vector<1x16x16xbf16>
    %22 = vector.shape_cast %21 : vector<1x16x16xbf16> to vector<16x16xbf16>
    %23 = vector.shape_cast %20 : vector<16x16xbf16> to vector<1x16x16xbf16>
    tpu.vector_store %arg4[%c0_16, %c0_17, %c0_18], %23 {strides = array<i32>} : memref<1x16x16xbf16, #tpu.memory_space<vmem>>, vector<1x16x16xbf16>,
    return
  }
  func.func @transform_0(%arg0: i32, %arg1: i32) -> (i32, i32, i32) {
    %c0_i32 = arith.constant 0 : i32
    %c0_i32_0 = arith.constant 0 : i32
    return %arg0, %c0_i32, %arg1 : i32, i32, i32
  }
  func.func @transform_1(%arg0: i32, %arg1: i32) -> (i32, i32) {
    %c0_i32 = arith.constant 0 : i32
    %c0_i32_0 = arith.constant 0 : i32
    %c0_i32_1 = arith.constant 0 : i32
    return %c0_i32, %c0_i32_0 : i32, i32
  }
  func.func @transform_2(%arg0: i32, %arg1: i32) -> (i32, i32, i32) {
    %c0_i32 = arith.constant 0 : i32
    %c0_i32_0 = arith.constant 0 : i32
    return %arg0, %c0_i32, %arg1 : i32, i32, i32
  }
  func.func @transform_3(%arg0: i32, %arg1: i32) -> (i32, i32) {
    %c0_i32 = arith.constant 0 : i32
    %c0_i32_0 = arith.constant 0 : i32
    %c0_i32_1 = arith.constant 0 : i32
    return %c0_i32, %c0_i32_0 : i32, i32
  }
  func.func @transform_4(%arg0: i32, %arg1: i32) -> (i32, i32) {
    %c0_i32 = arith.constant 0 : i32
    %c0_i32_0 = arith.constant 0 : i32
    %c0_i32_1 = arith.constant 0 : i32
    return %c0_i32, %c0_i32_0 : i32, i32
  }
}

module attributes {stable_mosaic.version = 11 : i64} {
  func.func @_bn_relu_kernel(%arg0: i32, %arg1: i32, %arg2: memref<1x16x16xbf16, #tpu.memory_space<vmem>>, %arg3: memref<16x1xf32, #tpu.memory_space<vmem>>, %arg4: memref<16x1xf32, #tpu.memory_space<vmem>>, %arg5: memref<1x16x16xbf16, #tpu.memory_space<vmem>>) attributes {dimension_semantics = [#tpu.dimension_semantics<parallel>, #tpu.dimension_semantics<parallel>], iteration_bounds = array<i64: 2, 1>, scalar_prefetch = 0 : i64, scratch_operands = 0 : i64, tpu.core_type = #tpu.core_type<tc>, window_params = [{transform_indices = @transform_0, window_bounds = array<i64: 1, 16, 16>}, {pipeline_mode = #tpu.pipeline_mode<synchronous>, transform_indices = @transform_1, window_bounds = array<i64: 16, 1>}, {pipeline_mode = #tpu.pipeline_mode<synchronous>, transform_indices = @transform_2, window_bounds = array<i64: 16, 1>}, {transform_indices = @transform_3, window_bounds = array<i64: 1, 16, 16>}]} {
    %c0 = arith.constant 0 : index
    %c0_0 = arith.constant 0 : index
    %c0_1 = arith.constant 0 : index
    %0 = vector.load %arg2[%c0, %c0_0, %c0_1] : memref<1x16x16xbf16, #tpu.memory_space<vmem>>, vector<1x16x16xbf16>
    %1 = arith.extf %0 : vector<1x16x16xbf16> to vector<1x16x16xf32>
    %c0_2 = arith.constant 0 : index
    %c0_3 = arith.constant 0 : index
    %2 = vector.load %arg3[%c0_2, %c0_3] : memref<16x1xf32, #tpu.memory_space<vmem>>, vector<16x1xf32>
    %3 = vector.shape_cast %2 : vector<16x1xf32> to vector<1x16x1xf32>
    %4 = vector.broadcast %3 : vector<1x16x1xf32> to vector<1x16x16xf32>
    %5 = arith.mulf %1, %4 : vector<1x16x16xf32>
    %c0_4 = arith.constant 0 : index
    %c0_5 = arith.constant 0 : index
    %6 = vector.load %arg4[%c0_4, %c0_5] : memref<16x1xf32, #tpu.memory_space<vmem>>, vector<16x1xf32>
    %7 = vector.shape_cast %6 : vector<16x1xf32> to vector<1x16x1xf32>
    %8 = vector.broadcast %7 : vector<1x16x1xf32> to vector<1x16x16xf32>
    %9 = arith.addf %5, %8 : vector<1x16x16xf32>
    %cst = arith.constant 0.000000e+00 : f32
    %10 = vector.broadcast %cst : f32 to vector<1x16x16xf32>
    %11 = arith.maximumf %9, %10 : vector<1x16x16xf32>
    %12 = arith.truncf %11 : vector<1x16x16xf32> to vector<1x16x16xbf16>
    %c0_6 = arith.constant 0 : index
    %c0_7 = arith.constant 0 : index
    %c0_8 = arith.constant 0 : index
    %13 = vector.load %arg5[%c0_6, %c0_7, %c0_8] : memref<1x16x16xbf16, #tpu.memory_space<vmem>>, vector<1x16x16xbf16>
    tpu.vector_store %arg5[%c0_6, %c0_7, %c0_8], %12 {strides = array<i32>} : memref<1x16x16xbf16, #tpu.memory_space<vmem>>, vector<1x16x16xbf16>,
    return
  }
  func.func @transform_0(%arg0: i32, %arg1: i32) -> (i32, i32, i32) {
    %c0_i32 = arith.constant 0 : i32
    %c0_i32_0 = arith.constant 0 : i32
    return %arg0, %c0_i32, %arg1 : i32, i32, i32
  }
  func.func @transform_1(%arg0: i32, %arg1: i32) -> (i32, i32) {
    %c0_i32 = arith.constant 0 : i32
    %c0_i32_0 = arith.constant 0 : i32
    %c0_i32_1 = arith.constant 0 : i32
    return %c0_i32, %c0_i32_0 : i32, i32
  }
  func.func @transform_2(%arg0: i32, %arg1: i32) -> (i32, i32) {
    %c0_i32 = arith.constant 0 : i32
    %c0_i32_0 = arith.constant 0 : i32
    %c0_i32_1 = arith.constant 0 : i32
    return %c0_i32, %c0_i32_0 : i32, i32
  }
  func.func @transform_3(%arg0: i32, %arg1: i32) -> (i32, i32, i32) {
    %c0_i32 = arith.constant 0 : i32
    %c0_i32_0 = arith.constant 0 : i32
    return %arg0, %c0_i32, %arg1 : i32, i32, i32
  }
}

module attributes {stable_mosaic.version = 11 : i64} {
  func.func @_up_kernel(%arg0: i32, %arg1: memref<32x4x4xbf16, #tpu.memory_space<vmem>>, %arg2: memref<4x8xf32, #tpu.memory_space<vmem>>, %arg3: memref<8x4xf32, #tpu.memory_space<vmem>>, %arg4: memref<32x8x8xbf16, #tpu.memory_space<vmem>>) attributes {dimension_semantics = [#tpu.dimension_semantics<parallel>], iteration_bounds = array<i64: 1>, scalar_prefetch = 0 : i64, scratch_operands = 0 : i64, tpu.core_type = #tpu.core_type<tc>, window_params = [{transform_indices = @transform_0, window_bounds = array<i64: 32, 4, 4>}, {pipeline_mode = #tpu.pipeline_mode<synchronous>, transform_indices = @transform_1, window_bounds = array<i64: 4, 8>}, {pipeline_mode = #tpu.pipeline_mode<synchronous>, transform_indices = @transform_2, window_bounds = array<i64: 8, 4>}, {transform_indices = @transform_3, window_bounds = array<i64: 32, 8, 8>}]} {
    %c0 = arith.constant 0 : index
    %c0_0 = arith.constant 0 : index
    %c0_1 = arith.constant 0 : index
    %0 = vector.load %arg1[%c0, %c0_0, %c0_1] : memref<32x4x4xbf16, #tpu.memory_space<vmem>>, vector<32x4x4xbf16>
    %1 = vector.shape_cast %0 : vector<32x4x4xbf16> to vector<128x4xbf16>
    %c0_2 = arith.constant 0 : index
    %c0_3 = arith.constant 0 : index
    %2 = vector.load %arg2[%c0_2, %c0_3] : memref<4x8xf32, #tpu.memory_space<vmem>>, vector<4x8xf32>
    %3 = arith.truncf %2 : vector<4x8xf32> to vector<4x8xbf16>
    %cst = arith.constant dense<0.000000e+00> : vector<128x8xf32>
    %4 = tpu.matmul %1, %3, %cst {dimension_numbers = #tpu.dot_dimension_numbers<[1], [0], [0], [1], [0, 0, 1, 1], [], []>} : vector<128x4xbf16>, vector<4x8xbf16>, vector<128x8xf32> -> vector<128x8xf32>
    %5 = vector.shape_cast %4 : vector<128x8xf32> to vector<32x4x8xf32>
    %6 = arith.truncf %5 : vector<32x4x8xf32> to vector<32x4x8xbf16>
    %c0_4 = arith.constant 0 : index
    %c0_5 = arith.constant 0 : index
    %7 = vector.load %arg3[%c0_4, %c0_5] : memref<8x4xf32, #tpu.memory_space<vmem>>, vector<8x4xf32>
    %8 = arith.truncf %7 : vector<8x4xf32> to vector<8x4xbf16>
    %9 = vector.shape_cast %8 : vector<8x4xbf16> to vector<1x8x4xbf16>
    %10 = vector.shape_cast %9 : vector<1x8x4xbf16> to vector<1x8x4xbf16>
    %11 = vector.broadcast %10 : vector<1x8x4xbf16> to vector<32x8x4xbf16>
    "tpu.trace_start"() <{level = 10 : i32, message = "boh,bhw->bow"}> : () -> ()
    %cst_6 = arith.constant dense<0.000000e+00> : vector<32x8x8xf32>
    %12 = tpu.matmul %11, %6, %cst_6 {dimension_numbers = #tpu.dot_dimension_numbers<[2], [1], [1], [2], [0, 0, 0, 1, 1, 2], [0], [0]>} : vector<32x8x4xbf16>, vector<32x4x8xbf16>, vector<32x8x8xf32> -> vector<32x8x8xf32>
    "tpu.trace_stop"() : () -> ()
    %13 = arith.truncf %12 : vector<32x8x8xf32> to vector<32x8x8xbf16>
    %c0_7 = arith.constant 0 : index
    %c0_8 = arith.constant 0 : index
    %c0_9 = arith.constant 0 : index
    %14 = vector.load %arg4[%c0_7, %c0_8, %c0_9] : memref<32x8x8xbf16, #tpu.memory_space<vmem>>, vector<32x8x8xbf16>
    tpu.vector_store %arg4[%c0_7, %c0_8, %c0_9], %13 {strides = array<i32>} : memref<32x8x8xbf16, #tpu.memory_space<vmem>>, vector<32x8x8xbf16>,
    return
  }
  func.func @transform_0(%arg0: i32) -> (i32, i32, i32) {
    %c0_i32 = arith.constant 0 : i32
    %c0_i32_0 = arith.constant 0 : i32
    %c0_i32_1 = arith.constant 0 : i32
    return %arg0, %c0_i32, %c0_i32_0 : i32, i32, i32
  }
  func.func @transform_1(%arg0: i32) -> (i32, i32) {
    %c0_i32 = arith.constant 0 : i32
    %c0_i32_0 = arith.constant 0 : i32
    %c0_i32_1 = arith.constant 0 : i32
    return %c0_i32, %c0_i32_0 : i32, i32
  }
  func.func @transform_2(%arg0: i32) -> (i32, i32) {
    %c0_i32 = arith.constant 0 : i32
    %c0_i32_0 = arith.constant 0 : i32
    %c0_i32_1 = arith.constant 0 : i32
    return %c0_i32, %c0_i32_0 : i32, i32
  }
  func.func @transform_3(%arg0: i32) -> (i32, i32, i32) {
    %c0_i32 = arith.constant 0 : i32
    %c0_i32_0 = arith.constant 0 : i32
    %c0_i32_1 = arith.constant 0 : i32
    return %arg0, %c0_i32, %c0_i32_0 : i32, i32, i32
  }
}

module attributes {stable_mosaic.version = 11 : i64} {
  func.func @_conv3_pass1_kernel(%arg0: i32, %arg1: i32, %arg2: memref<3x1x1x16x80xbf16, #tpu.memory_space<vmem>>, %arg3: memref<3x1x1x16x80xbf16, #tpu.memory_space<vmem>>, %arg4: memref<16x288xbf16, #tpu.memory_space<vmem>>, %arg5: memref<1x16x64xbf16, #tpu.memory_space<vmem>>, %arg6: memref<16x1xf32, #tpu.memory_space<vmem>>, %arg7: memref<16x1xf32, #tpu.memory_space<vmem>>) attributes {dimension_semantics = [#tpu.dimension_semantics<arbitrary>, #tpu.dimension_semantics<arbitrary>], iteration_bounds = array<i64: 2, 1>, scalar_prefetch = 0 : i64, scratch_operands = 0 : i64, tpu.core_type = #tpu.core_type<tc>, window_params = [{transform_indices = @transform_0, window_bounds = array<i64: 3, 1, 1, 16, 80>}, {transform_indices = @transform_1, window_bounds = array<i64: 3, 1, 1, 16, 80>}, {pipeline_mode = #tpu.pipeline_mode<synchronous>, transform_indices = @transform_2, window_bounds = array<i64: 16, 288>}, {transform_indices = @transform_3, window_bounds = array<i64: 1, 16, 64>}, {pipeline_mode = #tpu.pipeline_mode<synchronous>, transform_indices = @transform_4, window_bounds = array<i64: 16, 1>}, {pipeline_mode = #tpu.pipeline_mode<synchronous>, transform_indices = @transform_5, window_bounds = array<i64: 16, 1>}]} {
    %c0_i32 = arith.constant 0 : i32
    %0 = arith.cmpi eq, %arg0, %c0_i32 : i32
    %c0_i32_0 = arith.constant 0 : i32
    %1 = arith.cmpi eq, %arg1, %c0_i32_0 : i32
    %2 = arith.andi %0, %1 : i1
    %3 = arith.extui %2 : i1 to i32
    %c0_i32_1 = arith.constant 0 : i32
    %4 = arith.cmpi ne, %3, %c0_i32_1 : i32
    scf.if %4 {
      %cst_102 = arith.constant 0.000000e+00 : f32
      %61 = vector.broadcast %cst_102 : f32 to vector<16x1xf32>
      %c0_103 = arith.constant 0 : index
      %c0_104 = arith.constant 0 : index
      %62 = vector.load %arg6[%c0_103, %c0_104] : memref<16x1xf32, #tpu.memory_space<vmem>>, vector<16x1xf32>
      tpu.vector_store %arg6[%c0_103, %c0_104], %61 {strides = array<i32>} : memref<16x1xf32, #tpu.memory_space<vmem>>, vector<16x1xf32>,
      %cst_105 = arith.constant 0.000000e+00 : f32
      %63 = vector.broadcast %cst_105 : f32 to vector<16x1xf32>
      %c0_106 = arith.constant 0 : index
      %c0_107 = arith.constant 0 : index
      %64 = vector.load %arg7[%c0_106, %c0_107] : memref<16x1xf32, #tpu.memory_space<vmem>>, vector<16x1xf32>
      tpu.vector_store %arg7[%c0_106, %c0_107], %63 {strides = array<i32>} : memref<16x1xf32, #tpu.memory_space<vmem>>, vector<16x1xf32>,
    } else {
    }
    %c0 = arith.constant 0 : index
    %c0_2 = arith.constant 0 : index
    %c0_3 = arith.constant 0 : index
    %c0_4 = arith.constant 0 : index
    %c0_5 = arith.constant 0 : index
    %5 = vector.load %arg2[%c0, %c0_2, %c0_3, %c0_4, %c0_5] : memref<3x1x1x16x80xbf16, #tpu.memory_space<vmem>>, vector<1x1x1x16x64xbf16>
    %6 = vector.shape_cast %5 : vector<1x1x1x16x64xbf16> to vector<16x64xbf16>
    %c1 = arith.constant 1 : index
    %c0_6 = arith.constant 0 : index
    %c0_7 = arith.constant 0 : index
    %c0_8 = arith.constant 0 : index
    %c0_9 = arith.constant 0 : index
    %7 = vector.load %arg2[%c1, %c0_6, %c0_7, %c0_8, %c0_9] : memref<3x1x1x16x80xbf16, #tpu.memory_space<vmem>>, vector<1x1x1x16x64xbf16>
    %8 = vector.shape_cast %7 : vector<1x1x1x16x64xbf16> to vector<16x64xbf16>
    %c2 = arith.constant 2 : index
    %c0_10 = arith.constant 0 : index
    %c0_11 = arith.constant 0 : index
    %c0_12 = arith.constant 0 : index
    %c0_13 = arith.constant 0 : index
    %9 = vector.load %arg2[%c2, %c0_10, %c0_11, %c0_12, %c0_13] : memref<3x1x1x16x80xbf16, #tpu.memory_space<vmem>>, vector<1x1x1x16x64xbf16>
    %10 = vector.shape_cast %9 : vector<1x1x1x16x64xbf16> to vector<16x64xbf16>
    %c0_14 = arith.constant 0 : index
    %c0_15 = arith.constant 0 : index
    %c0_16 = arith.constant 0 : index
    %c0_17 = arith.constant 0 : index
    %c8 = arith.constant 8 : index
    %11 = vector.load %arg2[%c0_14, %c0_15, %c0_16, %c0_17, %c8] : memref<3x1x1x16x80xbf16, #tpu.memory_space<vmem>>, vector<1x1x1x16x64xbf16>
    %12 = vector.shape_cast %11 : vector<1x1x1x16x64xbf16> to vector<16x64xbf16>
    %c1_18 = arith.constant 1 : index
    %c0_19 = arith.constant 0 : index
    %c0_20 = arith.constant 0 : index
    %c0_21 = arith.constant 0 : index
    %c8_22 = arith.constant 8 : index
    %13 = vector.load %arg2[%c1_18, %c0_19, %c0_20, %c0_21, %c8_22] : memref<3x1x1x16x80xbf16, #tpu.memory_space<vmem>>, vector<1x1x1x16x64xbf16>
    %14 = vector.shape_cast %13 : vector<1x1x1x16x64xbf16> to vector<16x64xbf16>
    %c2_23 = arith.constant 2 : index
    %c0_24 = arith.constant 0 : index
    %c0_25 = arith.constant 0 : index
    %c0_26 = arith.constant 0 : index
    %c8_27 = arith.constant 8 : index
    %15 = vector.load %arg2[%c2_23, %c0_24, %c0_25, %c0_26, %c8_27] : memref<3x1x1x16x80xbf16, #tpu.memory_space<vmem>>, vector<1x1x1x16x64xbf16>
    %16 = vector.shape_cast %15 : vector<1x1x1x16x64xbf16> to vector<16x64xbf16>
    %c0_28 = arith.constant 0 : index
    %c0_29 = arith.constant 0 : index
    %c0_30 = arith.constant 0 : index
    %c0_31 = arith.constant 0 : index
    %c16 = arith.constant 16 : index
    %17 = vector.load %arg2[%c0_28, %c0_29, %c0_30, %c0_31, %c16] : memref<3x1x1x16x80xbf16, #tpu.memory_space<vmem>>, vector<1x1x1x16x64xbf16>
    %18 = vector.shape_cast %17 : vector<1x1x1x16x64xbf16> to vector<16x64xbf16>
    %c1_32 = arith.constant 1 : index
    %c0_33 = arith.constant 0 : index
    %c0_34 = arith.constant 0 : index
    %c0_35 = arith.constant 0 : index
    %c16_36 = arith.constant 16 : index
    %19 = vector.load %arg2[%c1_32, %c0_33, %c0_34, %c0_35, %c16_36] : memref<3x1x1x16x80xbf16, #tpu.memory_space<vmem>>, vector<1x1x1x16x64xbf16>
    %20 = vector.shape_cast %19 : vector<1x1x1x16x64xbf16> to vector<16x64xbf16>
    %c2_37 = arith.constant 2 : index
    %c0_38 = arith.constant 0 : index
    %c0_39 = arith.constant 0 : index
    %c0_40 = arith.constant 0 : index
    %c16_41 = arith.constant 16 : index
    %21 = vector.load %arg2[%c2_37, %c0_38, %c0_39, %c0_40, %c16_41] : memref<3x1x1x16x80xbf16, #tpu.memory_space<vmem>>, vector<1x1x1x16x64xbf16>
    %22 = vector.shape_cast %21 : vector<1x1x1x16x64xbf16> to vector<16x64xbf16>
    %c0_42 = arith.constant 0 : index
    %c0_43 = arith.constant 0 : index
    %c0_44 = arith.constant 0 : index
    %c0_45 = arith.constant 0 : index
    %c0_46 = arith.constant 0 : index
    %23 = vector.load %arg3[%c0_42, %c0_43, %c0_44, %c0_45, %c0_46] : memref<3x1x1x16x80xbf16, #tpu.memory_space<vmem>>, vector<1x1x1x16x64xbf16>
    %24 = vector.shape_cast %23 : vector<1x1x1x16x64xbf16> to vector<16x64xbf16>
    %c1_47 = arith.constant 1 : index
    %c0_48 = arith.constant 0 : index
    %c0_49 = arith.constant 0 : index
    %c0_50 = arith.constant 0 : index
    %c0_51 = arith.constant 0 : index
    %25 = vector.load %arg3[%c1_47, %c0_48, %c0_49, %c0_50, %c0_51] : memref<3x1x1x16x80xbf16, #tpu.memory_space<vmem>>, vector<1x1x1x16x64xbf16>
    %26 = vector.shape_cast %25 : vector<1x1x1x16x64xbf16> to vector<16x64xbf16>
    %c2_52 = arith.constant 2 : index
    %c0_53 = arith.constant 0 : index
    %c0_54 = arith.constant 0 : index
    %c0_55 = arith.constant 0 : index
    %c0_56 = arith.constant 0 : index
    %27 = vector.load %arg3[%c2_52, %c0_53, %c0_54, %c0_55, %c0_56] : memref<3x1x1x16x80xbf16, #tpu.memory_space<vmem>>, vector<1x1x1x16x64xbf16>
    %28 = vector.shape_cast %27 : vector<1x1x1x16x64xbf16> to vector<16x64xbf16>
    %c0_57 = arith.constant 0 : index
    %c0_58 = arith.constant 0 : index
    %c0_59 = arith.constant 0 : index
    %c0_60 = arith.constant 0 : index
    %c8_61 = arith.constant 8 : index
    %29 = vector.load %arg3[%c0_57, %c0_58, %c0_59, %c0_60, %c8_61] : memref<3x1x1x16x80xbf16, #tpu.memory_space<vmem>>, vector<1x1x1x16x64xbf16>
    %30 = vector.shape_cast %29 : vector<1x1x1x16x64xbf16> to vector<16x64xbf16>
    %c1_62 = arith.constant 1 : index
    %c0_63 = arith.constant 0 : index
    %c0_64 = arith.constant 0 : index
    %c0_65 = arith.constant 0 : index
    %c8_66 = arith.constant 8 : index
    %31 = vector.load %arg3[%c1_62, %c0_63, %c0_64, %c0_65, %c8_66] : memref<3x1x1x16x80xbf16, #tpu.memory_space<vmem>>, vector<1x1x1x16x64xbf16>
    %32 = vector.shape_cast %31 : vector<1x1x1x16x64xbf16> to vector<16x64xbf16>
    %c2_67 = arith.constant 2 : index
    %c0_68 = arith.constant 0 : index
    %c0_69 = arith.constant 0 : index
    %c0_70 = arith.constant 0 : index
    %c8_71 = arith.constant 8 : index
    %33 = vector.load %arg3[%c2_67, %c0_68, %c0_69, %c0_70, %c8_71] : memref<3x1x1x16x80xbf16, #tpu.memory_space<vmem>>, vector<1x1x1x16x64xbf16>
    %34 = vector.shape_cast %33 : vector<1x1x1x16x64xbf16> to vector<16x64xbf16>
    %c0_72 = arith.constant 0 : index
    %c0_73 = arith.constant 0 : index
    %c0_74 = arith.constant 0 : index
    %c0_75 = arith.constant 0 : index
    %c16_76 = arith.constant 16 : index
    %35 = vector.load %arg3[%c0_72, %c0_73, %c0_74, %c0_75, %c16_76] : memref<3x1x1x16x80xbf16, #tpu.memory_space<vmem>>, vector<1x1x1x16x64xbf16>
    %36 = vector.shape_cast %35 : vector<1x1x1x16x64xbf16> to vector<16x64xbf16>
    %c1_77 = arith.constant 1 : index
    %c0_78 = arith.constant 0 : index
    %c0_79 = arith.constant 0 : index
    %c0_80 = arith.constant 0 : index
    %c16_81 = arith.constant 16 : index
    %37 = vector.load %arg3[%c1_77, %c0_78, %c0_79, %c0_80, %c16_81] : memref<3x1x1x16x80xbf16, #tpu.memory_space<vmem>>, vector<1x1x1x16x64xbf16>
    %38 = vector.shape_cast %37 : vector<1x1x1x16x64xbf16> to vector<16x64xbf16>
    %c2_82 = arith.constant 2 : index
    %c0_83 = arith.constant 0 : index
    %c0_84 = arith.constant 0 : index
    %c0_85 = arith.constant 0 : index
    %c16_86 = arith.constant 16 : index
    %39 = vector.load %arg3[%c2_82, %c0_83, %c0_84, %c0_85, %c16_86] : memref<3x1x1x16x80xbf16, #tpu.memory_space<vmem>>, vector<1x1x1x16x64xbf16>
    %40 = vector.shape_cast %39 : vector<1x1x1x16x64xbf16> to vector<16x64xbf16>
    %41 = tpu.concatenate %6, %8, %10, %12, %14, %16, %18, %20, %22, %24, %26, %28, %30, %32, %34, %36 in 0 : vector<16x64xbf16>, vector<16x64xbf16>, vector<16x64xbf16>, vector<16x64xbf16>, vector<16x64xbf16>, vector<16x64xbf16>, vector<16x64xbf16>, vector<16x64xbf16>, vector<16x64xbf16>, vector<16x64xbf16>, vector<16x64xbf16>, vector<16x64xbf16>, vector<16x64xbf16>, vector<16x64xbf16>, vector<16x64xbf16>, vector<16x64xbf16> -> vector<256x64xbf16>
    %42 = tpu.concatenate %38, %40 in 0 : vector<16x64xbf16>, vector<16x64xbf16> -> vector<32x64xbf16>
    %43 = tpu.concatenate %41, %42 in 0 : vector<256x64xbf16>, vector<32x64xbf16> -> vector<288x64xbf16>
    %c0_87 = arith.constant 0 : index
    %c0_88 = arith.constant 0 : index
    %44 = vector.load %arg4[%c0_87, %c0_88] : memref<16x288xbf16, #tpu.memory_space<vmem>>, vector<16x288xbf16>
    %cst = arith.constant dense<0.000000e+00> : vector<16x64xf32>
    %45 = tpu.matmul %44, %43, %cst {dimension_numbers = #tpu.dot_dimension_numbers<[1], [0], [0], [1], [0, 0, 1, 1], [], []>} : vector<16x288xbf16>, vector<288x64xbf16>, vector<16x64xf32> -> vector<16x64xf32>
    %c0_89 = arith.constant 0 : index
    %c0_90 = arith.constant 0 : index
    %46 = vector.load %arg6[%c0_89, %c0_90] : memref<16x1xf32, #tpu.memory_space<vmem>>, vector<16x1xf32>
    %cst_91 = arith.constant dense<0.000000e+00> : vector<16xf32>
    %47 = vector.multi_reduction <add>, %45, %cst_91 [1] : vector<16x64xf32> to vector<16xf32>
    %48 = vector.shape_cast %47 : vector<16xf32> to vector<16x1xf32>
    %49 = arith.addf %46, %48 : vector<16x1xf32>
    %c0_92 = arith.constant 0 : index
    %c0_93 = arith.constant 0 : index
    %50 = vector.load %arg6[%c0_92, %c0_93] : memref<16x1xf32, #tpu.memory_space<vmem>>, vector<16x1xf32>
    tpu.vector_store %arg6[%c0_92, %c0_93], %49 {strides = array<i32>} : memref<16x1xf32, #tpu.memory_space<vmem>>, vector<16x1xf32>,
    %c0_94 = arith.constant 0 : index
    %c0_95 = arith.constant 0 : index
    %51 = vector.load %arg7[%c0_94, %c0_95] : memref<16x1xf32, #tpu.memory_space<vmem>>, vector<16x1xf32>
    %52 = arith.mulf %45, %45 : vector<16x64xf32>
    %cst_96 = arith.constant dense<0.000000e+00> : vector<16xf32>
    %53 = vector.multi_reduction <add>, %52, %cst_96 [1] : vector<16x64xf32> to vector<16xf32>
    %54 = vector.shape_cast %53 : vector<16xf32> to vector<16x1xf32>
    %55 = arith.addf %51, %54 : vector<16x1xf32>
    %c0_97 = arith.constant 0 : index
    %c0_98 = arith.constant 0 : index
    %56 = vector.load %arg7[%c0_97, %c0_98] : memref<16x1xf32, #tpu.memory_space<vmem>>, vector<16x1xf32>
    tpu.vector_store %arg7[%c0_97, %c0_98], %55 {strides = array<i32>} : memref<16x1xf32, #tpu.memory_space<vmem>>, vector<16x1xf32>,
    %57 = arith.truncf %45 : vector<16x64xf32> to vector<16x64xbf16>
    %c0_99 = arith.constant 0 : index
    %c0_100 = arith.constant 0 : index
    %c0_101 = arith.constant 0 : index
    %58 = vector.load %arg5[%c0_99, %c0_100, %c0_101] : memref<1x16x64xbf16, #tpu.memory_space<vmem>>, vector<1x16x64xbf16>
    %59 = vector.shape_cast %58 : vector<1x16x64xbf16> to vector<16x64xbf16>
    %60 = vector.shape_cast %57 : vector<16x64xbf16> to vector<1x16x64xbf16>
    tpu.vector_store %arg5[%c0_99, %c0_100, %c0_101], %60 {strides = array<i32>} : memref<1x16x64xbf16, #tpu.memory_space<vmem>>, vector<1x16x64xbf16>,
    return
  }
  func.func @transform_0(%arg0: i32, %arg1: i32) -> (i32, i32, i32, i32, i32) {
    %c0_i32 = arith.constant 0 : i32
    %c0_i32_0 = arith.constant 0 : i32
    %c0_i32_1 = arith.constant 0 : i32
    %c0_i32_2 = arith.constant 0 : i32
    return %c0_i32, %arg0, %arg1, %c0_i32_0, %c0_i32_1 : i32, i32, i32, i32, i32
  }
  func.func @transform_1(%arg0: i32, %arg1: i32) -> (i32, i32, i32, i32, i32) {
    %c0_i32 = arith.constant 0 : i32
    %c0_i32_0 = arith.constant 0 : i32
    %c0_i32_1 = arith.constant 0 : i32
    %c0_i32_2 = arith.constant 0 : i32
    return %c0_i32, %arg0, %arg1, %c0_i32_0, %c0_i32_1 : i32, i32, i32, i32, i32
  }
  func.func @transform_2(%arg0: i32, %arg1: i32) -> (i32, i32) {
    %c0_i32 = arith.constant 0 : i32
    %c0_i32_0 = arith.constant 0 : i32
    %c0_i32_1 = arith.constant 0 : i32
    return %c0_i32, %c0_i32_0 : i32, i32
  }
  func.func @transform_3(%arg0: i32, %arg1: i32) -> (i32, i32, i32) {
    %c0_i32 = arith.constant 0 : i32
    %c0_i32_0 = arith.constant 0 : i32
    return %arg0, %c0_i32, %arg1 : i32, i32, i32
  }
  func.func @transform_4(%arg0: i32, %arg1: i32) -> (i32, i32) {
    %c0_i32 = arith.constant 0 : i32
    %c0_i32_0 = arith.constant 0 : i32
    %c0_i32_1 = arith.constant 0 : i32
    return %c0_i32, %c0_i32_0 : i32, i32
  }
  func.func @transform_5(%arg0: i32, %arg1: i32) -> (i32, i32) {
    %c0_i32 = arith.constant 0 : i32
    %c0_i32_0 = arith.constant 0 : i32
    %c0_i32_1 = arith.constant 0 : i32
    return %c0_i32, %c0_i32_0 : i32, i32
  }
}

module attributes {stable_mosaic.version = 11 : i64} {
  func.func @_bn_relu_kernel(%arg0: i32, %arg1: i32, %arg2: memref<1x16x64xbf16, #tpu.memory_space<vmem>>, %arg3: memref<16x1xf32, #tpu.memory_space<vmem>>, %arg4: memref<16x1xf32, #tpu.memory_space<vmem>>, %arg5: memref<1x16x64xbf16, #tpu.memory_space<vmem>>) attributes {dimension_semantics = [#tpu.dimension_semantics<parallel>, #tpu.dimension_semantics<parallel>], iteration_bounds = array<i64: 2, 1>, scalar_prefetch = 0 : i64, scratch_operands = 0 : i64, tpu.core_type = #tpu.core_type<tc>, window_params = [{transform_indices = @transform_0, window_bounds = array<i64: 1, 16, 64>}, {pipeline_mode = #tpu.pipeline_mode<synchronous>, transform_indices = @transform_1, window_bounds = array<i64: 16, 1>}, {pipeline_mode = #tpu.pipeline_mode<synchronous>, transform_indices = @transform_2, window_bounds = array<i64: 16, 1>}, {transform_indices = @transform_3, window_bounds = array<i64: 1, 16, 64>}]} {
    %c0 = arith.constant 0 : index
    %c0_0 = arith.constant 0 : index
    %c0_1 = arith.constant 0 : index
    %0 = vector.load %arg2[%c0, %c0_0, %c0_1] : memref<1x16x64xbf16, #tpu.memory_space<vmem>>, vector<1x16x64xbf16>
    %1 = arith.extf %0 : vector<1x16x64xbf16> to vector<1x16x64xf32>
    %c0_2 = arith.constant 0 : index
    %c0_3 = arith.constant 0 : index
    %2 = vector.load %arg3[%c0_2, %c0_3] : memref<16x1xf32, #tpu.memory_space<vmem>>, vector<16x1xf32>
    %3 = vector.shape_cast %2 : vector<16x1xf32> to vector<1x16x1xf32>
    %4 = vector.broadcast %3 : vector<1x16x1xf32> to vector<1x16x64xf32>
    %5 = arith.mulf %1, %4 : vector<1x16x64xf32>
    %c0_4 = arith.constant 0 : index
    %c0_5 = arith.constant 0 : index
    %6 = vector.load %arg4[%c0_4, %c0_5] : memref<16x1xf32, #tpu.memory_space<vmem>>, vector<16x1xf32>
    %7 = vector.shape_cast %6 : vector<16x1xf32> to vector<1x16x1xf32>
    %8 = vector.broadcast %7 : vector<1x16x1xf32> to vector<1x16x64xf32>
    %9 = arith.addf %5, %8 : vector<1x16x64xf32>
    %cst = arith.constant 0.000000e+00 : f32
    %10 = vector.broadcast %cst : f32 to vector<1x16x64xf32>
    %11 = arith.maximumf %9, %10 : vector<1x16x64xf32>
    %12 = arith.truncf %11 : vector<1x16x64xf32> to vector<1x16x64xbf16>
    %c0_6 = arith.constant 0 : index
    %c0_7 = arith.constant 0 : index
    %c0_8 = arith.constant 0 : index
    %13 = vector.load %arg5[%c0_6, %c0_7, %c0_8] : memref<1x16x64xbf16, #tpu.memory_space<vmem>>, vector<1x16x64xbf16>
    tpu.vector_store %arg5[%c0_6, %c0_7, %c0_8], %12 {strides = array<i32>} : memref<1x16x64xbf16, #tpu.memory_space<vmem>>, vector<1x16x64xbf16>,
    return
  }
  func.func @transform_0(%arg0: i32, %arg1: i32) -> (i32, i32, i32) {
    %c0_i32 = arith.constant 0 : i32
    %c0_i32_0 = arith.constant 0 : i32
    return %arg0, %c0_i32, %arg1 : i32, i32, i32
  }
  func.func @transform_1(%arg0: i32, %arg1: i32) -> (i32, i32) {
    %c0_i32 = arith.constant 0 : i32
    %c0_i32_0 = arith.constant 0 : i32
    %c0_i32_1 = arith.constant 0 : i32
    return %c0_i32, %c0_i32_0 : i32, i32
  }
  func.func @transform_2(%arg0: i32, %arg1: i32) -> (i32, i32) {
    %c0_i32 = arith.constant 0 : i32
    %c0_i32_0 = arith.constant 0 : i32
    %c0_i32_1 = arith.constant 0 : i32
    return %c0_i32, %c0_i32_0 : i32, i32
  }
  func.func @transform_3(%arg0: i32, %arg1: i32) -> (i32, i32, i32) {
    %c0_i32 = arith.constant 0 : i32
    %c0_i32_0 = arith.constant 0 : i32
    return %arg0, %c0_i32, %arg1 : i32, i32, i32
  }
}

</mosaic_0001>

<bundles_post_ra>
// kernel: _forward.21
= control target key start
LH: loop header
LB: loop body
LE: loop exit
PB: predicated region body
PF: predicated region fallthrough
CT: control target
= control target key end

     0   :  { %s371_s12 = smov 0   ;;  %s373_s13 = smov 0   ;;  %s407_s0 = inlined_call_operand.vmem [shape: bf16[2,8,64], index: 0, kind: input, shape index: {}]   ;;  %s408_s1 = inlined_call_operand.vmem [shape: f32[8,1], index: 1, kind: input, shape index: {}]   ;;  %s409_s2 = inlined_call_operand.vmem [shape: f32[8,1], index: 2, kind: input, shape index: {}]   ;;  %s410_s3 = inlined_call_operand.vmem [shape: bf16[2,8,64], index: 3, kind: output, shape index: {}]  }
   0x1   :  { %s375_s14 = smov 0  }
   0x2 LB: > { %s25_s15 = sadd.s32 1, %s344_s13  ;;  %p295_p0 = scmp.ge.s32.totalorder %s348_s14, 1  ;;  %s348_s14 = sphi %s375_s14, %s13_s14   ;;  %s344_s13 = sphi %s373_s13, %s412_s13   ;;  %s340_s12 = sphi %s371_s12, %s411_s12  }
   0x3   : > { %p27_p1 = scmp.ge.s32.totalorder %s25_s15, 2  ;;  %p155_p2 = scmp.lt.s32.totalorder %s348_s14, 3 }
   0x5   : > { %s414_s15 = smov (%p27_p1, %s25_s15), 0  ;;  %p156_p3 = pnand %p295_p0, %p155_p2 }
   0x6   : > { %p183_p4 = scmp.lt.s32.totalorder (!%p156_p3), %s340_s12, 1 }
   0x7   : > { %159 = sbr.rel (%p156_p3) target bundleno = 149 (0x95), region = 32 }
   0xc   : > { %v199_v0 = vld [vmem:[%s408_s1] sm:$0xff]  ;;  %v350_v1 = vmov 0   ;;  %s416_s12 = smov (!%p183_p4, %s340_s12), 1  ;;  %vm215_vm0 = vcmask 519168  }
   0xd   : > { %325 = vset.pattern.permute.xlu0 %v350_v1  ;;  %v206_v2 = vld [vmem:[%s409_s2] sm:$0xff]  ;;  %s296_s20 = sshll.u32 %s416_s12, 2 }
   0xe   : > { %202 = vperm.xlu0 %325, %v199_v0   ;;  %s189_s23 = scalar_lea.vmem %s407_s0, %s296_s20  ;;  %s196_s26 = scalar_lea.vmem %s410_s3, %s296_s20 }
   0xf   : > { %v197_v3 = vld [vmem:[%s189_s23] sm:$0xf] }
  0x10   : > { %v198_v4 = vunpack.c.l.bf16 %v197_v3 }
  0x12   : > { %209 = vperm.xlu0 %325, %v206_v2  }
  0x89   : > { %v203_v5 = vpop.permute.xlu0 %202 }
  0x8a   : > { %v205_v6 = vmul.f32 %v203_v5, %v198_v4 }
  0x8d   : > { %v210_v7 = vpop.permute.xlu0 %209 }
  0x8e   : > { %v212_v8 = vadd.f32 %v210_v7, %v205_v6 }
  0x90   : > { %v213_v9 = vmax.f32 %v212_v8, 0.0 }
  0x92   : > { %v214_v10 = vpack.c.bf16 %v213_v9, %v213_v9 }
  0x94   : > { %216 = vst.msk [vmem:[%s196_s26] sm:$0xf] %vm215_vm0, %v214_v10 }
  0x95 PF: > { %s13_s14 = sadd.s32 1, %s348_s14   ;;  %s411_s12 = smov %s344_s13 }
  0x96   : > { %p10_p5 = scmp.ge.s32.totalorder %s13_s14, 4   ;;  %s412_s13 = smov %s414_s15 }
  0x98   :  { %12 = sbr.rel (!%p10_p5) target bundleno = 2 (0x2), region = 62 }

// kernel: _forward.20
= control target key start
LH: loop header
LB: loop body
LE: loop exit
PB: predicated region body
PF: predicated region fallthrough
CT: control target
= control target key end

     0   :  { %s495_s15 = smov 0   ;;  %s497_s16 = smov 0   ;;  %s549_s0 = inlined_call_operand.vmem [shape: bf16[2,16,64], index: 0, kind: input, shape index: {}]   ;;  %s550_s1 = inlined_call_operand.vmem [shape: bf16[8,16], index: 1, kind: input, shape index: {}]   ;;  %s551_s2 = inlined_call_operand.vmem [shape: bf16[2,8,64], index: 2, kind: output, shape index: {0}]   ;;  %s552_s3 = inlined_call_operand.vmem [shape: f32[8,1], index: 3, kind: output, shape index: {1}]   ;;  %s553_s4 = inlined_call_operand.vmem [shape: f32[8,1], index: 4, kind: output, shape index: {2}]  }
   0x1   :  { %s499_s17 = smov 0  }
   0x2 LB: > { %s27_s18 = sadd.s32 1, %s461_s16  ;;  %p396_p0 = scmp.ge.s32.totalorder %s465_s17, 1  ;;  %s465_s17 = sphi %s499_s17, %s15_s17   ;;  %s461_s16 = sphi %s497_s16, %s555_s16   ;;  %s457_s15 = sphi %s495_s15, %s554_s15  }
   0x3   : > { %p29_p1 = scmp.ge.s32.totalorder %s27_s18, 2  ;;  %p176_p2 = scmp.lt.s32.totalorder %s465_s17, 3 }
   0x5   : > { %s557_s18 = smov (%p29_p1, %s27_s18), 0  ;;  %p177_p3 = pnand %p396_p0, %p176_p2 }
   0x6   : > { %p207_p4 = scmp.lt.s32.totalorder (!%p177_p3), %s457_s15, 1  ;;  %p223_p5 = scmp.eq.s32.totalorder (!%p177_p3), %s457_s15, 0 }
   0x7   : > { %180 = sbr.rel (%p177_p3) target bundleno = 361 (0x169), region = 28 }
   0xc   : > { %s559_s15 = smov (!%p207_p4, %s457_s15), 1  ;;  %228 = sbr.rel (!%p223_p5) target bundleno = 17 (0x11), region = 32  ;;  %vm229_vm0 = vcmask (%p223_p5), 7168   ;;  %v467_v0 = vmov (%p223_p5), 0.0  }
   0xd   : > { %s405_s19 = sshll.u32 %s559_s15, 3  ;;  %s399_s20 = sshll.u32 %s559_s15, 2  ;;  %230 = vst.msk [vmem:[%s552_s3] sm:$0xff] (%p223_p5), %vm229_vm0, %v467_v0  ;;  %231 = vst.msk [vmem:[%s553_s4] sm:$0xff] (%p223_p5), %vm229_vm0, %v467_v0 }
   0xe   : > { %s214_s23 = scalar_lea.vmem %s549_s0, %s405_s19  ;;  %s221_s26 = scalar_lea.vmem %s551_s2, %s399_s20 }
  0x11 PF: > { %v442_v1 = vld [vmem:[%s214_s23] sm:$0xff]   ;;  %v468_v2 = vmov 0.0   ;;  %vm469_vm1 = vmmov 0   ;;  %vm241_vm2 = vcmask 130048   ;;  %vm286_vm3 = vcmask 523264  }
  0x12   : > { %409 = vmatprep.subr.bf16.mxu0 %v468_v2  ;;  %411 = vmatprep.mubr.msk.bf16.mxu0 %vm469_vm1, %v468_v2  ;;  %v232_v3 = vld [vmem:[%s550_s1] sm:$0xf]  ;;  %vm301_vm4 = vcmask 519168   ;;  %vm291_vm5 = vcmask 7168  }
  0x13   : > { %410 = vmatpush3.bf16.msra.mxu0 %v442_v1 }
  0x14   : > { %v285_v12 = vld [vmem:[%s552_s3] sm:$0xff] }
  0x15   : > { %v293_v15 = vld [vmem:[%s553_s4] sm:$0xff] }
  0x16   : > { %412 = vmatmul.mubr.msk.bf16.vlgmr.msra.gmra.mxu0 %vm241_vm2, %v232_v3 }
  0xd6   : > { %v279_v4 = vpop.f32.mrf.mxu0 }
  0xd7   : > { %v300_v5 = vpack.c.bf16 %v279_v4, %v279_v4  ;;  %v287_v6 = vsel %vm286_vm3, %v279_v4, 0.0  ;;  %v294_v7 = vmul.f32 %v279_v4, %v279_v4 }
  0xd8   : > { %288 = vadd.xlane.f32.xlu0 %v287_v6  ;;  %v413_v8 = vpop.f32.mrf.mxu0 }
  0xd9   : > { %302 = vst.msk [vmem:[%s221_s26] sm:$0xf] %vm301_vm4, %v300_v5  ;;  %v295_v10 = vsel %vm286_vm3, %v294_v7, 0.0 }
  0xda   : > { %v282_v9 = vpop.f32.mrf.mxu0 }
  0xdc   : > { %296 = vadd.xlane.f32.xlu0 %v295_v10  ;;  %v414_v11 = vpop.f32.mrf.mxu0 }
 0x161   : > { %v289_v13 = vpop.xlane.xlu0 %288 }
 0x162   : > { %v290_v14 = vadd.f32 %v289_v13, %v285_v12 }
 0x164   : > { %292 = vst.msk [vmem:[%s552_s3] sm:$0xff] %vm291_vm5, %v290_v14 }
 0x165   : > { %v297_v16 = vpop.xlane.xlu0 %296 }
 0x166   : > { %v298_v17 = vadd.f32 %v297_v16, %v293_v15 }
 0x168   : > { %299 = vst.msk [vmem:[%s553_s4] sm:$0xff] %vm291_vm5, %v298_v17 }
 0x169 PF: > { %s15_s17 = sadd.s32 1, %s465_s17   ;;  %s554_s15 = smov %s461_s16 }
 0x16a   : > { %p12_p6 = scmp.ge.s32.totalorder %s15_s17, 4   ;;  %s555_s16 = smov %s557_s18 }
 0x16c   :  { %14 = sbr.rel (!%p12_p6) target bundleno = 2 (0x2), region = 78 }

// kernel: _forward.22
= control target key start
LH: loop header
LB: loop body
LE: loop exit
PB: predicated region body
PF: predicated region fallthrough
CT: control target
= control target key end

     0   :  { %vm98_vm0 = vcmask 1043456   ;;  %vm73_vm1 = vcmask 64512   ;;  %v1352_v11 = vmov 0.0   ;;  %vm1353_vm2 = vmmov 0   ;;  %s1643_s1 = inlined_call_operand.vmem [shape: f32[8,16], index: 1, kind: input, shape index: {}]   ;;  %s1644_s0 = inlined_call_operand.vmem [shape: bf16[16,8,8], index: 0, kind: input, shape index: {}]   ;;  %s1645_s2 = inlined_call_operand.vmem [shape: f32[16,8], index: 2, kind: input, shape index: {}]   ;;  %s1646_s3 = inlined_call_operand.vmem [shape: bf16[16,16,16], index: 3, kind: output, shape index: {}]  }
   0x1   :  { %v31_v0 = vld [vmem:[%s1643_s1] sm:$0xff]  ;;  %v1345_v4 = vld [vmem:[%s1644_s0 + $0x8] sm:$0xff]   ;;  %v1346_v5 = vld [vmem:[%s1644_s0 + $0x10] sm:$0xff]   ;;  %1245 = vmatprep.subr.bf16.mxu1 %v1352_v11  ;;  %1247 = vmatprep.mubr.msk.bf16.mxu1 %vm1353_vm2, %v1352_v11  ;;  %vm1053_vm3 = vcmask 125952  }
   0x2   :  { %v32_v1 = vpack.c.bf16 %v31_v0, %v31_v0  ;;  %v1344_v2 = vld [vmem:[%s1644_s0] sm:$0xff]   ;;  %v1347_v6 = vld [vmem:[%s1644_s0 + $0x18] sm:$0xff]   ;;  %v1349_v8 = vld [vmem:[%s1644_s0 + $0x28] sm:$0xff]  }
   0x3   :  { %1229 = vmatprep.mubr.msk.bf16.mxu0 %vm73_vm1, %v1344_v2  ;;  %v1348_v7 = vld [vmem:[%s1644_s0 + $0x20] sm:$0xff]   ;;  %v1350_v9 = vld [vmem:[%s1644_s0 + $0x30] sm:$0xff]   ;;  %v1351_v10 = vld [vmem:[%s1644_s0 + $0x38] sm:$0xff]  }
   0x4   :  { %1341 = vmatprep.subr.msk.bf16.mxu0 %vm98_vm0, %v32_v1  ;;  %v100_v3 = vsel %vm98_vm0, %v32_v1, 0  ;;  %v215_v14 = vld [vmem:[%s1645_s2] sm:$0xff]  ;;  %v216_v15 = vld [vmem:[%s1645_s2 + $0x8] sm:$0xff] }
   0x5   :  { %1228 = vmatpush3.bf16.msra.mxu0 %v100_v3  ;;  %v1424_v19 = vpack.c.bf16 %v216_v15, %v215_v14 }
   0x6   :  { %1269 = vmatprep.subr.bf16.mxu0 %v1352_v11 }
   0x8   :  { %1230 = vmatmul.mubr.msk.bf16.vlgmr.msra.gmra.mxu0 %vm73_vm1, %v1345_v4 }
   0x9   :  { %1233 = vmatprep.mubr.msk.bf16.mxu0 %vm73_vm1, %v1346_v5 }
  0x10   :  { %1234 = vmatmul.mubr.msk.bf16.gmra.mxu0 %vm73_vm1, %v1347_v6 }
  0x11   :  { %1237 = vmatprep.mubr.msk.bf16.mxu0 %vm73_vm1, %v1348_v7 }
  0x18   :  { %1238 = vmatmul.mubr.msk.bf16.gmra.mxu0 %vm73_vm1, %v1349_v8 }
  0x19   :  { %1241 = vmatprep.mubr.msk.bf16.mxu0 %vm73_vm1, %v1350_v9 }
  0x20   :  { %1242 = vmatmul.mubr.msk.bf16.gmra.mxu0 %vm73_vm1, %v1351_v10 }
  0x21   :  { %1271 = vmatprep.mubr.msk.bf16.mxu0 %vm1353_vm2, %v1352_v11 }
  0xc8   :  { %v1231_v12 = vpop.f32.mrf.mxu0 }
  0xc9   :  { %v201_v28 = vpack.c.bf16 %v1231_v12, %v1231_v12 }
  0xca   :  { %v136_v13 = vpop.f32.mrf.mxu0 }
  0xcb   :  { %v199_v16 = vpack.c.bf16 %v136_v13, %v136_v13  ;;  %v310_v33 = vsel %vm98_vm0, %v201_v28, 0 }
  0xcc   :  { %v1232_v17 = vpop.f32.mrf.mxu0 }
  0xcd   :  { %v222_v18 = vsel %vm98_vm0, %v199_v16, 0  ;;  %v202_v36 = vpack.c.bf16 %v1232_v17, %v1232_v17 }
  0xce   :  { %v139_v20 = vpop.f32.mrf.mxu0  ;;  %1246 = vmatpush3.bf16.msra.mxu1 %v222_v18 }
  0xcf   :  { %v200_v21 = vpack.c.bf16 %v139_v20, %v139_v20  ;;  %1251 = vmatprep.subr.bf16.mxu1 %v1352_v11  ;;  %v354_v39 = vsel %vm98_vm0, %v202_v36, 0 }
  0xd0   :  { %v1235_v22 = vpop.f32.mrf.mxu0 }
  0xd1   :  { %v266_v23 = vsel %vm98_vm0, %v200_v21, 0  ;;  %1248 = vmatmul.mubr.msk.bf16.vlgmr.msra.gmra.mxu1 %vm73_vm1, %v1424_v19  ;;  %v205_v25 = vpack.c.bf16 %v1235_v22, %v1235_v22 }
  0xd2   :  { %v152_v24 = vpop.f32.mrf.mxu0  ;;  %1252 = vmatpush3.bf16.msra.mxu1 %v266_v23  ;;  %1253 = vmatprep.mubr.msk.bf16.mxu1 %vm1353_vm2, %v1352_v11 }
  0xd3   :  { %v203_v26 = vpack.c.bf16 %v152_v24, %v152_v24  ;;  %1257 = vmatprep.subr.bf16.mxu1 %v1352_v11  ;;  %v486_v31 = vsel %vm98_vm0, %v205_v25, 0 }
  0xd4   :  { %v1236_v27 = vpop.f32.mrf.mxu0 }
  0xd5   :  { %v398_v29 = vsel %vm98_vm0, %v203_v26, 0  ;;  %v206_v48 = vpack.c.bf16 %v1236_v27, %v1236_v27 }
  0xd6   :  { %v155_v30 = vpop.f32.mrf.mxu0  ;;  %1270 = vmatpush3.bf16.msra.mxu0 %v398_v29 }
  0xd7   :  { %1281 = vmatprep.subr.bf16.mxu0 %v1352_v11  ;;  %v204_v40 = vpack.c.bf16 %v155_v30, %v155_v30  ;;  %v530_v50 = vsel %vm98_vm0, %v206_v48, 0 }
  0xd8   :  { %v1239_v32 = vpop.f32.mrf.mxu0 }
  0xd9   :  { %1254 = vmatmul.mubr.msk.bf16.vlgmr.msra.gmra.mxu1 %vm73_vm1, %v1424_v19  ;;  %1272 = vmatmul.mubr.msk.bf16.vlgmr.msra.gmra.mxu0 %vm73_vm1, %v1424_v19  ;;  %v209_v42 = vpack.c.bf16 %v1239_v32, %v1239_v32  ;;  %v442_v44 = vsel %vm98_vm0, %v204_v40, 0 }
  0xda   :  { %1258 = vmatpush3.bf16.msra.mxu1 %v310_v33  ;;  %1282 = vmatpush3.bf16.msra.mxu0 %v486_v31  ;;  %v168_v34 = vpop.f32.mrf.mxu0 }
  0xdb   :  { %1259 = vmatprep.mubr.msk.bf16.mxu1 %vm1353_vm2, %v1352_v11  ;;  %1263 = vmatprep.subr.bf16.mxu1 %v1352_v11  ;;  %v207_v35 = vpack.c.bf16 %v168_v34, %v168_v34  ;;  %v662_v45 = vsel %vm98_vm0, %v209_v42, 0 }
  0xdc   :  { %1283 = vmatprep.mubr.msk.bf16.mxu0 %vm1353_vm2, %v1352_v11  ;;  %1293 = vmatprep.subr.bf16.mxu0 %v1352_v11  ;;  %v1240_v37 = vpop.f32.mrf.mxu0 }
  0xdd   :  { %v574_v38 = vsel %vm98_vm0, %v207_v35, 0  ;;  %v210_v56 = vpack.c.bf16 %v1240_v37, %v1240_v37 }
  0xde   :  { %v171_v41 = vpop.f32.mrf.mxu0 }
  0xdf   :  { %v208_v51 = vpack.c.bf16 %v171_v41, %v171_v41  ;;  %v706_v58 = vsel %vm98_vm0, %v210_v56, 0 }
  0xe0   :  { %v1243_v43 = vpop.f32.mrf.mxu0 }
  0xe1   :  { %1260 = vmatmul.mubr.msk.bf16.vlgmr.msra.gmra.mxu1 %vm73_vm1, %v1424_v19  ;;  %1284 = vmatmul.mubr.msk.bf16.vlgmr.msra.gmra.mxu0 %vm73_vm1, %v1424_v19  ;;  %v213_v52 = vpack.c.bf16 %v1243_v43, %v1243_v43  ;;  %v618_v53 = vsel %vm98_vm0, %v208_v51, 0 }
  0xe2   :  { %1264 = vmatpush3.bf16.msra.mxu1 %v354_v39  ;;  %1265 = vmatprep.mubr.msk.bf16.mxu1 %vm1353_vm2, %v1352_v11  ;;  %v184_v46 = vpop.f32.mrf.mxu0 }
  0xe3   :  { %1275 = vmatprep.subr.bf16.mxu1 %v1352_v11  ;;  %1294 = vmatpush3.bf16.msra.mxu0 %v574_v38  ;;  %v211_v47 = vpack.c.bf16 %v184_v46, %v184_v46  ;;  %v838_v54 = vsel %vm98_vm0, %v213_v52, 0 }
  0xe4   :  { %1295 = vmatprep.mubr.msk.bf16.mxu0 %vm1353_vm2, %v1352_v11  ;;  %1305 = vmatprep.subr.bf16.mxu0 %v1352_v11  ;;  %v1244_v55 = vpop.f32.mrf.mxu0 }
  0xe5   :  { %v750_v49 = vsel %vm98_vm0, %v211_v47, 0  ;;  %v214_v61 = vpack.c.bf16 %v1244_v55, %v1244_v55 }
  0xe6   :  { %v187_v57 = vpop.f32.mrf.mxu0 }
  0xe7   :  { %v212_v59 = vpack.c.bf16 %v187_v57, %v187_v57  ;;  %v882_v62 = vsel %vm98_vm0, %v214_v61, 0 }
  0xe9   :  { %1266 = vmatmul.mubr.msk.bf16.vlgmr.msra.gmra.mxu1 %vm73_vm1, %v1424_v19  ;;  %1296 = vmatmul.mubr.msk.bf16.vlgmr.msra.gmra.mxu0 %vm73_vm1, %v1424_v19  ;;  %v794_v60 = vsel %vm98_vm0, %v212_v59, 0 }
  0xea   :  { %1276 = vmatpush3.bf16.msra.mxu1 %v442_v44  ;;  %1277 = vmatprep.mubr.msk.bf16.mxu1 %vm1353_vm2, %v1352_v11 }
  0xeb   :  { %1287 = vmatprep.subr.bf16.mxu1 %v1352_v11  ;;  %1306 = vmatpush3.bf16.msra.mxu0 %v662_v45 }
  0xec   :  { %1307 = vmatprep.mubr.msk.bf16.mxu0 %vm1353_vm2, %v1352_v11  ;;  %1317 = vmatprep.subr.bf16.mxu0 %v1352_v11 }
  0xf1   :  { %1278 = vmatmul.mubr.msk.bf16.vlgmr.msra.gmra.mxu1 %vm73_vm1, %v1424_v19  ;;  %1308 = vmatmul.mubr.msk.bf16.vlgmr.msra.gmra.mxu0 %vm73_vm1, %v1424_v19 }
  0xf2   :  { %1288 = vmatpush3.bf16.msra.mxu1 %v530_v50  ;;  %1289 = vmatprep.mubr.msk.bf16.mxu1 %vm1353_vm2, %v1352_v11 }
  0xf3   :  { %1299 = vmatprep.subr.bf16.mxu1 %v1352_v11  ;;  %1318 = vmatpush3.bf16.msra.mxu0 %v750_v49 }
  0xf4   :  { %1319 = vmatprep.mubr.msk.bf16.mxu0 %vm1353_vm2, %v1352_v11  ;;  %1329 = vmatprep.subr.bf16.mxu0 %v1352_v11 }
  0xf9   :  { %1290 = vmatmul.mubr.msk.bf16.vlgmr.msra.gmra.mxu1 %vm73_vm1, %v1424_v19  ;;  %1320 = vmatmul.mubr.msk.bf16.vlgmr.msra.gmra.mxu0 %vm73_vm1, %v1424_v19 }
  0xfa   :  { %1300 = vmatpush3.bf16.msra.mxu1 %v618_v53  ;;  %1301 = vmatprep.mubr.msk.bf16.mxu1 %vm1353_vm2, %v1352_v11 }
  0xfb   :  { %1311 = vmatprep.subr.bf16.mxu1 %v1352_v11  ;;  %1330 = vmatpush3.bf16.msra.mxu0 %v838_v54 }
  0xfc   :  { %1331 = vmatprep.mubr.msk.bf16.mxu0 %vm1353_vm2, %v1352_v11 }
 0x101   :  { %1302 = vmatmul.mubr.msk.bf16.vlgmr.msra.gmra.mxu1 %vm73_vm1, %v1424_v19  ;;  %1332 = vmatmul.mubr.msk.bf16.vlgmr.msra.gmra.mxu0 %vm73_vm1, %v1424_v19 }
 0x102   :  { %1312 = vmatpush3.bf16.msra.mxu1 %v706_v58  ;;  %1313 = vmatprep.mubr.msk.bf16.mxu1 %vm1353_vm2, %v1352_v11 }
 0x103   :  { %1323 = vmatprep.subr.bf16.mxu1 %v1352_v11 }
 0x109   :  { %1314 = vmatmul.mubr.msk.bf16.vlgmr.msra.gmra.mxu1 %vm73_vm1, %v1424_v19 }
 0x10a   :  { %1324 = vmatpush3.bf16.msra.mxu1 %v794_v60  ;;  %1325 = vmatprep.mubr.msk.bf16.mxu1 %vm1353_vm2, %v1352_v11 }
 0x10b   :  { %1335 = vmatprep.subr.bf16.mxu1 %v1352_v11 }
 0x111   :  { %1326 = vmatmul.mubr.msk.bf16.vlgmr.msra.gmra.mxu1 %vm73_vm1, %v1424_v19 }
 0x112   :  { %1336 = vmatpush3.bf16.msra.mxu1 %v882_v62  ;;  %1337 = vmatprep.mubr.msk.bf16.mxu1 %vm1353_vm2, %v1352_v11 }
 0x119   :  { %1338 = vmatmul.mubr.msk.bf16.vlgmr.msra.gmra.mxu1 %vm73_vm1, %v1424_v19 }
 0x191   :  { %v258_v63 = vpop.f32.mrf.mxu1 }
 0x192   :  { %v1154_v0 = vpack.c.bf16 %v258_v63, %v258_v63 }
 0x193   :  { %v1249_v1 = vpop.f32.mrf.mxu1 }
 0x194   :  { %1054 = vst.msk [vmem:[%s1646_s3] sm:$0xf] %vm1053_vm3, %v1154_v0 }
 0x195   :  { %v261_v2 = vpop.f32.mrf.mxu1 }
 0x196   :  { %v1155_v3 = vpack.c.bf16 %v261_v2, %v261_v2 }
 0x197   :  { %v1250_v4 = vpop.f32.mrf.mxu1 }
 0x198   :  { %1055 = vst.msk [vmem:[%s1646_s3 + $0x4] sm:$0xf] %vm1053_vm3, %v1155_v3 }
 0x199   :  { %v302_v5 = vpop.f32.mrf.mxu1  ;;  %v434_v6 = vpop.f32.mrf.mxu0 }
 0x19a   :  { %v1156_v7 = vpack.c.bf16 %v302_v5, %v302_v5  ;;  %v1162_v8 = vpack.c.bf16 %v434_v6, %v434_v6 }
 0x19b   :  { %v1255_v9 = vpop.f32.mrf.mxu1  ;;  %v1273_v10 = vpop.f32.mrf.mxu0 }
 0x19c   :  { %1056 = vst.msk [vmem:[%s1646_s3 + $0x8] sm:$0xf] %vm1053_vm3, %v1156_v7  ;;  %1062 = vst.msk [vmem:[%s1646_s3 + $0x20] sm:$0xf] %vm1053_vm3, %v1162_v8 }
 0x19d   :  { %v305_v11 = vpop.f32.mrf.mxu1  ;;  %v437_v12 = vpop.f32.mrf.mxu0 }
 0x19e   :  { %v1157_v13 = vpack.c.bf16 %v305_v11, %v305_v11  ;;  %v1163_v14 = vpack.c.bf16 %v437_v12, %v437_v12 }
 0x19f   :  { %v1256_v15 = vpop.f32.mrf.mxu1  ;;  %v1274_v16 = vpop.f32.mrf.mxu0 }
 0x1a0   :  { %1057 = vst.msk [vmem:[%s1646_s3 + $0xc] sm:$0xf] %vm1053_vm3, %v1157_v13  ;;  %1063 = vst.msk [vmem:[%s1646_s3 + $0x24] sm:$0xf] %vm1053_vm3, %v1163_v14 }
 0x1a1   :  { %v346_v17 = vpop.f32.mrf.mxu1  ;;  %v522_v18 = vpop.f32.mrf.mxu0 }
 0x1a2   :  { %v1158_v19 = vpack.c.bf16 %v346_v17, %v346_v17  ;;  %v1166_v20 = vpack.c.bf16 %v522_v18, %v522_v18 }
 0x1a3   :  { %v1261_v21 = vpop.f32.mrf.mxu1  ;;  %v1285_v22 = vpop.f32.mrf.mxu0 }
 0x1a4   :  { %1058 = vst.msk [vmem:[%s1646_s3 + $0x10] sm:$0xf] %vm1053_vm3, %v1158_v19  ;;  %1066 = vst.msk [vmem:[%s1646_s3 + $0x30] sm:$0xf] %vm1053_vm3, %v1166_v20 }
 0x1a5   :  { %v349_v23 = vpop.f32.mrf.mxu1  ;;  %v525_v24 = vpop.f32.mrf.mxu0 }
 0x1a6   :  { %v1159_v25 = vpack.c.bf16 %v349_v23, %v349_v23  ;;  %v1167_v26 = vpack.c.bf16 %v525_v24, %v525_v24 }
 0x1a7   :  { %v1262_v27 = vpop.f32.mrf.mxu1  ;;  %v1286_v28 = vpop.f32.mrf.mxu0 }
 0x1a8   :  { %1059 = vst.msk [vmem:[%s1646_s3 + $0x14] sm:$0xf] %vm1053_vm3, %v1159_v25  ;;  %1067 = vst.msk [vmem:[%s1646_s3 + $0x34] sm:$0xf] %vm1053_vm3, %v1167_v26 }
 0x1a9   :  { %v390_v29 = vpop.f32.mrf.mxu1  ;;  %v610_v30 = vpop.f32.mrf.mxu0 }
 0x1aa   :  { %v1160_v31 = vpack.c.bf16 %v390_v29, %v390_v29  ;;  %v1170_v32 = vpack.c.bf16 %v610_v30, %v610_v30 }
 0x1ab   :  { %v1267_v33 = vpop.f32.mrf.mxu1  ;;  %v1297_v34 = vpop.f32.mrf.mxu0 }
 0x1ac   :  { %1060 = vst.msk [vmem:[%s1646_s3 + $0x18] sm:$0xf] %vm1053_vm3, %v1160_v31  ;;  %1070 = vst.msk [vmem:[%s1646_s3 + $0x40] sm:$0xf] %vm1053_vm3, %v1170_v32 }
 0x1ad   :  { %v393_v35 = vpop.f32.mrf.mxu1  ;;  %v613_v36 = vpop.f32.mrf.mxu0 }
 0x1ae   :  { %v1161_v37 = vpack.c.bf16 %v393_v35, %v393_v35  ;;  %v1171_v38 = vpack.c.bf16 %v613_v36, %v613_v36 }
 0x1af   :  { %v1268_v39 = vpop.f32.mrf.mxu1  ;;  %v1298_v40 = vpop.f32.mrf.mxu0 }
 0x1b0   :  { %1061 = vst.msk [vmem:[%s1646_s3 + $0x1c] sm:$0xf] %vm1053_vm3, %v1161_v37  ;;  %1071 = vst.msk [vmem:[%s1646_s3 + $0x44] sm:$0xf] %vm1053_vm3, %v1171_v38 }
 0x1b1   :  { %v478_v41 = vpop.f32.mrf.mxu1  ;;  %v698_v42 = vpop.f32.mrf.mxu0 }
 0x1b2   :  { %v1164_v43 = vpack.c.bf16 %v478_v41, %v478_v41  ;;  %v1174_v44 = vpack.c.bf16 %v698_v42, %v698_v42 }
 0x1b3   :  { %v1279_v45 = vpop.f32.mrf.mxu1  ;;  %v1309_v46 = vpop.f32.mrf.mxu0 }
 0x1b4   :  { %1064 = vst.msk [vmem:[%s1646_s3 + $0x28] sm:$0xf] %vm1053_vm3, %v1164_v43  ;;  %1074 = vst.msk [vmem:[%s1646_s3 + $0x50] sm:$0xf] %vm1053_vm3, %v1174_v44 }
 0x1b5   :  { %v481_v47 = vpop.f32.mrf.mxu1  ;;  %v701_v48 = vpop.f32.mrf.mxu0 }
 0x1b6   :  { %v1165_v49 = vpack.c.bf16 %v481_v47, %v481_v47  ;;  %v1175_v50 = vpack.c.bf16 %v701_v48, %v701_v48 }
 0x1b7   :  { %v1280_v51 = vpop.f32.mrf.mxu1  ;;  %v1310_v52 = vpop.f32.mrf.mxu0 }
 0x1b8   :  { %1065 = vst.msk [vmem:[%s1646_s3 + $0x2c] sm:$0xf] %vm1053_vm3, %v1165_v49  ;;  %1075 = vst.msk [vmem:[%s1646_s3 + $0x54] sm:$0xf] %vm1053_vm3, %v1175_v50 }
 0x1b9   :  { %v566_v53 = vpop.f32.mrf.mxu1  ;;  %v786_v54 = vpop.f32.mrf.mxu0 }
 0x1ba   :  { %v1168_v55 = vpack.c.bf16 %v566_v53, %v566_v53  ;;  %v1178_v56 = vpack.c.bf16 %v786_v54, %v786_v54 }
 0x1bb   :  { %v1291_v57 = vpop.f32.mrf.mxu1  ;;  %v1321_v58 = vpop.f32.mrf.mxu0 }
 0x1bc   :  { %1068 = vst.msk [vmem:[%s1646_s3 + $0x38] sm:$0xf] %vm1053_vm3, %v1168_v55  ;;  %1078 = vst.msk [vmem:[%s1646_s3 + $0x60] sm:$0xf] %vm1053_vm3, %v1178_v56 }
 0x1bd   :  { %v569_v59 = vpop.f32.mrf.mxu1  ;;  %v789_v60 = vpop.f32.mrf.mxu0 }
 0x1be   :  { %v1169_v61 = vpack.c.bf16 %v569_v59, %v569_v59  ;;  %v1179_v62 = vpack.c.bf16 %v789_v60, %v789_v60 }
 0x1bf   :  { %v1292_v63 = vpop.f32.mrf.mxu1  ;;  %v1322_v0 = vpop.f32.mrf.mxu0 }
 0x1c0   :  { %1069 = vst.msk [vmem:[%s1646_s3 + $0x3c] sm:$0xf] %vm1053_vm3, %v1169_v61  ;;  %1079 = vst.msk [vmem:[%s1646_s3 + $0x64] sm:$0xf] %vm1053_vm3, %v1179_v62 }
 0x1c1   :  { %v654_v1 = vpop.f32.mrf.mxu1  ;;  %v874_v2 = vpop.f32.mrf.mxu0 }
 0x1c2   :  { %v1172_v3 = vpack.c.bf16 %v654_v1, %v654_v1  ;;  %v1182_v4 = vpack.c.bf16 %v874_v2, %v874_v2 }
 0x1c3   :  { %v1303_v5 = vpop.f32.mrf.mxu1  ;;  %v1333_v6 = vpop.f32.mrf.mxu0 }
 0x1c4   :  { %1072 = vst.msk [vmem:[%s1646_s3 + $0x48] sm:$0xf] %vm1053_vm3, %v1172_v3  ;;  %1082 = vst.msk [vmem:[%s1646_s3 + $0x70] sm:$0xf] %vm1053_vm3, %v1182_v4 }
 0x1c5   :  { %v657_v7 = vpop.f32.mrf.mxu1  ;;  %v877_v8 = vpop.f32.mrf.mxu0 }
 0x1c6   :  { %v1173_v9 = vpack.c.bf16 %v657_v7, %v657_v7  ;;  %v1183_v10 = vpack.c.bf16 %v877_v8, %v877_v8 }
 0x1c7   :  { %v1304_v11 = vpop.f32.mrf.mxu1  ;;  %v1334_v12 = vpop.f32.mrf.mxu0 }
 0x1c8   :  { %1073 = vst.msk [vmem:[%s1646_s3 + $0x4c] sm:$0xf] %vm1053_vm3, %v1173_v9  ;;  %1083 = vst.msk [vmem:[%s1646_s3 + $0x74] sm:$0xf] %vm1053_vm3, %v1183_v10 }
 0x1c9   :  { %v742_v13 = vpop.f32.mrf.mxu1 }
 0x1ca   :  { %v1176_v14 = vpack.c.bf16 %v742_v13, %v742_v13 }
 0x1cb   :  { %v1315_v15 = vpop.f32.mrf.mxu1 }
 0x1cc   :  { %1076 = vst.msk [vmem:[%s1646_s3 + $0x58] sm:$0xf] %vm1053_vm3, %v1176_v14 }
 0x1cd   :  { %v745_v16 = vpop.f32.mrf.mxu1 }
 0x1ce   :  { %v1177_v17 = vpack.c.bf16 %v745_v16, %v745_v16 }
 0x1cf   :  { %v1316_v18 = vpop.f32.mrf.mxu1 }
 0x1d0   :  { %1077 = vst.msk [vmem:[%s1646_s3 + $0x5c] sm:$0xf] %vm1053_vm3, %v1177_v17 }
 0x1d1   :  { %v830_v19 = vpop.f32.mrf.mxu1 }
 0x1d2   :  { %v1180_v20 = vpack.c.bf16 %v830_v19, %v830_v19 }
 0x1d3   :  { %v1327_v21 = vpop.f32.mrf.mxu1 }
 0x1d4   :  { %1080 = vst.msk [vmem:[%s1646_s3 + $0x68] sm:$0xf] %vm1053_vm3, %v1180_v20 }
 0x1d5   :  { %v833_v22 = vpop.f32.mrf.mxu1 }
 0x1d6   :  { %v1181_v23 = vpack.c.bf16 %v833_v22, %v833_v22 }
 0x1d7   :  { %v1328_v24 = vpop.f32.mrf.mxu1 }
 0x1d8   :  { %1081 = vst.msk [vmem:[%s1646_s3 + $0x6c] sm:$0xf] %vm1053_vm3, %v1181_v23 }
 0x1d9   :  { %v918_v25 = vpop.f32.mrf.mxu1 }
 0x1da   :  { %v1184_v26 = vpack.c.bf16 %v918_v25, %v918_v25 }
 0x1db   :  { %v1339_v27 = vpop.f32.mrf.mxu1 }
 0x1dc   :  { %1084 = vst.msk [vmem:[%s1646_s3 + $0x78] sm:$0xf] %vm1053_vm3, %v1184_v26 }
 0x1dd   :  { %v921_v28 = vpop.f32.mrf.mxu1 }
 0x1de   :  { %v1185_v29 = vpack.c.bf16 %v921_v28, %v921_v28 }
 0x1df   :  { %v1340_v30 = vpop.f32.mrf.mxu1 }
 0x1e0   :  { %1085 = vst.msk [vmem:[%s1646_s3 + $0x7c] sm:$0xf] %vm1053_vm3, %v1185_v29 }

// kernel: _forward.27
= control target key start
LH: loop header
LB: loop body
LE: loop exit
PB: predicated region body
PF: predicated region fallthrough
CT: control target
= control target key end

     0   :  { %s413_s12 = smov 0   ;;  %s415_s13 = smov 0   ;;  %s452_s0 = inlined_call_operand.vmem [shape: bf16[2,8,256], index: 0, kind: input, shape index: {}]   ;;  %s453_s1 = inlined_call_operand.vmem [shape: f32[8,1], index: 1, kind: input, shape index: {}]   ;;  %s454_s2 = inlined_call_operand.vmem [shape: f32[8,1], index: 2, kind: input, shape index: {}]   ;;  %s455_s3 = inlined_call_operand.vmem [shape: bf16[2,8,256], index: 3, kind: output, shape index: {}]  }
   0x1   :  { %s417_s14 = smov 0  }
   0x2 LB: > { %s25_s15 = sadd.s32 1, %s386_s13  ;;  %p331_p0 = scmp.ge.s32.totalorder %s390_s14, 1  ;;  %s390_s14 = sphi %s417_s14, %s13_s14   ;;  %s386_s13 = sphi %s415_s13, %s457_s13   ;;  %s382_s12 = sphi %s413_s12, %s456_s12  }
   0x3   : > { %p27_p1 = scmp.ge.s32.totalorder %s25_s15, 2  ;;  %p158_p2 = scmp.lt.s32.totalorder %s390_s14, 3 }
   0x5   : > { %s459_s15 = smov (%p27_p1, %s25_s15), 0  ;;  %p159_p3 = pnand %p331_p0, %p158_p2 }
   0x6   : > { %p191_p4 = scmp.lt.s32.totalorder (!%p159_p3), %s382_s12, 1 }
   0x7   : > { %162 = sbr.rel (%p159_p3) target bundleno = 149 (0x95), region = 32 }
   0xc   : > { %v213_v0 = vld [vmem:[%s453_s1] sm:$0xff]  ;;  %v392_v1 = vmov 0   ;;  %s461_s12 = smov (!%p191_p4, %s382_s12), 1 }
   0xd   : > { %367 = vset.pattern.permute.xlu0 %v392_v1  ;;  %v221_v2 = vld [vmem:[%s454_s2] sm:$0xff]  ;;  %s339_s20 = sshll.u32 %s461_s12, 3 }
   0xe   : > { %216 = vperm.xlu0 %367, %v213_v0   ;;  %s198_s23 = scalar_lea.vmem %s452_s0, %s339_s20  ;;  %s208_s26 = scalar_lea.vmem %s455_s3, %s339_s20 }
   0xf   : > { %v210_v3 = vld [vmem:[%s198_s23] sm:$0xff] }
  0x10   : > { %v211_v4 = vunpack.c.l.bf16 %v210_v3  ;;  %v212_v5 = vunpack.c.h.bf16 %v210_v3 }
  0x12   : > { %224 = vperm.xlu0 %367, %v221_v2  }
  0x89   : > { %v217_v6 = vpop.permute.xlu0 %216 }
  0x8a   : > { %v219_v7 = vmul.f32 %v217_v6, %v211_v4  ;;  %v220_v8 = vmul.f32 %v217_v6, %v212_v5 }
  0x8d   : > { %v225_v9 = vpop.permute.xlu0 %224 }
  0x8e   : > { %v227_v10 = vadd.f32 %v225_v9, %v219_v7  ;;  %v228_v11 = vadd.f32 %v225_v9, %v220_v8 }
  0x90   : > { %v229_v12 = vmax.f32 %v227_v10, 0.0  ;;  %v230_v13 = vmax.f32 %v228_v11, 0.0 }
  0x92   : > { %v341_v14 = vpack.c.bf16 %v230_v13, %v229_v12 }
  0x94   : > { %239 = vst [vmem:[%s208_s26] sm:$0xff] %v341_v14 }
  0x95 PF: > { %s13_s14 = sadd.s32 1, %s390_s14   ;;  %s456_s12 = smov %s386_s13 }
  0x96   : > { %p10_p5 = scmp.ge.s32.totalorder %s13_s14, 4   ;;  %s457_s13 = smov %s459_s15 }
  0x98   :  { %12 = sbr.rel (!%p10_p5) target bundleno = 2 (0x2), region = 62 }

// kernel: _forward.26
= control target key start
LH: loop header
LB: loop body
LE: loop exit
PB: predicated region body
PF: predicated region fallthrough
CT: control target
= control target key end

     0   :  { %s993_s18 = smov 0   ;;  %s995_s19 = smov 0   ;;  %s1209_s0 = inlined_call_operand.vmem [shape: bf16[3,2,1,8,288], index: 0, kind: input, shape index: {}]   ;;  %s1210_s1 = inlined_call_operand.vmem [shape: bf16[3,2,1,8,288], index: 1, kind: input, shape index: {}]   ;;  %s1211_s2 = inlined_call_operand.vmem [shape: bf16[8,144], index: 2, kind: input, shape index: {}]   ;;  %s1212_s3 = inlined_call_operand.vmem [shape: bf16[2,8,256], index: 3, kind: output, shape index: {0}]   ;;  %s1213_s4 = inlined_call_operand.vmem [shape: f32[8,1], index: 4, kind: output, shape index: {1}]   ;;  %s1214_s5 = inlined_call_operand.vmem [shape: f32[8,1], index: 5, kind: output, shape index: {2}]  }
   0x1   :  { %s997_s20 = smov 0   ;;  %s999_s21 = smov 0  }
   0x2   :  { %s1001_s22 = smov 0  }
   0x3 LB: > { %s28_s23 = sadd.s32 1, %s954_s21  ;;  %p44_p1 = scmp.ne.s32.totalorder %s946_s19, %s942_s18  ;;  %s958_s22 = sphi %s1001_s22, %s16_s22   ;;  %s954_s21 = sphi %s999_s21, %s1219_s21   ;;  %s950_s20 = sphi %s997_s20, %s1218_s20   ;;  %s946_s19 = sphi %s995_s19, %s1217_s19   ;;  %s942_s18 = sphi %s993_s18, %s1216_s18  }
   0x4   : > { %p30_p0 = scmp.ge.s32.totalorder %s28_s23, 2  ;;  %p45_p2 = scmp.eq.s32.totalorder %s958_s22, 0 }
   0x5   : > { %s37_s26 = sadd.s32 1, %s946_s19  ;;  %p798_p5 = scmp.ge.s32.totalorder %s958_s22, 2 }
   0x6   : > { %s1221_s23 = smov (%p30_p0, %s28_s23), 0  ;;  %p1024_p3 = por %p45_p2, %p44_p1 }
   0x7   : > { %s32_s25 = ssub.s32 %s954_s21, %s1221_s23  ;;  %192 = sbr.rel (%p798_p5) target bundleno = 28 (0x1c), region = 20 }
   0x8   : > { %p35_p4 = scmp.eq.s32.totalorder %s32_s25, 0 }
   0xa   : > { %s1032_s27 = scalar_select %p35_p4, %s946_s19, %s37_s26  }
   0xc   : > { %195 = sbr.rel (!%p1024_p3) target bundleno = 20 (0x14), region = 24  ;;  %s197_s28 = sand.u32 (%p1024_p3), 1, %s946_s19  }
   0xd   : > { %s853_s29 = smul.u32 (%p1024_p3), 12, %s954_s21 }
   0xe   : > { %s852_s30 = smul.u32 (%p1024_p3), 36, %s197_s28 }
   0xf   : > { %s204_s8 = scalar_lea.vmem (%p1024_p3), %s1209_s0, %s853_s29 }
  0x10   : > { %v219_v0 = vld [vmem:[%s204_s8] sm:$0xff] (%p1024_p3)  ;;  %v221_v1 = vld [vmem:[%s204_s8 + $0x18] sm:$0xff] (%p1024_p3)  ;;  %v223_v2 = vld [vmem:[%s204_s8 + $0x30] sm:$0xff] (%p1024_p3)  ;;  %s199_s9 = scalar_lea.vmem (%p1024_p3), [#allocation2], %s852_s30 }
  0x11   : > { %220 = vst [vmem:[%s199_s9] sm:$0xff] %v219_v0  ;;  %222 = vst [vmem:[%s199_s9 + $0xc] sm:$0xff] %v221_v1  ;;  %v800_v3 = vld [vmem:[%s204_s8 + $0x8] sm:$0xf]  ;;  %v802_v4 = vld [vmem:[%s204_s8 + $0x20] sm:$0xf] }
  0x12   : > { %224 = vst [vmem:[%s199_s9 + $0x18] sm:$0xff] %v223_v2  ;;  %v804_v5 = vld [vmem:[%s204_s8 + $0x38] sm:$0xf]  ;;  %801 = vst [vmem:[%s199_s9 + $0x8] sm:$0xf] %v800_v3 }
  0x13   : > { %803 = vst [vmem:[%s199_s9 + $0x14] sm:$0xf] %v802_v4  ;;  %805 = vst [vmem:[%s199_s9 + $0x20] sm:$0xf] %v804_v5 }
  0x14 PF: > { %244 = sbr.rel (!%p1024_p3) target bundleno = 28 (0x1c), region = 50  ;;  %s246_s10 = sand.u32 (%p1024_p3), 1, %s946_s19  }
  0x15   : > { %s855_s11 = smul.u32 (%p1024_p3), 12, %s954_s21 }
  0x16   : > { %s854_s12 = smul.u32 (%p1024_p3), 36, %s246_s10 }
  0x17   : > { %s253_s15 = scalar_lea.vmem (%p1024_p3), %s1210_s1, %s855_s11 }
  0x18   : > { %v268_v6 = vld [vmem:[%s253_s15] sm:$0xff] (%p1024_p3)  ;;  %v270_v7 = vld [vmem:[%s253_s15 + $0x18] sm:$0xff] (%p1024_p3)  ;;  %v272_v8 = vld [vmem:[%s253_s15 + $0x30] sm:$0xff] (%p1024_p3)  ;;  %s248_s16 = scalar_lea.vmem (%p1024_p3), [#allocation3], %s854_s12 }
  0x19   : > { %269 = vst [vmem:[%s248_s16] sm:$0xff] %v268_v6  ;;  %271 = vst [vmem:[%s248_s16 + $0xc] sm:$0xff] %v270_v7  ;;  %v807_v9 = vld [vmem:[%s253_s15 + $0x8] sm:$0xf]  ;;  %v809_v10 = vld [vmem:[%s253_s15 + $0x20] sm:$0xf] }
  0x1a   : > { %273 = vst [vmem:[%s248_s16 + $0x18] sm:$0xff] %v272_v8  ;;  %v811_v11 = vld [vmem:[%s253_s15 + $0x38] sm:$0xf]  ;;  %808 = vst [vmem:[%s248_s16 + $0x8] sm:$0xf] %v807_v9 }
  0x1b   : > { %810 = vst [vmem:[%s248_s16 + $0x14] sm:$0xf] %v809_v10  ;;  %812 = vst [vmem:[%s248_s16 + $0x20] sm:$0xf] %v811_v11 }
  0x1c PF: > { %p813_p6 = scmp.ge.s32.totalorder %s958_s22, 1  ;;  %p292_p7 = scmp.lt.s32.totalorder %s958_s22, 3 }
  0x1e   : > { %p293_p8 = pnand %p813_p6, %p292_p7 }
  0x1f   : > { %s299_s17 = sand.u32 (!%p293_p8), 1, %s942_s18   ;;  %p342_p9 = scmp.lt.s32.totalorder (!%p293_p8), %s950_s20, 1 }
  0x20   : > { %296 = sbr.rel (%p293_p8) target bundleno = 570 (0x23a), region = 76  ;;  %p352_p10 = scmp.eq.s32.totalorder (!%p293_p8), %s950_s20, 0 }
  0x21   : > { %s856_s24 = smul.u32 (!%p293_p8), 36, %s299_s17 }
  0x23   : > { %s1060_s30 = scalar_lea.vmem (!%p293_p8), [#allocation2], %s856_s24  ;;  %s308_s6 = scalar_lea.vmem (!%p293_p8), [#allocation3], %s856_s24 }
  0x25   : > { %s1223_s20 = smov (!%p342_p9, %s950_s20), 1  ;;  %357 = sbr.rel (!%p352_p10) target bundleno = 42 (0x2a), region = 88  ;;  %vm358_vm0 = vcmask (%p352_p10), 7168   ;;  %v960_v12 = vmov (%p352_p10), 0.0  }
  0x26   : > { %s849_s25 = sshll.u32 %s1223_s20, 3  ;;  %359 = vst.msk [vmem:[%s1213_s4] sm:$0xff] (%p352_p10), %vm358_vm0, %v960_v12  ;;  %360 = vst.msk [vmem:[%s1214_s5] sm:$0xff] (%p352_p10), %vm358_vm0, %v960_v12 }
  0x27   : > { %s1058_s29 = scalar_lea.vmem %s1212_s3, %s849_s25 }
  0x2a PF: > { %v822_v13 = vld [vmem:[%s308_s6 + $0x18] sm:$0xff]  ;;  %v369_v14 = vld [vmem:[%s308_s6] sm:$0xff]  ;;  %s961_s20 = smov 112   ;;  %s962_s10 = smov 96   ;;  %v904_v18 = vld [vmem:[%s308_s6 + $0x8] ss:$0 sps:$4 sm:$0xff]  }
  0x2b   : > { %v839_v15 = vcombine.high %v822_v13, %v822_v13  ;;  %v1068_v16 = vcombine.high %v369_v14, %v369_v14  ;;  %v903_v17 = vld [vmem:[%s308_s6 + $0x20] ss:$0 sps:$4 sm:$0xff]   ;;  %v838_v19 = vcombine.low %v822_v13, %v822_v13  ;;  %v1075_v20 = vcombine.low %v369_v14, %v369_v14  ;;  %v821_v21 = vld [vmem:[%s308_s6 + $0xc] sm:$0xff]  ;;  %v907_v23 = vld [vmem:[%s308_s6 + $0x14] ss:$0 sps:$4 sm:$0xff]  }
  0x2c   : > { %v837_v22 = vcombine.high %v821_v21, %v821_v21  ;;  %v836_v24 = vcombine.low %v821_v21, %v821_v21  ;;  %v818_v25 = vld [vmem:[%s1060_s30 + $0x18] sm:$0xff]  ;;  %v909_v26 = vld [vmem:[%s1060_s30 + $0x20] ss:$0 sps:$4 sm:$0xff]   ;;  %v817_v31 = vld [vmem:[%s1060_s30 + $0xc] sm:$0xff]  ;;  %vm507_vm1 = vcmask 1043456   ;;  %vm595_vm2 = vcmask 130048  }
  0x2d   : > { %493 = vrot.lane.b32.xlu0 %v839_v15, %s961_s20  ;;  %501 = vrot.lane.b32.xlu1 %v1068_v16, %s962_s10  ;;  %v1090_v27 = vcombine.high %v818_v25, %v818_v25  ;;  %v361_v28 = vld [vmem:[%s1060_s30] sm:$0xff]  ;;  %v1096_v29 = vcombine.low %v818_v25, %v818_v25  ;;  %v913_v32 = vld [vmem:[%s1060_s30 + $0x8] ss:$0 sps:$4 sm:$0xff]   ;;  %v828_v33 = vcombine.high %v817_v31, %v817_v31  ;;  %vm401_vm3 = vcmask 916480  }
  0x2e   : > { %v826_v30 = vcombine.high %v361_v28, %v361_v28  ;;  %v915_v34 = vld [vmem:[%s1060_s30 + $0x14] ss:$0 sps:$4 sm:$0xff]   ;;  %v825_v35 = vcombine.low %v361_v28, %v361_v28  ;;  %v827_v36 = vcombine.low %v817_v31, %v817_v31  ;;  %v1127_v39 = vld [vmem:[%s1211_s2] sm:$0xff]  ;;  %v554_v41 = vsel %vm507_vm1, %v837_v22, %v839_v15 }
  0x2f   : > { %v844_v40 = vcombine.high %v1127_v39, %v1127_v39  ;;  %v574_v42 = vsel %vm507_vm1, %v907_v23, %v903_v17  ;;  %v550_v43 = vsel %vm507_vm1, %v836_v24, %v838_v19  ;;  %vm432_vm4 = vcmask 785408  }
  0x30   : > { %v1114_v37 = vsel %vm507_vm1, %v826_v30, %v828_v33  ;;  %v1119_v38 = vsel %vm507_vm1, %v825_v35, %v827_v36  ;;  %vm645_vm5 = vcmask 7168  }
  0x31   : > { %495 = vrot.lane.b32.xlu0 %v903_v17, %s961_s20  ;;  %503 = vrot.lane.b32.xlu1 %v904_v18, %s962_s10 }
  0x32   : > { %845 = vmatprep.mubr.msk.bf16.mxu0 %vm595_vm2, %v844_v40 }
  0x35   : > { %491 = vrot.lane.b32.xlu0 %v838_v19, %s961_s20  ;;  %499 = vrot.lane.b32.xlu1 %v1075_v20, %s962_s10 }
  0x39   : > { %471 = vrot.lane.b32.xlu0 %v1068_v16, %s961_s20  ;;  %473 = vrot.lane.b32.xlu1 %v904_v18, %s961_s20 }
  0x3d   : > { %482 = vrot.lane.b32.xlu0 %v837_v22, %s961_s20  ;;  %484 = vrot.lane.b32.xlu1 %v907_v23, %s961_s20 }
  0x41   : > { %469 = vrot.lane.b32.xlu0 %v1075_v20, %s961_s20  ;;  %480 = vrot.lane.b32.xlu1 %v836_v24, %s961_s20 }
  0x45   : > { %447 = vrot.lane.b32.xlu1 %v909_v26, %s962_s10  ;;  %445 = vrot.lane.b32.xlu0 %v1090_v27, %s962_s10 }
  0x49   : > { %443 = vrot.lane.b32.xlu0 %v1096_v29, %s962_s10  ;;  %428 = vrot.lane.b32.xlu1 %v826_v30, %s962_s10 }
  0x4d   : > { %430 = vrot.lane.b32.xlu0 %v913_v32, %s962_s10  ;;  %437 = vrot.lane.b32.xlu1 %v828_v33, %s962_s10 }
  0x51   : > { %439 = vrot.lane.b32.xlu0 %v915_v34, %s962_s10  ;;  %426 = vrot.lane.b32.xlu1 %v825_v35, %s962_s10 }
  0x55   : > { %435 = vrot.lane.b32.xlu0 %v827_v36, %s962_s10  ;;  %409 = vrot.lane.b32.xlu1 %v828_v33, %s961_s20 }
  0x59   : > { %411 = vrot.lane.b32.xlu0 %v915_v34, %s961_s20  ;;  %420 = vrot.lane.b32.xlu1 %v1090_v27, %s961_s20 }
  0x5d   : > { %422 = vrot.lane.b32.xlu0 %v909_v26, %s961_s20  ;;  %407 = vrot.lane.b32.xlu1 %v827_v36, %s961_s20 }
  0x61   : > { %418 = vrot.lane.b32.xlu0 %v1096_v29, %s961_s20  ;;  %397 = vrot.lane.b32.xlu1 %v826_v30, %s961_s20 }
  0x65   : > { %399 = vrot.lane.b32.xlu0 %v913_v32, %s961_s20  ;;  %395 = vrot.lane.b32.xlu1 %v825_v35, %s961_s20 }
  0x69   : > { %580 = vrot.lane.b32.xlu0 %v554_v41, %s962_s10  ;;  %582 = vrot.lane.b32.xlu1 %v574_v42, %s962_s10 }
  0x6d   : > { %578 = vrot.lane.b32.xlu0 %v550_v43, %s962_s10 }
  0x9f   : > { %v494_v44 = vpop.permute.xlu0 %493  ;;  %v502_v45 = vpop.permute.xlu1 %501 }
  0xa3   : > { %v496_v46 = vpop.permute.xlu0 %495  ;;  %v504_v47 = vpop.permute.xlu1 %503 }
  0xa4   : > { %v498_v48 = vsel %vm401_vm3, %v494_v44, %v496_v46  ;;  %v506_v49 = vsel %vm432_vm4, %v502_v45, %v504_v47 }
  0xa5   : > { %v570_v50 = vsel %vm507_vm1, %v498_v48, %v506_v49 }
  0xa6   : > { %599 = vmatprep.subr.bf16.mxu0 %v570_v50 }
  0xa7   : > { %v492_v51 = vpop.permute.xlu0 %491  ;;  %v500_v52 = vpop.permute.xlu1 %499 }
  0xa8   : > { %v497_v53 = vsel %vm401_vm3, %v492_v51, %v494_v44  ;;  %v505_v54 = vsel %vm432_vm4, %v500_v52, %v502_v45 }
  0xa9   : > { %v566_v55 = vsel %vm507_vm1, %v497_v53, %v505_v54 }
  0xaa   : > { %600 = vmatpush1.bf16.msra.mxu0 %v566_v55 }
  0xab   : > { %v472_v56 = vpop.permute.xlu0 %471  ;;  %v474_v57 = vpop.permute.xlu1 %473 }
  0xac   : > { %v476_v60 = vsel %vm401_vm3, %v472_v56, %v474_v57 }
  0xaf   : > { %v483_v58 = vpop.permute.xlu0 %482  ;;  %v485_v59 = vpop.permute.xlu1 %484 }
  0xb0   : > { %v487_v61 = vsel %vm401_vm3, %v483_v58, %v485_v59  ;;  %v647_v59 = vld [vmem:[%s1214_s5] sm:$0xff] }
  0xb1   : > { %v562_v62 = vsel %vm507_vm1, %v476_v60, %v487_v61 }
  0xb2   : > { %601 = vmatprep.subr.bf16.mxu0 %v562_v62 }
  0xb3   : > { %v470_v63 = vpop.permute.xlu0 %469  ;;  %v481_v0 = vpop.permute.xlu1 %480 }
  0xb4   : > { %v475_v1 = vsel %vm401_vm3, %v470_v63, %v472_v56  ;;  %v486_v2 = vsel %vm401_vm3, %v481_v0, %v483_v58 }
  0xb5   : > { %v558_v3 = vsel %vm507_vm1, %v475_v1, %v486_v2 }
  0xb6   : > { %602 = vmatpush1.bf16.msra.mxu0 %v558_v3 }
  0xb7   : > { %v448_v4 = vpop.permute.xlu1 %447  ;;  %v446_v5 = vpop.permute.xlu0 %445  ;;  %603 = vmatprep.subr.bf16.mxu0 %v554_v41 }
  0xb8   : > { %v450_v6 = vsel %vm432_vm4, %v446_v5, %v448_v4 }
  0xb9   : > { %v546_v7 = vsel %vm507_vm1, %v450_v6, %v1068_v16 }
  0xba   : > { %604 = vmatpush1.bf16.msra.mxu0 %v550_v43 }
  0xbb   : > { %605 = vmatprep.subr.bf16.mxu0 %v546_v7  ;;  %v444_v8 = vpop.permute.xlu0 %443  ;;  %v429_v9 = vpop.permute.xlu1 %428 }
  0xbc   : > { %v449_v10 = vsel %vm432_vm4, %v444_v8, %v446_v5 }
  0xbd   : > { %v542_v11 = vsel %vm507_vm1, %v449_v10, %v1075_v20 }
  0xbe   : > { %606 = vmatpush1.bf16.msra.mxu0 %v542_v11 }
  0xbf   : > { %v431_v12 = vpop.permute.xlu0 %430  ;;  %v438_v13 = vpop.permute.xlu1 %437 }
  0xc0   : > { %v434_v17 = vsel %vm432_vm4, %v429_v9, %v431_v12 }
  0xc3   : > { %v440_v14 = vpop.permute.xlu0 %439  ;;  %v427_v15 = vpop.permute.xlu1 %426 }
  0xc4   : > { %v442_v18 = vsel %vm432_vm4, %v438_v13, %v440_v14  ;;  %v433_v22 = vsel %vm432_vm4, %v427_v15, %v429_v9 }
  0xc5   : > { %v538_v16 = vsel %vm507_vm1, %v434_v17, %v442_v18 }
  0xc6   : > { %607 = vmatprep.subr.bf16.mxu0 %v538_v16 }
  0xc7   : > { %v436_v19 = vpop.permute.xlu0 %435  ;;  %v410_v21 = vpop.permute.xlu1 %409 }
  0xc8   : > { %v441_v23 = vsel %vm432_vm4, %v436_v19, %v438_v13 }
  0xc9   : > { %v534_v20 = vsel %vm507_vm1, %v433_v22, %v441_v23 }
  0xca   : > { %608 = vmatpush1.bf16.msra.mxu0 %v534_v20 }
  0xcb   : > { %v412_v24 = vpop.permute.xlu0 %411  ;;  %v421_v25 = vpop.permute.xlu1 %420 }
  0xcc   : > { %v414_v30 = vsel %vm401_vm3, %v410_v21, %v412_v24 }
  0xcf   : > { %v423_v26 = vpop.permute.xlu0 %422  ;;  %v408_v28 = vpop.permute.xlu1 %407 }
  0xd0   : > { %v425_v31 = vsel %vm401_vm3, %v421_v25, %v423_v26  ;;  %v413_v35 = vsel %vm401_vm3, %v408_v28, %v410_v21 }
  0xd1   : > { %v530_v32 = vsel %vm507_vm1, %v414_v30, %v425_v31 }
  0xd2   : > { %609 = vmatprep.subr.bf16.mxu0 %v530_v32 }
  0xd3   : > { %v419_v33 = vpop.permute.xlu0 %418  ;;  %v398_v34 = vpop.permute.xlu1 %397 }
  0xd4   : > { %v424_v36 = vsel %vm401_vm3, %v419_v33, %v421_v25 }
  0xd5   : > { %v526_v40 = vsel %vm507_vm1, %v413_v35, %v424_v36 }
  0xd6   : > { %610 = vmatpush1.bf16.msra.mxu0 %v526_v40 }
  0xd7   : > { %v400_v41 = vpop.permute.xlu0 %399  ;;  %v396_v42 = vpop.permute.xlu1 %395 }
  0xd8   : > { %v403_v43 = vsel %vm401_vm3, %v398_v34, %v400_v41  ;;  %v402_v44 = vsel %vm401_vm3, %v396_v42, %v398_v34 }
  0xd9   : > { %v522_v45 = vsel %vm507_vm1, %v1090_v27, %v403_v43  ;;  %v518_v46 = vsel %vm507_vm1, %v1096_v29, %v402_v44  ;;  %v843_v27 = vcombine.low %v1127_v39, %v1127_v39 }
  0xda   : > { %611 = vmatprep.subr.bf16.mxu0 %v522_v45 }
  0xdb   : > { %v581_v47 = vpop.permute.xlu0 %580  ;;  %612 = vmatpush1.bf16.msra.mxu0 %v518_v46  ;;  %v583_v48 = vpop.permute.xlu1 %582 }
  0xdc   : > { %613 = vmatprep.subr.bf16.mxu0 %v1114_v37  ;;  %v585_v49 = vsel %vm432_vm4, %v581_v47, %v583_v48 }
  0xdf   : > { %v579_v50 = vpop.permute.xlu0 %578  ;;  %614 = vmatpush1.bf16.msra.mxu0 %v1119_v38  ;;  %v640_v38 = vld [vmem:[%s1213_s4] sm:$0xff] }
  0xe0   : > { %629 = vmatprep.subr.bf16.mxu0 %v585_v49  ;;  %v584_v51 = vsel %vm432_vm4, %v579_v50, %v581_v47 }
  0xe3   : > { %630 = vmatpush2.bf16.msra.mxu0 %v584_v51 }
  0xe6   : > { %632 = vmatmul.mubr.bf16.vlgmr.msra.gmra.mxu0 %v843_v27 }
 0x1a6   : > { %v633_v29 = vpop.f32.mrf.mxu0 }
 0x1a7   : > { %v648_v55 = vmul.f32 %v633_v29, %v633_v29 }
 0x1a8   : > { %v635_v52 = vpop.f32.mrf.mxu0 }
 0x1a9   : > { %v851_v53 = vpack.c.bf16 %v635_v52, %v633_v29  ;;  %v641_v54 = vadd.f32 %v635_v52, %v633_v29  ;;  %v649_v37 = vmul.f32 %v635_v52, %v635_v52 }
 0x1aa   : > { %v637_v56 = vpop.f32.mrf.mxu0 }
 0x1ab   : > { %663 = vst [vmem:[%s1058_s29] sm:$0xff] %v851_v53  ;;  %642 = vadd.xlane.f32.xlu1 %v641_v54  ;;  %v650_v57 = vadd.f32 %v649_v37, %v648_v55 }
 0x1ac   : > { %v638_v58 = vpop.f32.mrf.mxu0 }
 0x1ad   : > { %651 = vadd.xlane.f32.xlu0 %v650_v57 }
 0x234   : > { %v643_v39 = vpop.xlane.xlu1 %642 }
 0x235   : > { %v644_v60 = vadd.f32 %v643_v39, %v640_v38 }
 0x236   : > { %v652_v61 = vpop.xlane.xlu0 %651 }
 0x237   : > { %646 = vst.msk [vmem:[%s1213_s4] sm:$0xff] %vm645_vm5, %v644_v60  ;;  %v653_v62 = vadd.f32 %v652_v61, %v647_v59 }
 0x239   : > { %654 = vst.msk [vmem:[%s1214_s5] sm:$0xff] %vm645_vm5, %v653_v62 }
 0x23a PF: > { %s16_s22 = sadd.s32 1, %s958_s22   ;;  %s1216_s18 = smov %s946_s19 }
 0x23b   : > { %p13_p11 = scmp.ge.s32.totalorder %s16_s22, 4   ;;  %s1217_s19 = smov %s1032_s27 }
 0x23c   : > { %s1218_s20 = smov %s954_s21  ;;  %s1219_s21 = smov %s1221_s23 }
 0x23d   :  { %15 = sbr.rel (!%p13_p11) target bundleno = 3 (0x3), region = 163 }

// kernel: _forward.16
= control target key start
LH: loop header
LB: loop body
LE: loop exit
PB: predicated region body
PF: predicated region fallthrough
CT: control target
= control target key end

     0   :  { %s423_s12 = smov 0   ;;  %s425_s13 = smov 0   ;;  %s468_s0 = inlined_call_operand.vmem [shape: bf16[2,16,16], index: 0, kind: input, shape index: {}]   ;;  %s469_s1 = inlined_call_operand.vmem [shape: f32[16,1], index: 1, kind: input, shape index: {}]   ;;  %s470_s2 = inlined_call_operand.vmem [shape: f32[16,1], index: 2, kind: input, shape index: {}]   ;;  %s471_s3 = inlined_call_operand.vmem [shape: bf16[2,16,16], index: 3, kind: output, shape index: {}]  }
   0x1   :  { %s427_s14 = smov 0  }
   0x2 LB: > { %s25_s15 = sadd.s32 1, %s396_s13  ;;  %p334_p0 = scmp.ge.s32.totalorder %s400_s14, 1  ;;  %s400_s14 = sphi %s427_s14, %s13_s14   ;;  %s396_s13 = sphi %s425_s13, %s473_s13   ;;  %s392_s12 = sphi %s423_s12, %s472_s12  }
   0x3   : > { %p27_p1 = scmp.ge.s32.totalorder %s25_s15, 2  ;;  %p156_p2 = scmp.lt.s32.totalorder %s400_s14, 3 }
   0x5   : > { %s475_s15 = smov (%p27_p1, %s25_s15), 0  ;;  %p157_p3 = pnand %p334_p0, %p156_p2 }
   0x6   : > { %p186_p4 = scmp.lt.s32.totalorder (!%p157_p3), %s392_s12, 1 }
   0x7   : > { %160 = sbr.rel (%p157_p3) target bundleno = 151 (0x97), region = 32 }
   0xc   : > { %v220_v0 = vld [vmem:[%s470_s2] sm:$0xff]  ;;  %v402_v2 = vmov 0   ;;  %v221_v3 = vld [vmem:[%s470_s2 + $0x8] sm:$0xff]  ;;  %s477_s12 = smov (!%p186_p4, %s392_s12), 1  ;;  %vm244_vm0 = vcmask 125952  }
   0xd   : > { %v206_v1 = vld [vmem:[%s469_s1] sm:$0xff]  ;;  %377 = vset.pattern.permute.xlu1 %v402_v2  ;;  %376 = vset.pattern.permute.xlu0 %v402_v2  ;;  %v207_v4 = vld [vmem:[%s469_s1 + $0x8] sm:$0xff]  ;;  %s343_s24 = sshll.u32 %s477_s12, 3 }
   0xe   : > { %224 = vperm.xlu1 %377, %v220_v0   ;;  %210 = vperm.xlu0 %376, %v206_v1   ;;  %s193_s27 = scalar_lea.vmem %s468_s0, %s343_s24  ;;  %s201_s30 = scalar_lea.vmem %s471_s3, %s343_s24 }
   0xf   : > { %v348_v5 = vld [vmem:[%s193_s27] sm:$0xff]  }
  0x10   : > { %v349_v6 = vunpack.c.l.bf16 %v348_v5  ;;  %v350_v10 = vunpack.c.h.bf16 %v348_v5 }
  0x12   : > { %229 = vperm.xlu1 %377, %v221_v3   ;;  %215 = vperm.xlu0 %376, %v207_v4  }
  0x89   : > { %v225_v7 = vpop.permute.xlu1 %224  ;;  %v211_v8 = vpop.permute.xlu0 %210 }
  0x8a   : > { %v218_v9 = vmul.f32 %v349_v6, %v211_v8 }
  0x8c   : > { %v232_v11 = vadd.f32 %v225_v7, %v218_v9 }
  0x8d   : > { %v216_v12 = vpop.permute.xlu0 %215  ;;  %v230_v15 = vpop.permute.xlu1 %229 }
  0x8e   : > { %v234_v13 = vmax.f32 %v232_v11, 0.0  ;;  %v219_v14 = vmul.f32 %v350_v10, %v216_v12 }
  0x90   : > { %v345_v16 = vpack.c.bf16 %v234_v13, %v234_v13  ;;  %v233_v17 = vadd.f32 %v230_v15, %v219_v14 }
  0x92   : > { %245 = vst.msk [vmem:[%s201_s30] sm:$0xf] %vm244_vm0, %v345_v16  ;;  %v235_v18 = vmax.f32 %v233_v17, 0.0 }
  0x94   : > { %v346_v19 = vpack.c.bf16 %v235_v18, %v235_v18 }
  0x96   : > { %246 = vst.msk [vmem:[%s201_s30 + $0x4] sm:$0xf] %vm244_vm0, %v346_v19 }
  0x97 PF: > { %s13_s14 = sadd.s32 1, %s400_s14   ;;  %s472_s12 = smov %s396_s13 }
  0x98   : > { %p10_p5 = scmp.ge.s32.totalorder %s13_s14, 4   ;;  %s473_s13 = smov %s475_s15 }
  0x9a   :  { %12 = sbr.rel (!%p10_p5) target bundleno = 2 (0x2), region = 62 }

// kernel: _forward.15
= control target key start
LH: loop header
LB: loop body
LE: loop exit
PB: predicated region body
PF: predicated region fallthrough
CT: control target
= control target key end

     0   :  { %s554_s15 = smov 0   ;;  %s556_s16 = smov 0   ;;  %s634_s0 = inlined_call_operand.vmem [shape: bf16[2,32,16], index: 0, kind: input, shape index: {}]   ;;  %s635_s1 = inlined_call_operand.vmem [shape: bf16[16,32], index: 1, kind: input, shape index: {}]   ;;  %s636_s2 = inlined_call_operand.vmem [shape: bf16[2,16,16], index: 2, kind: output, shape index: {0}]   ;;  %s637_s3 = inlined_call_operand.vmem [shape: f32[16,1], index: 3, kind: output, shape index: {1}]   ;;  %s638_s4 = inlined_call_operand.vmem [shape: f32[16,1], index: 4, kind: output, shape index: {2}]  }
   0x1   :  { %s558_s17 = smov 0  }
   0x2 LB: > { %s27_s18 = sadd.s32 1, %s520_s16  ;;  %p442_p0 = scmp.ge.s32.totalorder %s524_s17, 1  ;;  %s524_s17 = sphi %s558_s17, %s15_s17   ;;  %s520_s16 = sphi %s556_s16, %s640_s16   ;;  %s516_s15 = sphi %s554_s15, %s639_s15  }
   0x3   : > { %p29_p1 = scmp.ge.s32.totalorder %s27_s18, 2  ;;  %p176_p2 = scmp.lt.s32.totalorder %s524_s17, 3 }
   0x5   : > { %s642_s18 = smov (%p29_p1, %s27_s18), 0  ;;  %p177_p3 = pnand %p442_p0, %p176_p2 }
   0x6   : > { %p208_p4 = scmp.lt.s32.totalorder (!%p177_p3), %s516_s15, 1  ;;  %p225_p5 = scmp.eq.s32.totalorder (!%p177_p3), %s516_s15, 0 }
   0x7   : > { %180 = sbr.rel (%p177_p3) target bundleno = 367 (0x16f), region = 28 }
   0xc   : > { %s644_s15 = smov (!%p208_p4, %s516_s15), 1  ;;  %230 = sbr.rel (!%p225_p5) target bundleno = 17 (0x11), region = 32  ;;  %vm231_vm0 = vcmask (%p225_p5), 7168   ;;  %v526_v0 = vmov (%p225_p5), 0.0  }
   0xd   : > { %s456_s19 = sshll.u32 %s644_s15, 4  ;;  %s457_s20 = sshll.u32 %s644_s15, 3  ;;  %232 = vst.msk [vmem:[%s637_s3] sm:$0xff] (%p225_p5), %vm231_vm0, %v526_v0  ;;  %233 = vst.msk [vmem:[%s637_s3 + $0x8] sm:$0xff] (%p225_p5), %vm231_vm0, %v526_v0 }
   0xe   : > { %s215_s23 = scalar_lea.vmem %s634_s0, %s456_s19  ;;  %s578_s26 = scalar_lea.vmem %s636_s2, %s457_s20  ;;  %234 = vst.msk [vmem:[%s638_s4] sm:$0xff] (%p225_p5), %vm231_vm0, %v526_v0  ;;  %235 = vst.msk [vmem:[%s638_s4 + $0x8] sm:$0xff] (%p225_p5), %vm231_vm0, %v526_v0 }
  0x11 PF: > { %v499_v1 = vld [vmem:[%s215_s23 + $0x8] sm:$0xff]   ;;  %v527_v2 = vmov 0.0   ;;  %v500_v3 = vld [vmem:[%s215_s23] sm:$0xff]   ;;  %vm528_vm1 = vmmov 0   ;;  %vm259_vm2 = vcmask 261120   ;;  %vm306_vm3 = vcmask 130048  }
  0x12   : > { %464 = vmatprep.subr.bf16.mxu0 %v527_v2  ;;  %468 = vmatprep.mubr.msk.bf16.mxu0 %vm528_vm1, %v527_v2  ;;  %v501_v4 = vld [vmem:[%s635_s1] sm:$0xff]   ;;  %vm340_vm4 = vcmask 125952   ;;  %vm315_vm5 = vcmask 7168  }
  0x13   : > { %465 = vmatpush3.bf16.msra.mxu0 %v499_v1 }
  0x14   : > { %466 = vmatprep.subr.bf16.mxu0 %v527_v2  ;;  %v304_v17 = vld [vmem:[%s637_s3] sm:$0xff]  ;;  %v305_v22 = vld [vmem:[%s637_s3 + $0x8] sm:$0xff] }
  0x15   : > { %v318_v19 = vld [vmem:[%s638_s4] sm:$0xff]  ;;  %v319_v25 = vld [vmem:[%s638_s4 + $0x8] sm:$0xff] }
  0x17   : > { %467 = vmatpush3.bf16.msra.mxu0 %v500_v3 }
  0x1a   : > { %469 = vmatmul.mubr.msk.bf16.vlgmr.msra.gmra.mxu0 %vm259_vm2, %v501_v4 }
  0xda   : > { %v297_v5 = vpop.f32.mrf.mxu0 }
  0xdb   : > { %v459_v6 = vpack.c.bf16 %v297_v5, %v297_v5  ;;  %v307_v7 = vsel %vm306_vm3, %v297_v5, 0.0  ;;  %v320_v8 = vmul.f32 %v297_v5, %v297_v5 }
  0xdc   : > { %308 = vadd.xlane.f32.xlu0 %v307_v7  ;;  %v470_v9 = vpop.f32.mrf.mxu0 }
  0xdd   : > { %341 = vst.msk [vmem:[%s578_s26] sm:$0xf] %vm340_vm4, %v459_v6  ;;  %v322_v10 = vsel %vm306_vm3, %v320_v8, 0.0 }
  0xde   : > { %323 = vadd.xlane.f32.xlu1 %v322_v10  ;;  %v300_v11 = vpop.f32.mrf.mxu0 }
  0xdf   : > { %v460_v12 = vpack.c.bf16 %v300_v11, %v300_v11  ;;  %v310_v13 = vsel %vm306_vm3, %v300_v11, 0.0  ;;  %v321_v14 = vmul.f32 %v300_v11, %v300_v11 }
  0xe0   : > { %311 = vadd.xlane.f32.xlu0 %v310_v13  ;;  %v471_v15 = vpop.f32.mrf.mxu0 }
  0xe1   : > { %342 = vst.msk [vmem:[%s578_s26 + $0x4] sm:$0xf] %vm340_vm4, %v460_v12  ;;  %v325_v16 = vsel %vm306_vm3, %v321_v14, 0.0 }
  0xe2   : > { %326 = vadd.xlane.f32.xlu1 %v325_v16 }
 0x165   : > { %v309_v18 = vpop.xlane.xlu0 %308 }
 0x166   : > { %v313_v20 = vadd.f32 %v309_v18, %v304_v17 }
 0x167   : > { %v324_v21 = vpop.xlane.xlu1 %323 }
 0x168   : > { %316 = vst.msk [vmem:[%s637_s3] sm:$0xff] %vm315_vm5, %v313_v20  ;;  %v328_v23 = vadd.f32 %v324_v21, %v318_v19 }
 0x169   : > { %v312_v24 = vpop.xlane.xlu0 %311 }
 0x16a   : > { %330 = vst.msk [vmem:[%s638_s4] sm:$0xff] %vm315_vm5, %v328_v23  ;;  %v314_v26 = vadd.f32 %v312_v24, %v305_v22 }
 0x16b   : > { %v327_v27 = vpop.xlane.xlu1 %326 }
 0x16c   : > { %317 = vst.msk [vmem:[%s637_s3 + $0x8] sm:$0xff] %vm315_vm5, %v314_v26  ;;  %v329_v28 = vadd.f32 %v327_v27, %v319_v25 }
 0x16e   : > { %331 = vst.msk [vmem:[%s638_s4 + $0x8] sm:$0xff] %vm315_vm5, %v329_v28 }
 0x16f PF: > { %s15_s17 = sadd.s32 1, %s524_s17   ;;  %s639_s15 = smov %s520_s16 }
 0x170   : > { %p12_p6 = scmp.ge.s32.totalorder %s15_s17, 4   ;;  %s640_s16 = smov %s642_s18 }
 0x172   :  { %14 = sbr.rel (!%p12_p6) target bundleno = 2 (0x2), region = 78 }

// kernel: _forward.18
= control target key start
LH: loop header
LB: loop body
LE: loop exit
PB: predicated region body
PF: predicated region fallthrough
CT: control target
= control target key end

     0   :  { %s965_s18 = smov 0   ;;  %s967_s19 = smov 0   ;;  %s1098_s0 = inlined_call_operand.vmem [shape: bf16[3,2,1,16,80], index: 0, kind: input, shape index: {}]   ;;  %s1099_s1 = inlined_call_operand.vmem [shape: bf16[3,2,1,16,80], index: 1, kind: input, shape index: {}]   ;;  %s1100_s2 = inlined_call_operand.vmem [shape: bf16[16,288], index: 2, kind: input, shape index: {}]   ;;  %s1101_s3 = inlined_call_operand.vmem [shape: bf16[2,16,64], index: 3, kind: output, shape index: {0}]   ;;  %s1102_s4 = inlined_call_operand.vmem [shape: f32[16,1], index: 4, kind: output, shape index: {1}]   ;;  %s1103_s5 = inlined_call_operand.vmem [shape: f32[16,1], index: 5, kind: output, shape index: {2}]  }
   0x1   :  { %s969_s20 = smov 0   ;;  %s971_s21 = smov 0  }
   0x2   :  { %s973_s22 = smov 0  }
   0x3 LB: > { %s28_s23 = sadd.s32 1, %s924_s21  ;;  %p44_p1 = scmp.ne.s32.totalorder %s916_s19, %s912_s18  ;;  %s928_s22 = sphi %s973_s22, %s16_s22   ;;  %s924_s21 = sphi %s971_s21, %s1108_s21   ;;  %s920_s20 = sphi %s969_s20, %s1107_s20   ;;  %s916_s19 = sphi %s967_s19, %s1106_s19   ;;  %s912_s18 = sphi %s965_s18, %s1105_s18  }
   0x4   : > { %p30_p0 = scmp.ge.s32.totalorder %s28_s23, 2  ;;  %p45_p2 = scmp.eq.s32.totalorder %s928_s22, 0 }
   0x5   : > { %s37_s26 = sadd.s32 1, %s916_s19  ;;  %p762_p5 = scmp.ge.s32.totalorder %s928_s22, 2 }
   0x6   : > { %s1110_s23 = smov (%p30_p0, %s28_s23), 0  ;;  %p996_p3 = por %p45_p2, %p44_p1 }
   0x7   : > { %s32_s25 = ssub.s32 %s924_s21, %s1110_s23  ;;  %192 = sbr.rel (%p762_p5) target bundleno = 24 (0x18), region = 20 }
   0x8   : > { %p35_p4 = scmp.eq.s32.totalorder %s32_s25, 0 }
   0xa   : > { %s1004_s27 = scalar_select %p35_p4, %s916_s19, %s37_s26  }
   0xc   : > { %195 = sbr.rel (!%p996_p3) target bundleno = 18 (0x12), region = 24  ;;  %s197_s28 = sand.u32 (%p996_p3), 1, %s916_s19  }
   0xd   : > { %s793_s29 = sshll.u32 (%p996_p3), %s924_s21, 3  ;;  %s832_s30 = smul.u32 (%p996_p3), 24, %s197_s28 }
   0xe   : > { %s204_s8 = scalar_lea.vmem (%p996_p3), %s1098_s0, %s793_s29 }
   0xf   : > { %v221_v0 = vld [vmem:[%s204_s8] sm:$0xff] (%p996_p3)   ;;  %v225_v1 = vld [vmem:[%s204_s8 + $0x10] sm:$0xff] (%p996_p3)   ;;  %s199_s9 = scalar_lea.vmem (%p996_p3), [#allocation2], %s832_s30 }
  0x10   : > { %v229_v2 = vld [vmem:[%s204_s8 + $0x20] sm:$0xff] (%p996_p3)   ;;  %222 = vst [vmem:[%s199_s9] sm:$0xff] (%p996_p3), %v221_v0   ;;  %226 = vst [vmem:[%s199_s9 + $0x8] sm:$0xff] (%p996_p3), %v225_v1  }
  0x11   : > { %230 = vst [vmem:[%s199_s9 + $0x10] sm:$0xff] %v229_v2  }
  0x12 PF: > { %268 = sbr.rel (!%p996_p3) target bundleno = 24 (0x18), region = 65  ;;  %s270_s10 = sand.u32 (%p996_p3), 1, %s916_s19  }
  0x13   : > { %s794_s11 = sshll.u32 (%p996_p3), %s924_s21, 3  ;;  %s833_s12 = smul.u32 (%p996_p3), 24, %s270_s10 }
  0x14   : > { %s277_s15 = scalar_lea.vmem (%p996_p3), %s1099_s1, %s794_s11 }
  0x15   : > { %v294_v3 = vld [vmem:[%s277_s15] sm:$0xff] (%p996_p3)   ;;  %v298_v4 = vld [vmem:[%s277_s15 + $0x10] sm:$0xff] (%p996_p3)   ;;  %s272_s16 = scalar_lea.vmem (%p996_p3), [#allocation3], %s833_s12 }
  0x16   : > { %v302_v5 = vld [vmem:[%s277_s15 + $0x20] sm:$0xff] (%p996_p3)   ;;  %295 = vst [vmem:[%s272_s16] sm:$0xff] (%p996_p3), %v294_v3   ;;  %299 = vst [vmem:[%s272_s16 + $0x8] sm:$0xff] (%p996_p3), %v298_v4  }
  0x17   : > { %303 = vst [vmem:[%s272_s16 + $0x10] sm:$0xff] %v302_v5  }
  0x18 PF: > { %p767_p6 = scmp.ge.s32.totalorder %s928_s22, 1  ;;  %p340_p7 = scmp.lt.s32.totalorder %s928_s22, 3 }
  0x1a   : > { %p341_p8 = pnand %p767_p6, %p340_p7 }
  0x1b   : > { %s347_s17 = sand.u32 (!%p341_p8), 1, %s912_s18   ;;  %p388_p9 = scmp.lt.s32.totalorder (!%p341_p8), %s920_s20, 1 }
  0x1c   : > { %344 = sbr.rel (%p341_p8) target bundleno = 538 (0x21a), region = 106  ;;  %p397_p10 = scmp.eq.s32.totalorder (!%p341_p8), %s920_s20, 0 }
  0x1d   : > { %s834_s24 = smul.u32 (!%p341_p8), 24, %s347_s17 }
  0x1f   : > { %s349_s30 = scalar_lea.vmem (!%p341_p8), [#allocation2], %s834_s24  ;;  %s356_s6 = scalar_lea.vmem (!%p341_p8), [#allocation3], %s834_s24 }
  0x21   : > { %s1112_s20 = smov (!%p388_p9, %s920_s20), 1  ;;  %402 = sbr.rel (!%p397_p10) target bundleno = 38 (0x26), region = 118  ;;  %vm403_vm0 = vcmask (%p397_p10), 7168   ;;  %v930_v6 = vmov (%p397_p10), 0.0  }
  0x22   : > { %s795_s25 = sshll.u32 %s1112_s20, 3  ;;  %404 = vst.msk [vmem:[%s1102_s4] sm:$0xff] (%p397_p10), %vm403_vm0, %v930_v6  ;;  %405 = vst.msk [vmem:[%s1102_s4 + $0x8] sm:$0xff] (%p397_p10), %vm403_vm0, %v930_v6 }
  0x23   : > { %s1030_s29 = scalar_lea.vmem %s1101_s3, %s795_s25  ;;  %406 = vst.msk [vmem:[%s1103_s5] sm:$0xff] (%p397_p10), %vm403_vm0, %v930_v6  ;;  %407 = vst.msk [vmem:[%s1103_s5 + $0x8] sm:$0xff] (%p397_p10), %vm403_vm0, %v930_v6 }
  0x26 PF: > { %v880_v7 = vld [vmem:[%s356_s6] sm:$0xff]   ;;  %v881_v8 = vld [vmem:[%s356_s6 + $0x10] sm:$0xff]   ;;  %s931_s13 = smov 112   ;;  %v882_v9 = vld [vmem:[%s349_s30 + $0x8] sm:$0xff]   ;;  %s932_s14 = smov 120   ;;  %v933_v13 = vmov 0.0  }
  0x27   : > { %487 = vrot.lane.b32.xlu0 %v880_v7, %s931_s13  ;;  %484 = vrot.lane.b32.xlu1 %v881_v8, %s932_s14  ;;  %v883_v10 = vld [vmem:[%s349_s30] sm:$0xff]   ;;  %v884_v11 = vld [vmem:[%s356_s6 + $0x8] sm:$0xff]   ;;  %vm934_vm1 = vmmov 0   ;;  %vm515_vm2 = vcmask 261120   ;;  %vm603_vm3 = vcmask 523264   ;;  %vm637_vm4 = vcmask 519168  }
  0x28   : > { %v885_v12 = vld [vmem:[%s349_s30 + $0x10] sm:$0xff]   ;;  %824 = vmatprep.subr.bf16.mxu1 %v933_v13  ;;  %828 = vmatprep.mubr.msk.bf16.mxu1 %vm934_vm1, %v933_v13  ;;  %vm612_vm5 = vcmask 7168  }
  0x29   : > { %v889_v14 = vld [vmem:[%s1100_s2 + $0x4] ss:$12 sps:$4 sm:$0xff]   ;;  %v886_v27 = vld [vmem:[%s1100_s2 + $0x8] ss:$12 sps:$4 sm:$0xff]   ;;  %v887_v28 = vld [vmem:[%s1100_s2] ss:$12 sps:$4 sm:$0xff]  }
  0x2a   : > { %551 = vmatprep.mubr.bf16.mxu0 %v889_v14  ;;  %v601_v49 = vld [vmem:[%s1102_s4] sm:$0xff]  ;;  %v602_v53 = vld [vmem:[%s1102_s4 + $0x8] sm:$0xff] }
  0x2b   : > { %454 = vrot.lane.b32.xlu0 %v882_v9, %s931_s13  ;;  %451 = vrot.lane.b32.xlu1 %v883_v10, %s931_s13  ;;  %v615_v52 = vld [vmem:[%s1103_s5] sm:$0xff]  ;;  %v616_v58 = vld [vmem:[%s1103_s5 + $0x8] sm:$0xff] }
  0x2f   : > { %481 = vrot.lane.b32.xlu0 %v884_v11, %s932_s14  ;;  %448 = vrot.lane.b32.xlu1 %v885_v12, %s932_s14 }
  0x33   : > { %478 = vrot.lane.b32.xlu0 %v880_v7, %s932_s14  ;;  %445 = vrot.lane.b32.xlu1 %v882_v9, %s932_s14 }
  0x37   : > { %442 = vrot.lane.b32.xlu0 %v883_v10, %s932_s14  ;;  %457 = vrot.lane.b32.xlu1 %v885_v12, %s931_s13 }
  0x3b   : > { %492 = vrot.lane.b32.xlu0 %v881_v8, %s931_s13  ;;  %490 = vrot.lane.b32.xlu1 %v884_v11, %s931_s13 }
  0x99   : > { %v488_v15 = vpop.permute.xlu0 %487  ;;  %v485_v16 = vpop.permute.xlu1 %484 }
  0x9a   : > { %799 = vmatprep.subr.bf16.mxu0 %v488_v15 }
  0x9d   : > { %v455_v17 = vpop.permute.xlu0 %454  ;;  %v452_v18 = vpop.permute.xlu1 %451 }
  0x9e   : > { %800 = vmatpush3.bf16.msra.mxu0 %v455_v17 }
  0x9f   : > { %801 = vmatprep.subr.bf16.mxu0 %v485_v16 }
  0xa1   : > { %v482_v19 = vpop.permute.xlu0 %481  ;;  %v449_v20 = vpop.permute.xlu1 %448 }
  0xa2   : > { %802 = vmatpush3.bf16.msra.mxu0 %v452_v18 }
  0xa3   : > { %803 = vmatprep.subr.bf16.mxu0 %v482_v19 }
  0xa5   : > { %v479_v21 = vpop.permute.xlu0 %478  ;;  %v446_v22 = vpop.permute.xlu1 %445 }
  0xa6   : > { %804 = vmatpush3.bf16.msra.mxu0 %v449_v20 }
  0xa7   : > { %805 = vmatprep.subr.bf16.mxu0 %v479_v21 }
  0xa9   : > { %v443_v23 = vpop.permute.xlu0 %442  ;;  %v458_v24 = vpop.permute.xlu1 %457 }
  0xaa   : > { %806 = vmatpush3.bf16.msra.mxu0 %v446_v22 }
  0xab   : > { %807 = vmatprep.subr.bf16.mxu0 %v881_v8 }
  0xad   : > { %v493_v25 = vpop.permute.xlu0 %492  ;;  %v491_v26 = vpop.permute.xlu1 %490 }
  0xae   : > { %808 = vmatpush3.bf16.msra.mxu0 %v443_v23  ;;  %825 = vmatpush3.bf16.msra.mxu1 %v493_v25 }
  0xaf   : > { %809 = vmatprep.subr.bf16.mxu0 %v884_v11  ;;  %826 = vmatprep.subr.bf16.mxu1 %v933_v13 }
  0xb2   : > { %810 = vmatpush3.bf16.msra.mxu0 %v885_v12  ;;  %827 = vmatpush3.bf16.msra.mxu1 %v491_v26 }
  0xb3   : > { %811 = vmatprep.subr.bf16.mxu0 %v880_v7 }
  0xb5   : > { %829 = vmatmul.mubr.msk.bf16.vlgmr.msra.gmra.mxu1 %vm515_vm2, %v886_v27 }
  0xb6   : > { %812 = vmatpush3.bf16.msra.mxu0 %v882_v9 }
  0xb7   : > { %813 = vmatprep.subr.bf16.mxu0 %v458_v24 }
  0xba   : > { %814 = vmatpush3.bf16.msra.mxu0 %v883_v10 }
  0xbd   : > { %552 = vmatmul.mubr.bf16.vlgmr.msra.gmra.mxu0 %v887_v28 }
 0x175   : > { %v594_v29 = vpop.f32.mrf.mxu1 }
 0x177   : > { %v830_v30 = vpop.f32.mrf.mxu1 }
 0x179   : > { %v597_v31 = vpop.f32.mrf.mxu1 }
 0x17b   : > { %v831_v32 = vpop.f32.mrf.mxu1 }
 0x17d   : > { %v815_v33 = vpop.f32.mrf.mxu0 }
 0x17f   : > { %v816_v34 = vpop.f32.mrf.mxu0 }
 0x180   : > { %v817_v35 = vadd.f32 %v816_v34, %v815_v33 }
 0x181   : > { %v818_v36 = vpop.f32.mrf.mxu0 }
 0x182   : > { %v595_v37 = vadd.f32 %v817_v35, %v594_v29 }
 0x183   : > { %v819_v38 = vpop.f32.mrf.mxu0 }
 0x184   : > { %v797_v39 = vpack.c.bf16 %v595_v37, %v595_v37  ;;  %v820_v40 = vadd.f32 %v819_v38, %v818_v36  ;;  %v604_v41 = vsel %vm603_vm3, %v595_v37, 0.0  ;;  %v617_v42 = vmul.f32 %v595_v37, %v595_v37 }
 0x185   : > { %605 = vadd.xlane.f32.xlu0 %v604_v41 }
 0x186   : > { %638 = vst.msk [vmem:[%s1030_s29] sm:$0xf] %vm637_vm4, %v797_v39  ;;  %v598_v43 = vadd.f32 %v820_v40, %v597_v31  ;;  %v619_v45 = vsel %vm603_vm3, %v617_v42, 0.0 }
 0x188   : > { %v798_v44 = vpack.c.bf16 %v598_v43, %v598_v43  ;;  %v607_v46 = vsel %vm603_vm3, %v598_v43, 0.0  ;;  %v618_v47 = vmul.f32 %v598_v43, %v598_v43 }
 0x189   : > { %620 = vadd.xlane.f32.xlu0 %v619_v45  ;;  %608 = vadd.xlane.f32.xlu1 %v607_v46 }
 0x18a   : > { %639 = vst.msk [vmem:[%s1030_s29 + $0x4] sm:$0xf] %vm637_vm4, %v798_v44  ;;  %v622_v48 = vsel %vm603_vm3, %v618_v47, 0.0 }
 0x18d   : > { %623 = vadd.xlane.f32.xlu0 %v622_v48 }
 0x20e   : > { %v606_v50 = vpop.xlane.xlu0 %605 }
 0x20f   : > { %v610_v51 = vadd.f32 %v606_v50, %v601_v49 }
 0x211   : > { %613 = vst.msk [vmem:[%s1102_s4] sm:$0xff] %vm612_vm5, %v610_v51 }
 0x212   : > { %v621_v54 = vpop.xlane.xlu0 %620  ;;  %v609_v55 = vpop.xlane.xlu1 %608 }
 0x213   : > { %v625_v56 = vadd.f32 %v621_v54, %v615_v52  ;;  %v611_v57 = vadd.f32 %v609_v55, %v602_v53 }
 0x215   : > { %627 = vst.msk [vmem:[%s1103_s5] sm:$0xff] %vm612_vm5, %v625_v56  ;;  %614 = vst.msk [vmem:[%s1102_s4 + $0x8] sm:$0xff] %vm612_vm5, %v611_v57 }
 0x216   : > { %v624_v59 = vpop.xlane.xlu0 %623 }
 0x217   : > { %v626_v60 = vadd.f32 %v624_v59, %v616_v58 }
 0x219   : > { %628 = vst.msk [vmem:[%s1103_s5 + $0x8] sm:$0xff] %vm612_vm5, %v626_v60 }
 0x21a PF: > { %s16_s22 = sadd.s32 1, %s928_s22   ;;  %s1105_s18 = smov %s916_s19 }
 0x21b   : > { %p13_p11 = scmp.ge.s32.totalorder %s16_s22, 4   ;;  %s1106_s19 = smov %s1004_s27 }
 0x21c   : > { %s1107_s20 = smov %s924_s21  ;;  %s1108_s21 = smov %s1110_s23 }
 0x21d   :  { %15 = sbr.rel (!%p13_p11) target bundleno = 3 (0x3), region = 181 }

// kernel: _forward.19
= control target key start
LH: loop header
LB: loop body
LE: loop exit
PB: predicated region body
PF: predicated region fallthrough
CT: control target
= control target key end

     0   :  { %s423_s12 = smov 0   ;;  %s425_s13 = smov 0   ;;  %s468_s0 = inlined_call_operand.vmem [shape: bf16[2,16,64], index: 0, kind: input, shape index: {}]   ;;  %s469_s1 = inlined_call_operand.vmem [shape: f32[16,1], index: 1, kind: input, shape index: {}]   ;;  %s470_s2 = inlined_call_operand.vmem [shape: f32[16,1], index: 2, kind: input, shape index: {}]   ;;  %s471_s3 = inlined_call_operand.vmem [shape: bf16[2,16,64], index: 3, kind: output, shape index: {}]  }
   0x1   :  { %s427_s14 = smov 0  }
   0x2 LB: > { %s25_s15 = sadd.s32 1, %s396_s13  ;;  %p334_p0 = scmp.ge.s32.totalorder %s400_s14, 1  ;;  %s400_s14 = sphi %s427_s14, %s13_s14   ;;  %s396_s13 = sphi %s425_s13, %s473_s13   ;;  %s392_s12 = sphi %s423_s12, %s472_s12  }
   0x3   : > { %p27_p1 = scmp.ge.s32.totalorder %s25_s15, 2  ;;  %p156_p2 = scmp.lt.s32.totalorder %s400_s14, 3 }
   0x5   : > { %s475_s15 = smov (%p27_p1, %s25_s15), 0  ;;  %p157_p3 = pnand %p334_p0, %p156_p2 }
   0x6   : > { %p186_p4 = scmp.lt.s32.totalorder (!%p157_p3), %s392_s12, 1 }
   0x7   : > { %160 = sbr.rel (%p157_p3) target bundleno = 151 (0x97), region = 32 }
   0xc   : > { %v220_v0 = vld [vmem:[%s470_s2] sm:$0xff]  ;;  %v402_v2 = vmov 0   ;;  %v221_v3 = vld [vmem:[%s470_s2 + $0x8] sm:$0xff]  ;;  %s477_s12 = smov (!%p186_p4, %s392_s12), 1  ;;  %vm244_vm0 = vcmask 519168  }
   0xd   : > { %v206_v1 = vld [vmem:[%s469_s1] sm:$0xff]  ;;  %377 = vset.pattern.permute.xlu1 %v402_v2  ;;  %376 = vset.pattern.permute.xlu0 %v402_v2  ;;  %v207_v4 = vld [vmem:[%s469_s1 + $0x8] sm:$0xff]  ;;  %s343_s24 = sshll.u32 %s477_s12, 3 }
   0xe   : > { %224 = vperm.xlu1 %377, %v220_v0   ;;  %210 = vperm.xlu0 %376, %v206_v1   ;;  %s193_s27 = scalar_lea.vmem %s468_s0, %s343_s24  ;;  %s201_s30 = scalar_lea.vmem %s471_s3, %s343_s24 }
   0xf   : > { %v348_v5 = vld [vmem:[%s193_s27] sm:$0xff]  }
  0x10   : > { %v349_v6 = vunpack.c.l.bf16 %v348_v5  ;;  %v350_v10 = vunpack.c.h.bf16 %v348_v5 }
  0x12   : > { %229 = vperm.xlu1 %377, %v221_v3   ;;  %215 = vperm.xlu0 %376, %v207_v4  }
  0x89   : > { %v225_v7 = vpop.permute.xlu1 %224  ;;  %v211_v8 = vpop.permute.xlu0 %210 }
  0x8a   : > { %v218_v9 = vmul.f32 %v349_v6, %v211_v8 }
  0x8c   : > { %v232_v11 = vadd.f32 %v225_v7, %v218_v9 }
  0x8d   : > { %v216_v12 = vpop.permute.xlu0 %215  ;;  %v230_v15 = vpop.permute.xlu1 %229 }
  0x8e   : > { %v234_v13 = vmax.f32 %v232_v11, 0.0  ;;  %v219_v14 = vmul.f32 %v350_v10, %v216_v12 }
  0x90   : > { %v345_v16 = vpack.c.bf16 %v234_v13, %v234_v13  ;;  %v233_v17 = vadd.f32 %v230_v15, %v219_v14 }
  0x92   : > { %245 = vst.msk [vmem:[%s201_s30] sm:$0xf] %vm244_vm0, %v345_v16  ;;  %v235_v18 = vmax.f32 %v233_v17, 0.0 }
  0x94   : > { %v346_v19 = vpack.c.bf16 %v235_v18, %v235_v18 }
  0x96   : > { %246 = vst.msk [vmem:[%s201_s30 + $0x4] sm:$0xf] %vm244_vm0, %v346_v19 }
  0x97 PF: > { %s13_s14 = sadd.s32 1, %s400_s14   ;;  %s472_s12 = smov %s396_s13 }
  0x98   : > { %p10_p5 = scmp.ge.s32.totalorder %s13_s14, 4   ;;  %s473_s13 = smov %s475_s15 }
  0x9a   :  { %12 = sbr.rel (!%p10_p5) target bundleno = 2 (0x2), region = 62 }

// kernel: _forward.17
= control target key start
LH: loop header
LB: loop body
LE: loop exit
PB: predicated region body
PF: predicated region fallthrough
CT: control target
= control target key end

     0   :  { %vm242_vm0 = vcmask 1041408   ;;  %v86_v0 = vlaneseq  ;;  %v2200_v4 = vmov 1983009808   ;;  %vm217_vm1 = vcmask 31744   ;;  %s2711_s1 = inlined_call_operand.vmem [shape: f32[4,8], index: 1, kind: input, shape index: {}]   ;;  %s2712_s0 = inlined_call_operand.vmem [shape: bf16[32,4,4], index: 0, kind: input, shape index: {}]   ;;  %s2713_s2 = inlined_call_operand.vmem [shape: f32[8,4], index: 2, kind: input, shape index: {}]   ;;  %s2714_s3 = inlined_call_operand.vmem [shape: bf16[32,8,8], index: 3, kind: output, shape index: {}]  }
   0x1   :  { %v47_v1 = vld [vmem:[%s2711_s1] sm:$0xf]  ;;  %v84_v5 = vunpack.c.l.s4 %v2200_v4  ;;  %v17_v7 = vld [vmem:[%s2712_s0 + $0x4] sm:$0x3]  ;;  %v18_v8 = vld [vmem:[%s2712_s0 + $0x6] sm:$0x3] }
   0x2   :  { %v15_v2 = vld [vmem:[%s2712_s0] sm:$0x3]  ;;  %v16_v3 = vld [vmem:[%s2712_s0 + $0x2] sm:$0x3]  ;;  %v48_v6 = vpack.c.bf16 %v47_v1, %v47_v1  ;;  %v87_v9 = vshrl.u32 %v86_v0, 7  ;;  %v82_v11 = vcombine.low %v17_v7, %v18_v8  ;;  %vm2202_vm2 = vmmov 0  }
   0x3   :  { %v81_v10 = vcombine.low %v15_v2, %v16_v3  ;;  %v85_v12 = vunpack.c.0.s8 %v84_v5  ;;  %v19_v13 = vld [vmem:[%s2712_s0 + $0x8] sm:$0x3]  ;;  %v20_v14 = vld [vmem:[%s2712_s0 + $0xa] sm:$0x3]  ;;  %v21_v15 = vld [vmem:[%s2712_s0 + $0xc] sm:$0x3] }
   0x4   :  { %2196 = vmatprep.subr.msk.bf16.mxu0 %vm242_vm0, %v48_v6  ;;  %v244_v16 = vsel %vm242_vm0, %v48_v6, 0  ;;  %v22_v17 = vld [vmem:[%s2712_s0 + $0xe] sm:$0x3]  ;;  %v98_v18 = vcombine.low %v19_v13, %v20_v14  ;;  %v23_v19 = vld [vmem:[%s2712_s0 + $0x10] sm:$0x3]  ;;  %vm1836_vm3 = vcmask 60416  }
   0x5   :  { %1987 = vmatpush3.bf16.msra.mxu0 %v244_v16  ;;  %v2255_v20 = vsub.s32 %v85_v12, %v87_v9  ;;  %v99_v21 = vcombine.low %v21_v15, %v22_v17  ;;  %v24_v22 = vld [vmem:[%s2712_s0 + $0x12] sm:$0x3]  ;;  %v25_v23 = vld [vmem:[%s2712_s0 + $0x14] sm:$0x3]  ;;  %v26_v24 = vld [vmem:[%s2712_s0 + $0x16] sm:$0x3] }
   0x6   :  { %v115_v25 = vcombine.low %v23_v19, %v24_v22  ;;  %v116_v26 = vcombine.low %v25_v23, %v26_v24  ;;  %v27_v27 = vld [vmem:[%s2712_s0 + $0x18] sm:$0x3]  ;;  %v28_v28 = vld [vmem:[%s2712_s0 + $0x1a] sm:$0x3]  ;;  %v29_v29 = vld [vmem:[%s2712_s0 + $0x1c] sm:$0x3] }
   0x7   :  { %v89_v30 = vrot.slane %v81_v10, %v2255_v20  ;;  %v96_v31 = vrot.slane %v82_v11, %v2255_v20  ;;  %v106_v32 = vrot.slane %v98_v18, %v2255_v20  ;;  %v113_v33 = vrot.slane %v99_v21, %v2255_v20  ;;  %v30_v34 = vld [vmem:[%s2712_s0 + $0x1e] sm:$0x3]  ;;  %v31_v35 = vld [vmem:[%s2712_s0 + $0x20] sm:$0x3]  ;;  %v32_v36 = vld [vmem:[%s2712_s0 + $0x22] sm:$0x3] }
   0x8   :  { %v123_v37 = vrot.slane %v115_v25, %v2255_v20  ;;  %v130_v38 = vrot.slane %v116_v26, %v2255_v20  ;;  %v132_v39 = vcombine.low %v27_v27, %v28_v28  ;;  %v133_v40 = vcombine.low %v29_v29, %v30_v34  ;;  %v33_v41 = vld [vmem:[%s2712_s0 + $0x24] sm:$0x3]  ;;  %v34_v42 = vld [vmem:[%s2712_s0 + $0x26] sm:$0x3]  ;;  %v35_v50 = vld [vmem:[%s2712_s0 + $0x28] sm:$0x3] }
   0x9   :  { %v97_v43 = vcombine.low %v89_v30, %v96_v31  ;;  %v114_v44 = vcombine.low %v106_v32, %v113_v33  ;;  %v149_v45 = vcombine.low %v31_v35, %v32_v36  ;;  %v150_v46 = vcombine.low %v33_v41, %v34_v42  ;;  %v36_v51 = vld [vmem:[%s2712_s0 + $0x2a] sm:$0x3]  ;;  %v37_v54 = vld [vmem:[%s2712_s0 + $0x2c] sm:$0x3]  ;;  %v38_v55 = vld [vmem:[%s2712_s0 + $0x2e] sm:$0x3] }
   0xa   :  { %v131_v47 = vcombine.low %v123_v37, %v130_v38  ;;  %v140_v48 = vrot.slane %v132_v39, %v2255_v20  ;;  %v147_v49 = vrot.slane %v133_v40, %v2255_v20  ;;  %v39_v56 = vld [vmem:[%s2712_s0 + $0x30] sm:$0x3]  ;;  %v40_v57 = vld [vmem:[%s2712_s0 + $0x32] sm:$0x3]  ;;  %v41_v58 = vld [vmem:[%s2712_s0 + $0x34] sm:$0x3]  ;;  %v166_v61 = vcombine.low %v35_v50, %v36_v51 }
   0xb   :  { %1988 = vmatprep.mubr.msk.bf16.mxu0 %vm217_vm1, %v97_v43  ;;  %v157_v52 = vrot.slane %v149_v45, %v2255_v20  ;;  %v164_v53 = vrot.slane %v150_v46, %v2255_v20  ;;  %v42_v59 = vld [vmem:[%s2712_s0 + $0x36] sm:$0x3]  ;;  %v167_v62 = vcombine.low %v37_v54, %v38_v55  ;;  %v183_v0 = vcombine.low %v39_v56, %v40_v57  ;;  %v43_v4 = vld [vmem:[%s2712_s0 + $0x38] sm:$0x3]  ;;  %v44_v7 = vld [vmem:[%s2712_s0 + $0x3a] sm:$0x3] }
   0xc   :  { %1989 = vmatmul.mubr.msk.bf16.vlgmr.msra.gmra.mxu0 %vm217_vm1, %v114_v44  ;;  %v148_v60 = vcombine.low %v140_v48, %v147_v49  ;;  %v184_v1 = vcombine.low %v41_v58, %v42_v59  ;;  %v174_v2 = vrot.slane %v166_v61, %v2255_v20  ;;  %v45_v8 = vld [vmem:[%s2712_s0 + $0x3c] sm:$0x3]  ;;  %v46_v9 = vld [vmem:[%s2712_s0 + $0x3e] sm:$0x3]  ;;  %v200_v11 = vcombine.low %v43_v4, %v44_v7  ;;  %v423_v19 = vld [vmem:[%s2713_s2] sm:$0xff] }
   0xd   :  { %1992 = vmatprep.mubr.msk.bf16.mxu0 %vm217_vm1, %v131_v47  ;;  %v165_v63 = vcombine.low %v157_v52, %v164_v53  ;;  %v181_v3 = vrot.slane %v167_v62, %v2255_v20  ;;  %v191_v5 = vrot.slane %v183_v0, %v2255_v20  ;;  %v201_v12 = vcombine.low %v45_v8, %v46_v9 }
   0xe   :  { %v198_v6 = vrot.slane %v184_v1, %v2255_v20  ;;  %v208_v14 = vrot.slane %v200_v11, %v2255_v20  ;;  %v2201_v17 = vmov 0.0   ;;  %v2360_v25 = vpack.c.bf16 %v423_v19, %v423_v19 }
   0xf   :  { %v182_v10 = vcombine.low %v174_v2, %v181_v3  ;;  %v215_v15 = vrot.slane %v201_v12, %v2255_v20  ;;  %2028 = vmatprep.subr.bf16.mxu0 %v2201_v17  ;;  %2004 = vmatprep.subr.bf16.mxu1 %v2201_v17 }
  0x10   :  { %v199_v13 = vcombine.low %v191_v5, %v198_v6  ;;  %2006 = vmatprep.mubr.msk.bf16.mxu1 %vm2202_vm2, %v2201_v17 }
  0x11   :  { %v216_v16 = vcombine.low %v208_v14, %v215_v15 }
  0x14   :  { %1993 = vmatmul.mubr.msk.bf16.gmra.mxu0 %vm217_vm1, %v148_v60 }
  0x15   :  { %1996 = vmatprep.mubr.msk.bf16.mxu0 %vm217_vm1, %v165_v63 }
  0x1c   :  { %1997 = vmatmul.mubr.msk.bf16.gmra.mxu0 %vm217_vm1, %v182_v10 }
  0x1d   :  { %2000 = vmatprep.mubr.msk.bf16.mxu0 %vm217_vm1, %v199_v13 }
  0x24   :  { %2001 = vmatmul.mubr.msk.bf16.gmra.mxu0 %vm217_vm1, %v216_v16 }
  0x25   :  { %2030 = vmatprep.mubr.msk.bf16.mxu0 %vm2202_vm2, %v2201_v17 }
  0xcc   :  { %v1990_v18 = vpop.f32.mrf.mxu0 }
  0xcd   :  { %v395_v20 = vpack.c.bf16 %v1990_v18, %v1990_v18  ;;  %v361_v45 = vcombine.high %v1990_v18, %v1990_v18 }
  0xce   :  { %v280_v21 = vpop.f32.mrf.mxu0 }
  0xcf   :  { %v359_v22 = vcombine.high %v280_v21, %v280_v21  ;;  %v391_v23 = vpack.c.bf16 %v280_v21, %v280_v21  ;;  %v601_v24 = vsel %vm242_vm0, %v395_v20, 0  ;;  %v396_v48 = vpack.c.bf16 %v361_v45, %v361_v45 }
  0xd0   :  { %v1991_v26 = vpop.f32.mrf.mxu0  ;;  %2029 = vmatpush3.bf16.msra.mxu0 %v601_v24 }
  0xd1   :  { %v392_v27 = vpack.c.bf16 %v359_v22, %v359_v22  ;;  %v397_v28 = vpack.c.bf16 %v1991_v26, %v1991_v26  ;;  %v429_v29 = vsel %vm242_vm0, %v391_v23, 0  ;;  %2040 = vmatprep.subr.bf16.mxu0 %v2201_v17  ;;  %v362_v50 = vcombine.high %v1991_v26, %v1991_v26 }
  0xd2   :  { %v283_v30 = vpop.f32.mrf.mxu0  ;;  %2005 = vmatpush3.bf16.msra.mxu1 %v429_v29  ;;  %v644_v52 = vsel %vm242_vm0, %v396_v48, 0 }
  0xd3   :  { %2031 = vmatmul.mubr.msk.bf16.vlgmr.msra.gmra.mxu0 %vm217_vm1, %v2360_v25  ;;  %v687_v31 = vsel %vm242_vm0, %v397_v28, 0  ;;  %2010 = vmatprep.subr.bf16.mxu1 %v2201_v17  ;;  %v472_v33 = vsel %vm242_vm0, %v392_v27, 0  ;;  %v393_v37 = vpack.c.bf16 %v283_v30, %v283_v30  ;;  %v360_v40 = vcombine.high %v283_v30, %v283_v30 }
  0xd4   :  { %2041 = vmatpush3.bf16.msra.mxu0 %v687_v31  ;;  %v2368_v32 = vpop.f32.mrf.mxu0  ;;  %2042 = vmatprep.mubr.msk.bf16.mxu0 %vm2202_vm2, %v2201_v17  ;;  %v398_v54 = vpack.c.bf16 %v362_v50, %v362_v50 }
  0xd5   :  { %2007 = vmatmul.mubr.msk.bf16.vlgmr.msra.gmra.mxu1 %vm217_vm1, %v2360_v25  ;;  %2052 = vmatprep.subr.bf16.mxu0 %v2201_v17  ;;  %v515_v41 = vsel %vm242_vm0, %v393_v37, 0  ;;  %v394_v43 = vpack.c.bf16 %v360_v40, %v360_v40  ;;  %v403_v46 = vpack.c.bf16 %v2368_v32, %v2368_v32  ;;  %v365_v5 = vcombine.high %v2368_v32, %v2368_v32 }
  0xd6   :  { %2011 = vmatpush3.bf16.msra.mxu1 %v472_v33  ;;  %2012 = vmatprep.mubr.msk.bf16.mxu1 %vm2202_vm2, %v2201_v17  ;;  %v296_v34 = vpop.f32.mrf.mxu0  ;;  %v730_v58 = vsel %vm242_vm0, %v398_v54, 0 }
  0xd7   :  { %2016 = vmatprep.subr.bf16.mxu1 %v2201_v17  ;;  %v399_v35 = vpack.c.bf16 %v296_v34, %v296_v34  ;;  %v558_v47 = vsel %vm242_vm0, %v394_v43, 0  ;;  %v945_v49 = vsel %vm242_vm0, %v403_v46, 0  ;;  %v363_v57 = vcombine.high %v296_v34, %v296_v34 }
  0xd8   :  { %v2379_v36 = vpop.f32.mrf.mxu0  ;;  %v404_v8 = vpack.c.bf16 %v365_v5, %v365_v5 }
  0xd9   :  { %v773_v38 = vsel %vm242_vm0, %v399_v35, 0  ;;  %v405_v51 = vpack.c.bf16 %v2379_v36, %v2379_v36  ;;  %v400_v61 = vpack.c.bf16 %v363_v57, %v363_v57  ;;  %v366_v10 = vcombine.high %v2379_v36, %v2379_v36 }
  0xda   :  { %v299_v39 = vpop.f32.mrf.mxu0  ;;  %v988_v12 = vsel %vm242_vm0, %v404_v8, 0 }
  0xdb   :  { %2043 = vmatmul.mubr.msk.bf16.vlgmr.msra.gmra.mxu0 %vm217_vm1, %v2360_v25  ;;  %v401_v42 = vpack.c.bf16 %v299_v39, %v299_v39  ;;  %v1031_v55 = vsel %vm242_vm0, %v405_v51, 0  ;;  %v816_v0 = vsel %vm242_vm0, %v400_v61, 0  ;;  %v364_v1 = vcombine.high %v299_v39, %v299_v39 }
  0xdc   :  { %2053 = vmatpush3.bf16.msra.mxu0 %v773_v38  ;;  %2054 = vmatprep.mubr.msk.bf16.mxu0 %vm2202_vm2, %v2201_v17  ;;  %v2420_v53 = vpop.f32.mrf.mxu0  ;;  %v406_v14 = vpack.c.bf16 %v366_v10, %v366_v10 }
  0xdd   :  { %2013 = vmatmul.mubr.msk.bf16.vlgmr.msra.gmra.mxu1 %vm217_vm1, %v2360_v25  ;;  %2064 = vmatprep.subr.bf16.mxu0 %v2201_v17  ;;  %v859_v44 = vsel %vm242_vm0, %v401_v42, 0  ;;  %v402_v3 = vpack.c.bf16 %v364_v1, %v364_v1  ;;  %v411_v6 = vpack.c.bf16 %v2420_v53, %v2420_v53  ;;  %v369_v31 = vcombine.high %v2420_v53, %v2420_v53 }
  0xde   :  { %2017 = vmatpush3.bf16.msra.mxu1 %v515_v41  ;;  %2018 = vmatprep.mubr.msk.bf16.mxu1 %vm2202_vm2, %v2201_v17  ;;  %v312_v56 = vpop.f32.mrf.mxu0  ;;  %v1074_v19 = vsel %vm242_vm0, %v406_v14, 0 }
  0xdf   :  { %2022 = vmatprep.subr.bf16.mxu1 %v2201_v17  ;;  %v407_v59 = vpack.c.bf16 %v312_v56, %v312_v56  ;;  %v902_v7 = vsel %vm242_vm0, %v402_v3, 0  ;;  %v1289_v9 = vsel %vm242_vm0, %v411_v6, 0  ;;  %v367_v18 = vcombine.high %v312_v56, %v312_v56 }
  0xe0   :  { %v2434_v60 = vpop.f32.mrf.mxu0  ;;  %v412_v34 = vpack.c.bf16 %v369_v31, %v369_v31 }
  0xe1   :  { %v1117_v62 = vsel %vm242_vm0, %v407_v59, 0  ;;  %v413_v11 = vpack.c.bf16 %v2434_v60, %v2434_v60  ;;  %v408_v22 = vpack.c.bf16 %v367_v18, %v367_v18  ;;  %v370_v36 = vcombine.high %v2434_v60, %v2434_v60 }
  0xe2   :  { %v315_v63 = vpop.f32.mrf.mxu0  ;;  %v1332_v38 = vsel %vm242_vm0, %v412_v34, 0 }
  0xe3   :  { %2055 = vmatmul.mubr.msk.bf16.vlgmr.msra.gmra.mxu0 %vm217_vm1, %v2360_v25  ;;  %v409_v2 = vpack.c.bf16 %v315_v63, %v315_v63  ;;  %v1375_v15 = vsel %vm242_vm0, %v413_v11, 0  ;;  %v1160_v26 = vsel %vm242_vm0, %v408_v22, 0  ;;  %v368_v27 = vcombine.high %v315_v63, %v315_v63 }
  0xe4   :  { %2065 = vmatpush3.bf16.msra.mxu0 %v859_v44  ;;  %2066 = vmatprep.mubr.msk.bf16.mxu0 %vm2202_vm2, %v2201_v17  ;;  %v2480_v13 = vpop.f32.mrf.mxu0  ;;  %v414_v39 = vpack.c.bf16 %v370_v36, %v370_v36 }
  0xe5   :  { %2019 = vmatmul.mubr.msk.bf16.vlgmr.msra.gmra.mxu1 %vm217_vm1, %v2360_v25  ;;  %2076 = vmatprep.subr.bf16.mxu0 %v2201_v17  ;;  %v1203_v4 = vsel %vm242_vm0, %v409_v2, 0  ;;  %v410_v29 = vpack.c.bf16 %v368_v27, %v368_v27  ;;  %v419_v32 = vpack.c.bf16 %v2480_v13, %v2480_v13 }
  0xe6   :  { %2023 = vmatpush3.bf16.msra.mxu1 %v558_v47  ;;  %2024 = vmatprep.mubr.msk.bf16.mxu1 %vm2202_vm2, %v2201_v17  ;;  %v328_v16 = vpop.f32.mrf.mxu0  ;;  %v1418_v42 = vsel %vm242_vm0, %v414_v39, 0  ;;  %v373_v47 = vcombine.high %v2480_v13, %v2480_v13 }
  0xe7   :  { %2034 = vmatprep.subr.bf16.mxu1 %v2201_v17  ;;  %v415_v20 = vpack.c.bf16 %v328_v16, %v328_v16  ;;  %v1246_v33 = vsel %vm242_vm0, %v410_v29, 0  ;;  %v1633_v35 = vsel %vm242_vm0, %v419_v32, 0  ;;  %v371_v41 = vcombine.high %v328_v16, %v328_v16 }
  0xe8   :  { %v2494_v21 = vpop.f32.mrf.mxu0 }
  0xe9   :  { %v1461_v23 = vsel %vm242_vm0, %v415_v20, 0  ;;  %v421_v37 = vpack.c.bf16 %v2494_v21, %v2494_v21  ;;  %v416_v43 = vpack.c.bf16 %v371_v41, %v371_v41  ;;  %v374_v50 = vcombine.high %v2494_v21, %v2494_v21 }
  0xea   :  { %v331_v24 = vpop.f32.mrf.mxu0 }
  0xeb   :  { %2067 = vmatmul.mubr.msk.bf16.vlgmr.msra.gmra.mxu0 %vm217_vm1, %v2360_v25  ;;  %v417_v28 = vpack.c.bf16 %v331_v24, %v331_v24  ;;  %v1719_v40 = vsel %vm242_vm0, %v421_v37, 0  ;;  %v1504_v44 = vsel %vm242_vm0, %v416_v43, 0  ;;  %v372_v45 = vcombine.high %v331_v24, %v331_v24 }
  0xec   :  { %2077 = vmatpush3.bf16.msra.mxu0 %v945_v49  ;;  %2078 = vmatprep.mubr.msk.bf16.mxu0 %vm2202_vm2, %v2201_v17  ;;  %v420_v49 = vpack.c.bf16 %v373_v47, %v373_v47 }
  0xed   :  { %2025 = vmatmul.mubr.msk.bf16.vlgmr.msra.gmra.mxu1 %vm217_vm1, %v2360_v25  ;;  %2088 = vmatprep.subr.bf16.mxu0 %v2201_v17  ;;  %v1547_v30 = vsel %vm242_vm0, %v417_v28, 0  ;;  %v418_v46 = vpack.c.bf16 %v372_v45, %v372_v45 }
  0xee   :  { %2035 = vmatpush3.bf16.msra.mxu1 %v644_v52  ;;  %2036 = vmatprep.mubr.msk.bf16.mxu1 %vm2202_vm2, %v2201_v17  ;;  %v1676_v51 = vsel %vm242_vm0, %v420_v49, 0  ;;  %v422_v52 = vpack.c.bf16 %v374_v50, %v374_v50 }
  0xef   :  { %2046 = vmatprep.subr.bf16.mxu1 %v2201_v17  ;;  %v1590_v48 = vsel %vm242_vm0, %v418_v46, 0 }
  0xf0   :  { %v1762_v53 = vsel %vm242_vm0, %v422_v52, 0 }
  0xf3   :  { %2079 = vmatmul.mubr.msk.bf16.vlgmr.msra.gmra.mxu0 %vm217_vm1, %v2360_v25 }
  0xf4   :  { %2089 = vmatpush3.bf16.msra.mxu0 %v1031_v55  ;;  %2090 = vmatprep.mubr.msk.bf16.mxu0 %vm2202_vm2, %v2201_v17 }
  0xf5   :  { %2037 = vmatmul.mubr.msk.bf16.vlgmr.msra.gmra.mxu1 %vm217_vm1, %v2360_v25  ;;  %2100 = vmatprep.subr.bf16.mxu0 %v2201_v17 }
  0xf6   :  { %2047 = vmatpush3.bf16.msra.mxu1 %v730_v58  ;;  %2048 = vmatprep.mubr.msk.bf16.mxu1 %vm2202_vm2, %v2201_v17 }
  0xf7   :  { %2058 = vmatprep.subr.bf16.mxu1 %v2201_v17 }
  0xfb   :  { %2091 = vmatmul.mubr.msk.bf16.vlgmr.msra.gmra.mxu0 %vm217_vm1, %v2360_v25 }
  0xfc   :  { %2101 = vmatpush3.bf16.msra.mxu0 %v1117_v62  ;;  %2102 = vmatprep.mubr.msk.bf16.mxu0 %vm2202_vm2, %v2201_v17 }
  0xfd   :  { %2049 = vmatmul.mubr.msk.bf16.vlgmr.msra.gmra.mxu1 %vm217_vm1, %v2360_v25  ;;  %2112 = vmatprep.subr.bf16.mxu0 %v2201_v17 }
  0xfe   :  { %2059 = vmatpush3.bf16.msra.mxu1 %v816_v0  ;;  %2060 = vmatprep.mubr.msk.bf16.mxu1 %vm2202_vm2, %v2201_v17 }
  0xff   :  { %2070 = vmatprep.subr.bf16.mxu1 %v2201_v17 }
 0x103   :  { %2103 = vmatmul.mubr.msk.bf16.vlgmr.msra.gmra.mxu0 %vm217_vm1, %v2360_v25 }
 0x104   :  { %2113 = vmatpush3.bf16.msra.mxu0 %v1203_v4  ;;  %2114 = vmatprep.mubr.msk.bf16.mxu0 %vm2202_vm2, %v2201_v17 }
 0x105   :  { %2061 = vmatmul.mubr.msk.bf16.vlgmr.msra.gmra.mxu1 %vm217_vm1, %v2360_v25  ;;  %2124 = vmatprep.subr.bf16.mxu0 %v2201_v17 }
 0x106   :  { %2071 = vmatpush3.bf16.msra.mxu1 %v902_v7  ;;  %2072 = vmatprep.mubr.msk.bf16.mxu1 %vm2202_vm2, %v2201_v17 }
 0x107   :  { %2082 = vmatprep.subr.bf16.mxu1 %v2201_v17 }
 0x10b   :  { %2115 = vmatmul.mubr.msk.bf16.vlgmr.msra.gmra.mxu0 %vm217_vm1, %v2360_v25 }
 0x10c   :  { %2125 = vmatpush3.bf16.msra.mxu0 %v1289_v9  ;;  %2126 = vmatprep.mubr.msk.bf16.mxu0 %vm2202_vm2, %v2201_v17 }
 0x10d   :  { %2073 = vmatmul.mubr.msk.bf16.vlgmr.msra.gmra.mxu1 %vm217_vm1, %v2360_v25  ;;  %2136 = vmatprep.subr.bf16.mxu0 %v2201_v17 }
 0x10e   :  { %2083 = vmatpush3.bf16.msra.mxu1 %v988_v12  ;;  %2084 = vmatprep.mubr.msk.bf16.mxu1 %vm2202_vm2, %v2201_v17 }
 0x10f   :  { %2094 = vmatprep.subr.bf16.mxu1 %v2201_v17 }
 0x113   :  { %2127 = vmatmul.mubr.msk.bf16.vlgmr.msra.gmra.mxu0 %vm217_vm1, %v2360_v25 }
 0x114   :  { %2137 = vmatpush3.bf16.msra.mxu0 %v1375_v15  ;;  %2138 = vmatprep.mubr.msk.bf16.mxu0 %vm2202_vm2, %v2201_v17 }
 0x115   :  { %2085 = vmatmul.mubr.msk.bf16.vlgmr.msra.gmra.mxu1 %vm217_vm1, %v2360_v25  ;;  %2148 = vmatprep.subr.bf16.mxu0 %v2201_v17 }
 0x116   :  { %2095 = vmatpush3.bf16.msra.mxu1 %v1074_v19  ;;  %2096 = vmatprep.mubr.msk.bf16.mxu1 %vm2202_vm2, %v2201_v17 }
 0x117   :  { %2106 = vmatprep.subr.bf16.mxu1 %v2201_v17 }
 0x11b   :  { %2139 = vmatmul.mubr.msk.bf16.vlgmr.msra.gmra.mxu0 %vm217_vm1, %v2360_v25 }
 0x11c   :  { %2149 = vmatpush3.bf16.msra.mxu0 %v1461_v23  ;;  %2150 = vmatprep.mubr.msk.bf16.mxu0 %vm2202_vm2, %v2201_v17 }
 0x11d   :  { %2097 = vmatmul.mubr.msk.bf16.vlgmr.msra.gmra.mxu1 %vm217_vm1, %v2360_v25  ;;  %2160 = vmatprep.subr.bf16.mxu0 %v2201_v17 }
 0x11e   :  { %2107 = vmatpush3.bf16.msra.mxu1 %v1160_v26  ;;  %2108 = vmatprep.mubr.msk.bf16.mxu1 %vm2202_vm2, %v2201_v17 }
 0x11f   :  { %2118 = vmatprep.subr.bf16.mxu1 %v2201_v17 }
 0x123   :  { %2151 = vmatmul.mubr.msk.bf16.vlgmr.msra.gmra.mxu0 %vm217_vm1, %v2360_v25 }
 0x124   :  { %2161 = vmatpush3.bf16.msra.mxu0 %v1547_v30  ;;  %2162 = vmatprep.mubr.msk.bf16.mxu0 %vm2202_vm2, %v2201_v17 }
 0x125   :  { %2109 = vmatmul.mubr.msk.bf16.vlgmr.msra.gmra.mxu1 %vm217_vm1, %v2360_v25  ;;  %2172 = vmatprep.subr.bf16.mxu0 %v2201_v17 }
 0x126   :  { %2119 = vmatpush3.bf16.msra.mxu1 %v1246_v33  ;;  %2120 = vmatprep.mubr.msk.bf16.mxu1 %vm2202_vm2, %v2201_v17 }
 0x127   :  { %2130 = vmatprep.subr.bf16.mxu1 %v2201_v17 }
 0x12b   :  { %2163 = vmatmul.mubr.msk.bf16.vlgmr.msra.gmra.mxu0 %vm217_vm1, %v2360_v25 }
 0x12c   :  { %2173 = vmatpush3.bf16.msra.mxu0 %v1633_v35  ;;  %2174 = vmatprep.mubr.msk.bf16.mxu0 %vm2202_vm2, %v2201_v17 }
 0x12d   :  { %2121 = vmatmul.mubr.msk.bf16.vlgmr.msra.gmra.mxu1 %vm217_vm1, %v2360_v25  ;;  %2184 = vmatprep.subr.bf16.mxu0 %v2201_v17 }
 0x12e   :  { %2131 = vmatpush3.bf16.msra.mxu1 %v1332_v38  ;;  %2132 = vmatprep.mubr.msk.bf16.mxu1 %vm2202_vm2, %v2201_v17 }
 0x12f   :  { %2142 = vmatprep.subr.bf16.mxu1 %v2201_v17 }
 0x133   :  { %2175 = vmatmul.mubr.msk.bf16.vlgmr.msra.gmra.mxu0 %vm217_vm1, %v2360_v25 }
 0x134   :  { %2185 = vmatpush3.bf16.msra.mxu0 %v1719_v40  ;;  %2186 = vmatprep.mubr.msk.bf16.mxu0 %vm2202_vm2, %v2201_v17 }
 0x135   :  { %2133 = vmatmul.mubr.msk.bf16.vlgmr.msra.gmra.mxu1 %vm217_vm1, %v2360_v25 }
 0x136   :  { %2143 = vmatpush3.bf16.msra.mxu1 %v1418_v42  ;;  %2144 = vmatprep.mubr.msk.bf16.mxu1 %vm2202_vm2, %v2201_v17 }
 0x137   :  { %2154 = vmatprep.subr.bf16.mxu1 %v2201_v17 }
 0x13b   :  { %2187 = vmatmul.mubr.msk.bf16.vlgmr.msra.gmra.mxu0 %vm217_vm1, %v2360_v25 }
 0x13d   :  { %2145 = vmatmul.mubr.msk.bf16.vlgmr.msra.gmra.mxu1 %vm217_vm1, %v2360_v25 }
 0x13e   :  { %2155 = vmatpush3.bf16.msra.mxu1 %v1504_v44  ;;  %2156 = vmatprep.mubr.msk.bf16.mxu1 %vm2202_vm2, %v2201_v17 }
 0x13f   :  { %2166 = vmatprep.subr.bf16.mxu1 %v2201_v17 }
 0x145   :  { %2157 = vmatmul.mubr.msk.bf16.vlgmr.msra.gmra.mxu1 %vm217_vm1, %v2360_v25 }
 0x146   :  { %2167 = vmatpush3.bf16.msra.mxu1 %v1590_v48  ;;  %2168 = vmatprep.mubr.msk.bf16.mxu1 %vm2202_vm2, %v2201_v17 }
 0x147   :  { %2178 = vmatprep.subr.bf16.mxu1 %v2201_v17 }
 0x14d   :  { %2169 = vmatmul.mubr.msk.bf16.vlgmr.msra.gmra.mxu1 %vm217_vm1, %v2360_v25 }
 0x14e   :  { %2179 = vmatpush3.bf16.msra.mxu1 %v1676_v51  ;;  %2180 = vmatprep.mubr.msk.bf16.mxu1 %vm2202_vm2, %v2201_v17 }
 0x14f   :  { %2190 = vmatprep.subr.bf16.mxu1 %v2201_v17 }
 0x155   :  { %2181 = vmatmul.mubr.msk.bf16.vlgmr.msra.gmra.mxu1 %vm217_vm1, %v2360_v25 }
 0x156   :  { %2191 = vmatpush3.bf16.msra.mxu1 %v1762_v53  ;;  %2192 = vmatprep.mubr.msk.bf16.mxu1 %vm2202_vm2, %v2201_v17 }
 0x15d   :  { %2193 = vmatmul.mubr.msk.bf16.vlgmr.msra.gmra.mxu1 %vm217_vm1, %v2360_v25 }
 0x193   :  { %v637_v54 = vpop.f32.mrf.mxu0 }
 0x194   :  { %v1808_v55 = vpack.c.bf16 %v637_v54, %v637_v54 }
 0x195   :  { %v465_v56 = vpop.f32.mrf.mxu1  ;;  %v2032_v57 = vpop.f32.mrf.mxu0 }
 0x196   :  { %v1804_v58 = vpack.c.bf16 %v465_v56, %v465_v56  ;;  %1841 = vst.msk [vmem:[%s2714_s3 + $0x10] sm:$0xf] %vm1836_vm3, %v1808_v55 }
 0x197   :  { %v2008_v59 = vpop.f32.mrf.mxu1  ;;  %v640_v60 = vpop.f32.mrf.mxu0 }
 0x198   :  { %1837 = vst.msk [vmem:[%s2714_s3] sm:$0xf] %vm1836_vm3, %v1804_v58 }
 0x199   :  { %v468_v17 = vpop.f32.mrf.mxu1  ;;  %v2033_v25 = vpop.f32.mrf.mxu0 }
 0x19b   :  { %v2009_v61 = vpop.f32.mrf.mxu1  ;;  %v723_v62 = vpop.f32.mrf.mxu0 }
 0x19c   :  { %v1810_v63 = vpack.c.bf16 %v723_v62, %v723_v62 }
 0x19d   :  { %v508_v0 = vpop.f32.mrf.mxu1  ;;  %v2044_v1 = vpop.f32.mrf.mxu0 }
 0x19e   :  { %v1805_v2 = vpack.c.bf16 %v508_v0, %v508_v0  ;;  %1843 = vst.msk [vmem:[%s2714_s3 + $0x18] sm:$0xf] %vm1836_vm3, %v1810_v63 }
 0x19f   :  { %v2014_v3 = vpop.f32.mrf.mxu1  ;;  %v726_v4 = vpop.f32.mrf.mxu0 }
 0x1a0   :  { %1838 = vst.msk [vmem:[%s2714_s3 + $0x4] sm:$0xf] %vm1836_vm3, %v1805_v2 }
 0x1a1   :  { %v511_v5 = vpop.f32.mrf.mxu1  ;;  %v2045_v6 = vpop.f32.mrf.mxu0 }
 0x1a3   :  { %v2015_v7 = vpop.f32.mrf.mxu1  ;;  %v809_v8 = vpop.f32.mrf.mxu0 }
 0x1a4   :  { %v1812_v9 = vpack.c.bf16 %v809_v8, %v809_v8 }
 0x1a5   :  { %v551_v10 = vpop.f32.mrf.mxu1  ;;  %v2056_v11 = vpop.f32.mrf.mxu0 }
 0x1a6   :  { %v1806_v12 = vpack.c.bf16 %v551_v10, %v551_v10  ;;  %1845 = vst.msk [vmem:[%s2714_s3 + $0x20] sm:$0xf] %vm1836_vm3, %v1812_v9 }
 0x1a7   :  { %v2020_v13 = vpop.f32.mrf.mxu1  ;;  %v812_v14 = vpop.f32.mrf.mxu0 }
 0x1a8   :  { %1839 = vst.msk [vmem:[%s2714_s3 + $0x8] sm:$0xf] %vm1836_vm3, %v1806_v12 }
 0x1a9   :  { %v554_v15 = vpop.f32.mrf.mxu1  ;;  %v2057_v16 = vpop.f32.mrf.mxu0 }
 0x1ab   :  { %v2021_v18 = vpop.f32.mrf.mxu1  ;;  %v895_v19 = vpop.f32.mrf.mxu0 }
 0x1ac   :  { %v1814_v20 = vpack.c.bf16 %v895_v19, %v895_v19 }
 0x1ad   :  { %v594_v21 = vpop.f32.mrf.mxu1  ;;  %v2068_v22 = vpop.f32.mrf.mxu0 }
 0x1ae   :  { %v1807_v23 = vpack.c.bf16 %v594_v21, %v594_v21  ;;  %1847 = vst.msk [vmem:[%s2714_s3 + $0x28] sm:$0xf] %vm1836_vm3, %v1814_v20 }
 0x1af   :  { %v2026_v24 = vpop.f32.mrf.mxu1  ;;  %v898_v26 = vpop.f32.mrf.mxu0 }
 0x1b0   :  { %1840 = vst.msk [vmem:[%s2714_s3 + $0xc] sm:$0xf] %vm1836_vm3, %v1807_v23 }
 0x1b1   :  { %v597_v27 = vpop.f32.mrf.mxu1  ;;  %v2069_v28 = vpop.f32.mrf.mxu0 }
 0x1b3   :  { %v2027_v29 = vpop.f32.mrf.mxu1  ;;  %v981_v30 = vpop.f32.mrf.mxu0 }
 0x1b4   :  { %v1816_v31 = vpack.c.bf16 %v981_v30, %v981_v30 }
 0x1b5   :  { %v680_v32 = vpop.f32.mrf.mxu1  ;;  %v2080_v33 = vpop.f32.mrf.mxu0 }
 0x1b6   :  { %v1809_v34 = vpack.c.bf16 %v680_v32, %v680_v32  ;;  %1849 = vst.msk [vmem:[%s2714_s3 + $0x30] sm:$0xf] %vm1836_vm3, %v1816_v31 }
 0x1b7   :  { %v2038_v35 = vpop.f32.mrf.mxu1  ;;  %v984_v36 = vpop.f32.mrf.mxu0 }
 0x1b8   :  { %1842 = vst.msk [vmem:[%s2714_s3 + $0x14] sm:$0xf] %vm1836_vm3, %v1809_v34 }
 0x1b9   :  { %v683_v37 = vpop.f32.mrf.mxu1  ;;  %v2081_v38 = vpop.f32.mrf.mxu0 }
 0x1bb   :  { %v2039_v39 = vpop.f32.mrf.mxu1  ;;  %v1067_v40 = vpop.f32.mrf.mxu0 }
 0x1bc   :  { %v1818_v41 = vpack.c.bf16 %v1067_v40, %v1067_v40 }
 0x1bd   :  { %v766_v42 = vpop.f32.mrf.mxu1  ;;  %v2092_v43 = vpop.f32.mrf.mxu0 }
 0x1be   :  { %v1811_v44 = vpack.c.bf16 %v766_v42, %v766_v42  ;;  %1851 = vst.msk [vmem:[%s2714_s3 + $0x38] sm:$0xf] %vm1836_vm3, %v1818_v41 }
 0x1bf   :  { %v2050_v45 = vpop.f32.mrf.mxu1  ;;  %v1070_v46 = vpop.f32.mrf.mxu0 }
 0x1c0   :  { %1844 = vst.msk [vmem:[%s2714_s3 + $0x1c] sm:$0xf] %vm1836_vm3, %v1811_v44 }
 0x1c1   :  { %v769_v47 = vpop.f32.mrf.mxu1  ;;  %v2093_v48 = vpop.f32.mrf.mxu0 }
 0x1c3   :  { %v2051_v49 = vpop.f32.mrf.mxu1  ;;  %v1153_v50 = vpop.f32.mrf.mxu0 }
 0x1c4   :  { %v1820_v51 = vpack.c.bf16 %v1153_v50, %v1153_v50 }
 0x1c5   :  { %v852_v52 = vpop.f32.mrf.mxu1  ;;  %v2104_v53 = vpop.f32.mrf.mxu0 }
 0x1c6   :  { %v1813_v54 = vpack.c.bf16 %v852_v52, %v852_v52  ;;  %1853 = vst.msk [vmem:[%s2714_s3 + $0x40] sm:$0xf] %vm1836_vm3, %v1820_v51 }
 0x1c7   :  { %v2062_v55 = vpop.f32.mrf.mxu1  ;;  %v1156_v56 = vpop.f32.mrf.mxu0 }
 0x1c8   :  { %1846 = vst.msk [vmem:[%s2714_s3 + $0x24] sm:$0xf] %vm1836_vm3, %v1813_v54 }
 0x1c9   :  { %v855_v57 = vpop.f32.mrf.mxu1  ;;  %v2105_v58 = vpop.f32.mrf.mxu0 }
 0x1cb   :  { %v2063_v59 = vpop.f32.mrf.mxu1  ;;  %v1239_v60 = vpop.f32.mrf.mxu0 }
 0x1cc   :  { %v1822_v17 = vpack.c.bf16 %v1239_v60, %v1239_v60 }
 0x1cd   :  { %v938_v25 = vpop.f32.mrf.mxu1  ;;  %v2116_v61 = vpop.f32.mrf.mxu0 }
 0x1ce   :  { %v1815_v62 = vpack.c.bf16 %v938_v25, %v938_v25  ;;  %1855 = vst.msk [vmem:[%s2714_s3 + $0x48] sm:$0xf] %vm1836_vm3, %v1822_v17 }
 0x1cf   :  { %v2074_v63 = vpop.f32.mrf.mxu1  ;;  %v1242_v0 = vpop.f32.mrf.mxu0 }
 0x1d0   :  { %1848 = vst.msk [vmem:[%s2714_s3 + $0x2c] sm:$0xf] %vm1836_vm3, %v1815_v62 }
 0x1d1   :  { %v941_v1 = vpop.f32.mrf.mxu1  ;;  %v2117_v2 = vpop.f32.mrf.mxu0 }
 0x1d3   :  { %v2075_v3 = vpop.f32.mrf.mxu1  ;;  %v1325_v4 = vpop.f32.mrf.mxu0 }
 0x1d4   :  { %v1824_v5 = vpack.c.bf16 %v1325_v4, %v1325_v4 }
 0x1d5   :  { %v1024_v6 = vpop.f32.mrf.mxu1  ;;  %v2128_v7 = vpop.f32.mrf.mxu0 }
 0x1d6   :  { %v1817_v8 = vpack.c.bf16 %v1024_v6, %v1024_v6  ;;  %1857 = vst.msk [vmem:[%s2714_s3 + $0x50] sm:$0xf] %vm1836_vm3, %v1824_v5 }
 0x1d7   :  { %v2086_v9 = vpop.f32.mrf.mxu1  ;;  %v1328_v10 = vpop.f32.mrf.mxu0 }
 0x1d8   :  { %1850 = vst.msk [vmem:[%s2714_s3 + $0x34] sm:$0xf] %vm1836_vm3, %v1817_v8 }
 0x1d9   :  { %v1027_v11 = vpop.f32.mrf.mxu1  ;;  %v2129_v12 = vpop.f32.mrf.mxu0 }
 0x1db   :  { %v2087_v13 = vpop.f32.mrf.mxu1  ;;  %v1411_v14 = vpop.f32.mrf.mxu0 }
 0x1dc   :  { %v1826_v15 = vpack.c.bf16 %v1411_v14, %v1411_v14 }
 0x1dd   :  { %v1110_v16 = vpop.f32.mrf.mxu1  ;;  %v2140_v18 = vpop.f32.mrf.mxu0 }
 0x1de   :  { %v1819_v19 = vpack.c.bf16 %v1110_v16, %v1110_v16  ;;  %1859 = vst.msk [vmem:[%s2714_s3 + $0x58] sm:$0xf] %vm1836_vm3, %v1826_v15 }
 0x1df   :  { %v2098_v20 = vpop.f32.mrf.mxu1  ;;  %v1414_v21 = vpop.f32.mrf.mxu0 }
 0x1e0   :  { %1852 = vst.msk [vmem:[%s2714_s3 + $0x3c] sm:$0xf] %vm1836_vm3, %v1819_v19 }
 0x1e1   :  { %v1113_v22 = vpop.f32.mrf.mxu1  ;;  %v2141_v23 = vpop.f32.mrf.mxu0 }
 0x1e3   :  { %v2099_v24 = vpop.f32.mrf.mxu1  ;;  %v1497_v26 = vpop.f32.mrf.mxu0 }
 0x1e4   :  { %v1828_v27 = vpack.c.bf16 %v1497_v26, %v1497_v26 }
 0x1e5   :  { %v1196_v28 = vpop.f32.mrf.mxu1  ;;  %v2152_v29 = vpop.f32.mrf.mxu0 }
 0x1e6   :  { %v1821_v30 = vpack.c.bf16 %v1196_v28, %v1196_v28  ;;  %1861 = vst.msk [vmem:[%s2714_s3 + $0x60] sm:$0xf] %vm1836_vm3, %v1828_v27 }
 0x1e7   :  { %v2110_v31 = vpop.f32.mrf.mxu1  ;;  %v1500_v32 = vpop.f32.mrf.mxu0 }
 0x1e8   :  { %1854 = vst.msk [vmem:[%s2714_s3 + $0x44] sm:$0xf] %vm1836_vm3, %v1821_v30 }
 0x1e9   :  { %v1199_v33 = vpop.f32.mrf.mxu1  ;;  %v2153_v34 = vpop.f32.mrf.mxu0 }
 0x1eb   :  { %v2111_v35 = vpop.f32.mrf.mxu1  ;;  %v1583_v36 = vpop.f32.mrf.mxu0 }
 0x1ec   :  { %v1830_v37 = vpack.c.bf16 %v1583_v36, %v1583_v36 }
 0x1ed   :  { %v1282_v38 = vpop.f32.mrf.mxu1  ;;  %v2164_v39 = vpop.f32.mrf.mxu0 }
 0x1ee   :  { %v1823_v40 = vpack.c.bf16 %v1282_v38, %v1282_v38  ;;  %1863 = vst.msk [vmem:[%s2714_s3 + $0x68] sm:$0xf] %vm1836_vm3, %v1830_v37 }
 0x1ef   :  { %v2122_v41 = vpop.f32.mrf.mxu1  ;;  %v1586_v42 = vpop.f32.mrf.mxu0 }
 0x1f0   :  { %1856 = vst.msk [vmem:[%s2714_s3 + $0x4c] sm:$0xf] %vm1836_vm3, %v1823_v40 }
 0x1f1   :  { %v1285_v43 = vpop.f32.mrf.mxu1  ;;  %v2165_v44 = vpop.f32.mrf.mxu0 }
 0x1f3   :  { %v2123_v45 = vpop.f32.mrf.mxu1  ;;  %v1669_v46 = vpop.f32.mrf.mxu0 }
 0x1f4   :  { %v1832_v47 = vpack.c.bf16 %v1669_v46, %v1669_v46 }
 0x1f5   :  { %v1368_v48 = vpop.f32.mrf.mxu1  ;;  %v2176_v49 = vpop.f32.mrf.mxu0 }
 0x1f6   :  { %v1825_v50 = vpack.c.bf16 %v1368_v48, %v1368_v48  ;;  %1865 = vst.msk [vmem:[%s2714_s3 + $0x70] sm:$0xf] %vm1836_vm3, %v1832_v47 }
 0x1f7   :  { %v2134_v51 = vpop.f32.mrf.mxu1  ;;  %v1672_v52 = vpop.f32.mrf.mxu0 }
 0x1f8   :  { %1858 = vst.msk [vmem:[%s2714_s3 + $0x54] sm:$0xf] %vm1836_vm3, %v1825_v50 }
 0x1f9   :  { %v1371_v53 = vpop.f32.mrf.mxu1  ;;  %v2177_v54 = vpop.f32.mrf.mxu0 }
 0x1fb   :  { %v2135_v55 = vpop.f32.mrf.mxu1  ;;  %v1755_v56 = vpop.f32.mrf.mxu0 }
 0x1fc   :  { %v1834_v57 = vpack.c.bf16 %v1755_v56, %v1755_v56 }
 0x1fd   :  { %v1454_v58 = vpop.f32.mrf.mxu1  ;;  %v2188_v59 = vpop.f32.mrf.mxu0 }
 0x1fe   :  { %v1827_v60 = vpack.c.bf16 %v1454_v58, %v1454_v58  ;;  %1867 = vst.msk [vmem:[%s2714_s3 + $0x78] sm:$0xf] %vm1836_vm3, %v1834_v57 }
 0x1ff   :  { %v2146_v17 = vpop.f32.mrf.mxu1  ;;  %v1758_v25 = vpop.f32.mrf.mxu0 }
 0x200   :  { %1860 = vst.msk [vmem:[%s2714_s3 + $0x5c] sm:$0xf] %vm1836_vm3, %v1827_v60 }
 0x201   :  { %v1457_v61 = vpop.f32.mrf.mxu1  ;;  %v2189_v62 = vpop.f32.mrf.mxu0 }
 0x203   :  { %v2147_v63 = vpop.f32.mrf.mxu1 }
 0x205   :  { %v1540_v0 = vpop.f32.mrf.mxu1 }
 0x206   :  { %v1829_v1 = vpack.c.bf16 %v1540_v0, %v1540_v0 }
 0x207   :  { %v2158_v2 = vpop.f32.mrf.mxu1 }
 0x208   :  { %1862 = vst.msk [vmem:[%s2714_s3 + $0x64] sm:$0xf] %vm1836_vm3, %v1829_v1 }
 0x209   :  { %v1543_v3 = vpop.f32.mrf.mxu1 }
 0x20b   :  { %v2159_v4 = vpop.f32.mrf.mxu1 }
 0x20d   :  { %v1626_v5 = vpop.f32.mrf.mxu1 }
 0x20e   :  { %v1831_v6 = vpack.c.bf16 %v1626_v5, %v1626_v5 }
 0x20f   :  { %v2170_v7 = vpop.f32.mrf.mxu1 }
 0x210   :  { %1864 = vst.msk [vmem:[%s2714_s3 + $0x6c] sm:$0xf] %vm1836_vm3, %v1831_v6 }
 0x211   :  { %v1629_v8 = vpop.f32.mrf.mxu1 }
 0x213   :  { %v2171_v9 = vpop.f32.mrf.mxu1 }
 0x215   :  { %v1712_v10 = vpop.f32.mrf.mxu1 }
 0x216   :  { %v1833_v11 = vpack.c.bf16 %v1712_v10, %v1712_v10 }
 0x217   :  { %v2182_v12 = vpop.f32.mrf.mxu1 }
 0x218   :  { %1866 = vst.msk [vmem:[%s2714_s3 + $0x74] sm:$0xf] %vm1836_vm3, %v1833_v11 }
 0x219   :  { %v1715_v13 = vpop.f32.mrf.mxu1 }
 0x21b   :  { %v2183_v14 = vpop.f32.mrf.mxu1 }
 0x21d   :  { %v1798_v15 = vpop.f32.mrf.mxu1 }
 0x21e   :  { %v1835_v16 = vpack.c.bf16 %v1798_v15, %v1798_v15 }
 0x21f   :  { %v2194_v18 = vpop.f32.mrf.mxu1 }
 0x220   :  { %1868 = vst.msk [vmem:[%s2714_s3 + $0x7c] sm:$0xf] %vm1836_vm3, %v1835_v16 }
 0x221   :  { %v1801_v19 = vpop.f32.mrf.mxu1 }
 0x223   :  { %v2195_v20 = vpop.f32.mrf.mxu1 }

</bundles_post_ra>
